<compile_context>
chip_gen: v6e
topology: v6e:2x2x1
jax: 0.10.0
libtpu: 0.0.40
codegen_flags: <defaults>
</compile_context>

<pallas_src>
import functools

import jax
import jax.numpy as jnp
from jax.experimental import pallas as pl
from jax.experimental.pallas import tpu as pltpu


COMPUTE_DTYPE = jnp.bfloat16   # MXU-native operand dtype; accumulation is f32.


# ---------------------------------------------------------------------------
# Pallas kernels
# ---------------------------------------------------------------------------

def _conv3x3_kernel(x_ref, w_ref, b_ref, o_ref, xp_ref, *, fuse_relu, fuse_pool):
    """Fused 3x3 conv (stride 1, pad 1) [+ ReLU] [+ 2x2 max-pool].

    x_ref : (1, H, W, Cin)     un-padded activation tile (bf16)
    w_ref : (9, Cin, Cout)     3x3 taps (ky*3+kx), bf16, grid-resident
    b_ref : (1, Cout)          bias, f32
    o_ref : (1, Ho, Wo, Cout)  Ho/Wo = H/W (or H/2, W/2 when fuse_pool)
    xp_ref: (H+2, W+2, Cin)    VMEM scratch holding the zero-padded tile
    """
    _, H, W, Cin = x_ref.shape
    Cout = o_ref.shape[-1]

    # Build the zero halo inside VMEM (no HBM pad round trip).  Re-zeroing
    # every step keeps this correct even if the batch grid is split across
    # cores ("parallel" semantics).
    xp_ref[...] = jnp.zeros_like(xp_ref)
    xp_ref[1:H + 1, 1:W + 1, :] = x_ref[0]

    # 9 accumulating MXU dots; each tap window is read straight from the
    # padded scratch ref (no per-tap materialized strided copy).
    acc = jnp.zeros((H * W, Cout), dtype=jnp.float32)
    for t in range(9):
        ky, kx = t // 3, t % 3
        patch = xp_ref[ky:ky + H, kx:kx + W, :].reshape(H * W, Cin)
        acc = acc + jnp.dot(patch, w_ref[t], preferred_element_type=jnp.float32)
    acc = acc + b_ref[...]                           # broadcast (1, Cout)

    if fuse_relu:                                    # free on the VPU slot
        acc = jnp.maximum(acc, 0.0)

    if fuse_pool:                                    # 2x2/2 max-pool epilogue
        Ho, Wo = H // 2, W // 2
        pooled = jnp.max(acc.reshape(Ho, 2, Wo, 2, Cout), axis=(1, 3))
        o_ref[...] = pooled.reshape(1, Ho, Wo, Cout).astype(o_ref.dtype)
    else:
        o_ref[...] = acc.reshape(1, H, W, Cout).astype(o_ref.dtype)


def _relu_kernel(x_ref, o_ref):
    # Only used when a pre-activation (conv) feature is explicitly requested.
    o_ref[...] = jnp.maximum(x_ref[...], 0.0).astype(o_ref.dtype)


def _maxpool2x2_kernel(x_ref, o_ref):
    """MaxPool2d(kernel=2, stride=2).  Used when the preceding ReLU output is
    itself a requested feature (so the pool cannot be fused into the conv)."""
    _, Ho, Wo, C = o_ref.shape
    x = x_ref[0].reshape(Ho, 2, Wo, 2, C)
    o_ref[...] = jnp.max(x, axis=(1, 3)).reshape(1, Ho, Wo, C).astype(o_ref.dtype)


# ---------------------------------------------------------------------------
# Pallas wrappers (grid over batch; one image per grid step)
# ---------------------------------------------------------------------------

def conv3x3(x_nhwc, w_k, b_k, *, fuse_relu=False, fuse_pool=False):
    """x: (N,H,W,Cin) bf16; w_k: (9,Cin,Cout) bf16; b_k: (1,Cout) f32."""
    N, H, W, Cin = x_nhwc.shape
    Cout = w_k.shape[-1]
    Ho, Wo = (H // 2, W // 2) if fuse_pool else (H, W)
    kernel = functools.partial(_conv3x3_kernel,
                               fuse_relu=fuse_relu, fuse_pool=fuse_pool)
    return pl.pallas_call(
        kernel,
        out_shape=jax.ShapeDtypeStruct((N, Ho, Wo, Cout), COMPUTE_DTYPE),
        grid=(N,),
        in_specs=[
            pl.BlockSpec((1, H, W, Cin), lambda n: (n, 0, 0, 0)),
            pl.BlockSpec((9, Cin, Cout), lambda n: (0, 0, 0)),   # weights stay resident
            pl.BlockSpec((1, Cout), lambda n: (0, 0)),
        ],
        out_specs=pl.BlockSpec((1, Ho, Wo, Cout), lambda n: (n, 0, 0, 0)),
        scratch_shapes=[pltpu.VMEM((H + 2, W + 2, Cin), COMPUTE_DTYPE)],
        compiler_params=pltpu.CompilerParams(
            dimension_semantics=("parallel",)),
    )(x_nhwc, w_k, b_k)


def relu(x_nhwc):
    N, H, W, C = x_nhwc.shape
    return pl.pallas_call(
        _relu_kernel,
        out_shape=jax.ShapeDtypeStruct(x_nhwc.shape, x_nhwc.dtype),
        grid=(N,),
        in_specs=[pl.BlockSpec((1, H, W, C), lambda n: (n, 0, 0, 0))],
        out_specs=pl.BlockSpec((1, H, W, C), lambda n: (n, 0, 0, 0)),
        compiler_params=pltpu.CompilerParams(
            dimension_semantics=("parallel",)),
    )(x_nhwc)


def maxpool2x2(x_nhwc):
    N, H, W, C = x_nhwc.shape
    Ho, Wo = H // 2, W // 2
    return pl.pallas_call(
        _maxpool2x2_kernel,
        out_shape=jax.ShapeDtypeStruct((N, Ho, Wo, C), x_nhwc.dtype),
        grid=(N,),
        in_specs=[pl.BlockSpec((1, H, W, C), lambda n: (n, 0, 0, 0))],
        out_specs=pl.BlockSpec((1, Ho, Wo, C), lambda n: (n, 0, 0, 0)),
        compiler_params=pltpu.CompilerParams(
            dimension_semantics=("parallel",)),
    )(x_nhwc)


# ---------------------------------------------------------------------------
# VGG-19 feature stack (torchvision cfg 'E', no batch-norm)
# ---------------------------------------------------------------------------

VGG19_CFG = [64, 64, 'M', 128, 128, 'M', 256, 256, 256, 256, 'M',
             512, 512, 512, 512, 'M', 512, 512, 512, 512, 'M']


def _make_arch():
    arch, in_ch = [], 3
    for v in VGG19_CFG:
        if v == 'M':
            arch.append(('maxpool', None))
        else:
            arch.append(('conv', (in_ch, v)))
            arch.append(('relu', None))
            in_ch = v
    return arch                      # 37 "modules", same indexing as torchvision


class VGGPallas:
    """Pallas re-implementation of the PyTorch VGG wrapper's forward()."""

    def __init__(self, layers, replace_pooling=False, seed=0):
        self.layers = tuple(layers)
        # TODO(synk): replace_pooling=True swaps pools 4/9/18/27/36 for
        # AvgPool2d((2,2),(2,2),(1,1)); only the default (False) path is implemented.
        assert not replace_pooling
        # Note: the torch module's `instance_normalization` / `relu` members
        # are never used in forward() and are intentionally omitted.
        self.arch = _make_arch()

        # Deterministic synthetic "pretrained" weights (exact VGG-19 shapes),
        # pre-folded once to the MXU-friendly (9, Cin, Cout) bf16 layout.
        key = jax.random.PRNGKey(seed)
        self.params = {}
        max_needed = max(self.layers)
        for idx, (kind, spec) in enumerate(self.arch):
            if kind == 'conv' and idx <= max_needed:   # forward() breaks early
                cin, cout = spec
                key, kw, kb = jax.random.split(key, 3)
                w = jax.random.normal(kw, (cout, cin, 3, 3), jnp.float32) * 0.05
                b = jax.random.normal(kb, (cout,), jnp.float32) * 0.01
                w_k = jnp.transpose(w, (2, 3, 1, 0)).reshape(9, cin, cout)
                self.params[idx] = (w_k.astype(COMPUTE_DTYPE),
                                    b.reshape(1, cout).astype(jnp.float32))

    @staticmethod
    def _emit_feature(x_nhwc):
        return jnp.transpose(x_nhwc, (0, 3, 1, 2)).astype(jnp.float32)  # -> NCHW f32

    def __call__(self, x_nchw):
        x = jnp.transpose(x_nchw, (0, 2, 3, 1)).astype(COMPUTE_DTYPE)   # NCHW -> NHWC
        wanted = set(self.layers)
        n_wanted = len(self.layers)
        features = []
        arch = self.arch
        i = 0
        # Mirrors the torch loop (collect at requested indices, break when
        # complete) while fusing relu / pool into the conv only when the
        # skipped intermediate activations are NOT requested features.
        while i < len(arch) and len(features) < n_wanted:
            kind, _ = arch[i]
            if kind == 'conv':
                w_k, b_k = self.params[i]
                fuse_relu = (i + 1 < len(arch) and arch[i + 1][0] == 'relu'
                             and i not in wanted)
                fuse_pool = (fuse_relu and i + 2 < len(arch)
                             and arch[i + 2][0] == 'maxpool'
                             and (i + 1) not in wanted)
                x = conv3x3(x, w_k, b_k, fuse_relu=fuse_relu, fuse_pool=fuse_pool)
                last = i + (2 if fuse_pool else (1 if fuse_relu else 0))
                if last in wanted:
                    features.append(self._emit_feature(x))
                i = last + 1
            elif kind == 'relu':
                x = relu(x)
                if i in wanted:
                    features.append(self._emit_feature(x))
                i += 1
            else:  # 'maxpool'
                x = maxpool2x2(x)
                if i in wanted:
                    features.append(self._emit_feature(x))
                i += 1
        return features


# ---------------------------------------------------------------------------
if __name__ == "__main__":
    key = jax.random.PRNGKey(0)
    # PyTorch-convention NCHW input: batch=2, RGB, 16x16
    x = jax.random.normal(key, (2, 3, 16, 16), jnp.float32)

    # Collect relu1_1, relu1_2, relu2_1, relu2_2 (torchvision feature indices).
    model = VGGPallas(layers=(1, 3, 6, 8))
    feats = jax.block_until_ready(model(x))
    expected = [(2, 64, 16, 16), (2, 64, 16, 16), (2, 128, 8, 8), (2, 128, 8, 8)]
    assert [tuple(f.shape) for f in feats] == expected, [f.shape for f in feats]
    assert all(bool(jnp.all(jnp.isfinite(f))) for f in feats)

    # Second configuration that exercises the fused conv+relu+maxpool epilogue.
    model2 = VGGPallas(layers=(6, 9))
    feats2 = jax.block_until_ready(model2(x))
    expected2 = [(2, 128, 8, 8), (2, 128, 4, 4)]
    assert [tuple(f.shape) for f in feats2] == expected2, [f.shape for f in feats2]
    assert all(bool(jnp.all(jnp.isfinite(f))) for f in feats2)

    print("KERNEL_OK")
</pallas_src>

<mosaic_0001>
module attributes {stable_mosaic.version = 11 : i64} {
  func.func @_conv3x3_kernel(%arg0: i32, %arg1: memref<1x16x16x3xbf16, #tpu.memory_space<vmem>>, %arg2: memref<9x3x64xbf16, #tpu.memory_space<vmem>>, %arg3: memref<1x64xf32, #tpu.memory_space<vmem>>, %arg4: memref<1x16x16x64xbf16, #tpu.memory_space<vmem>>, %arg5: memref<18x18x3xbf16, #tpu.memory_space<vmem>>) attributes {dimension_semantics = [#tpu.dimension_semantics<parallel>], iteration_bounds = array<i64: 2>, scalar_prefetch = 0 : i64, scratch_operands = 1 : i64, tpu.core_type = #tpu.core_type<tc>, window_params = [{transform_indices = @transform_0, window_bounds = array<i64: 1, 16, 16, 3>}, {pipeline_mode = #tpu.pipeline_mode<synchronous>, transform_indices = @transform_1, window_bounds = array<i64: 9, 3, 64>}, {pipeline_mode = #tpu.pipeline_mode<synchronous>, transform_indices = @transform_2, window_bounds = array<i64: 1, 64>}, {transform_indices = @transform_3, window_bounds = array<i64: 1, 16, 16, 64>}]} {
    %cst = arith.constant 0.000000e+00 : bf16
    %0 = vector.broadcast %cst : bf16 to vector<18x18x3xbf16>
    %c0 = arith.constant 0 : index
    %c0_0 = arith.constant 0 : index
    %c0_1 = arith.constant 0 : index
    %1 = vector.load %arg5[%c0, %c0_0, %c0_1] : memref<18x18x3xbf16, #tpu.memory_space<vmem>>, vector<18x18x3xbf16>
    tpu.vector_store %arg5[%c0, %c0_0, %c0_1], %0 {strides = array<i32>} : memref<18x18x3xbf16, #tpu.memory_space<vmem>>, vector<18x18x3xbf16>,
    %c0_2 = arith.constant 0 : index
    %c0_3 = arith.constant 0 : index
    %c0_4 = arith.constant 0 : index
    %c0_5 = arith.constant 0 : index
    %2 = vector.load %arg1[%c0_2, %c0_3, %c0_4, %c0_5] : memref<1x16x16x3xbf16, #tpu.memory_space<vmem>>, vector<1x16x16x3xbf16>
    %3 = vector.shape_cast %2 : vector<1x16x16x3xbf16> to vector<16x16x3xbf16>
    %c1 = arith.constant 1 : index
    %c1_6 = arith.constant 1 : index
    %c0_7 = arith.constant 0 : index
    %4 = vector.load %arg5[%c1, %c1_6, %c0_7] : memref<18x18x3xbf16, #tpu.memory_space<vmem>>, vector<16x16x3xbf16>
    tpu.vector_store %arg5[%c1, %c1_6, %c0_7], %3 {strides = array<i32>} : memref<18x18x3xbf16, #tpu.memory_space<vmem>>, vector<16x16x3xbf16>,
    %cst_8 = arith.constant 0.000000e+00 : f32
    %5 = vector.broadcast %cst_8 : f32 to vector<256x64xf32>
    %c0_9 = arith.constant 0 : index
    %c0_10 = arith.constant 0 : index
    %c0_11 = arith.constant 0 : index
    %6 = vector.load %arg5[%c0_9, %c0_10, %c0_11] : memref<18x18x3xbf16, #tpu.memory_space<vmem>>, vector<16x16x3xbf16>
    %7 = vector.shape_cast %6 : vector<16x16x3xbf16> to vector<256x3xbf16>
    %c0_12 = arith.constant 0 : index
    %c0_13 = arith.constant 0 : index
    %c0_14 = arith.constant 0 : index
    %8 = vector.load %arg2[%c0_12, %c0_13, %c0_14] : memref<9x3x64xbf16, #tpu.memory_space<vmem>>, vector<1x3x64xbf16>
    %9 = vector.shape_cast %8 : vector<1x3x64xbf16> to vector<3x64xbf16>
    %cst_15 = arith.constant dense<0.000000e+00> : vector<256x64xf32>
    %10 = tpu.matmul %7, %9, %cst_15 {dimension_numbers = #tpu.dot_dimension_numbers<[1], [0], [0], [1], [0, 0, 1, 1], [], []>} : vector<256x3xbf16>, vector<3x64xbf16>, vector<256x64xf32> -> vector<256x64xf32>
    %11 = arith.addf %5, %10 : vector<256x64xf32>
    %c0_16 = arith.constant 0 : index
    %c1_17 = arith.constant 1 : index
    %c0_18 = arith.constant 0 : index
    %12 = vector.load %arg5[%c0_16, %c1_17, %c0_18] : memref<18x18x3xbf16, #tpu.memory_space<vmem>>, vector<16x16x3xbf16>
    %13 = vector.shape_cast %12 : vector<16x16x3xbf16> to vector<256x3xbf16>
    %c1_19 = arith.constant 1 : index
    %c0_20 = arith.constant 0 : index
    %c0_21 = arith.constant 0 : index
    %14 = vector.load %arg2[%c1_19, %c0_20, %c0_21] : memref<9x3x64xbf16, #tpu.memory_space<vmem>>, vector<1x3x64xbf16>
    %15 = vector.shape_cast %14 : vector<1x3x64xbf16> to vector<3x64xbf16>
    %cst_22 = arith.constant dense<0.000000e+00> : vector<256x64xf32>
    %16 = tpu.matmul %13, %15, %cst_22 {dimension_numbers = #tpu.dot_dimension_numbers<[1], [0], [0], [1], [0, 0, 1, 1], [], []>} : vector<256x3xbf16>, vector<3x64xbf16>, vector<256x64xf32> -> vector<256x64xf32>
    %17 = arith.addf %11, %16 : vector<256x64xf32>
    %c0_23 = arith.constant 0 : index
    %c2 = arith.constant 2 : index
    %c0_24 = arith.constant 0 : index
    %18 = vector.load %arg5[%c0_23, %c2, %c0_24] : memref<18x18x3xbf16, #tpu.memory_space<vmem>>, vector<16x16x3xbf16>
    %19 = vector.shape_cast %18 : vector<16x16x3xbf16> to vector<256x3xbf16>
    %c2_25 = arith.constant 2 : index
    %c0_26 = arith.constant 0 : index
    %c0_27 = arith.constant 0 : index
    %20 = vector.load %arg2[%c2_25, %c0_26, %c0_27] : memref<9x3x64xbf16, #tpu.memory_space<vmem>>, vector<1x3x64xbf16>
    %21 = vector.shape_cast %20 : vector<1x3x64xbf16> to vector<3x64xbf16>
    %cst_28 = arith.constant dense<0.000000e+00> : vector<256x64xf32>
    %22 = tpu.matmul %19, %21, %cst_28 {dimension_numbers = #tpu.dot_dimension_numbers<[1], [0], [0], [1], [0, 0, 1, 1], [], []>} : vector<256x3xbf16>, vector<3x64xbf16>, vector<256x64xf32> -> vector<256x64xf32>
    %23 = arith.addf %17, %22 : vector<256x64xf32>
    %c1_29 = arith.constant 1 : index
    %c0_30 = arith.constant 0 : index
    %c0_31 = arith.constant 0 : index
    %24 = vector.load %arg5[%c1_29, %c0_30, %c0_31] : memref<18x18x3xbf16, #tpu.memory_space<vmem>>, vector<16x16x3xbf16>
    %25 = vector.shape_cast %24 : vector<16x16x3xbf16> to vector<256x3xbf16>
    %c3 = arith.constant 3 : index
    %c0_32 = arith.constant 0 : index
    %c0_33 = arith.constant 0 : index
    %26 = vector.load %arg2[%c3, %c0_32, %c0_33] : memref<9x3x64xbf16, #tpu.memory_space<vmem>>, vector<1x3x64xbf16>
    %27 = vector.shape_cast %26 : vector<1x3x64xbf16> to vector<3x64xbf16>
    %cst_34 = arith.constant dense<0.000000e+00> : vector<256x64xf32>
    %28 = tpu.matmul %25, %27, %cst_34 {dimension_numbers = #tpu.dot_dimension_numbers<[1], [0], [0], [1], [0, 0, 1, 1], [], []>} : vector<256x3xbf16>, vector<3x64xbf16>, vector<256x64xf32> -> vector<256x64xf32>
    %29 = arith.addf %23, %28 : vector<256x64xf32>
    %c1_35 = arith.constant 1 : index
    %c1_36 = arith.constant 1 : index
    %c0_37 = arith.constant 0 : index
    %30 = vector.load %arg5[%c1_35, %c1_36, %c0_37] : memref<18x18x3xbf16, #tpu.memory_space<vmem>>, vector<16x16x3xbf16>
    %31 = vector.shape_cast %30 : vector<16x16x3xbf16> to vector<256x3xbf16>
    %c4 = arith.constant 4 : index
    %c0_38 = arith.constant 0 : index
    %c0_39 = arith.constant 0 : index
    %32 = vector.load %arg2[%c4, %c0_38, %c0_39] : memref<9x3x64xbf16, #tpu.memory_space<vmem>>, vector<1x3x64xbf16>
    %33 = vector.shape_cast %32 : vector<1x3x64xbf16> to vector<3x64xbf16>
    %cst_40 = arith.constant dense<0.000000e+00> : vector<256x64xf32>
    %34 = tpu.matmul %31, %33, %cst_40 {dimension_numbers = #tpu.dot_dimension_numbers<[1], [0], [0], [1], [0, 0, 1, 1], [], []>} : vector<256x3xbf16>, vector<3x64xbf16>, vector<256x64xf32> -> vector<256x64xf32>
    %35 = arith.addf %29, %34 : vector<256x64xf32>
    %c1_41 = arith.constant 1 : index
    %c2_42 = arith.constant 2 : index
    %c0_43 = arith.constant 0 : index
    %36 = vector.load %arg5[%c1_41, %c2_42, %c0_43] : memref<18x18x3xbf16, #tpu.memory_space<vmem>>, vector<16x16x3xbf16>
    %37 = vector.shape_cast %36 : vector<16x16x3xbf16> to vector<256x3xbf16>
    %c5 = arith.constant 5 : index
    %c0_44 = arith.constant 0 : index
    %c0_45 = arith.constant 0 : index
    %38 = vector.load %arg2[%c5, %c0_44, %c0_45] : memref<9x3x64xbf16, #tpu.memory_space<vmem>>, vector<1x3x64xbf16>
    %39 = vector.shape_cast %38 : vector<1x3x64xbf16> to vector<3x64xbf16>
    %cst_46 = arith.constant dense<0.000000e+00> : vector<256x64xf32>
    %40 = tpu.matmul %37, %39, %cst_46 {dimension_numbers = #tpu.dot_dimension_numbers<[1], [0], [0], [1], [0, 0, 1, 1], [], []>} : vector<256x3xbf16>, vector<3x64xbf16>, vector<256x64xf32> -> vector<256x64xf32>
    %41 = arith.addf %35, %40 : vector<256x64xf32>
    %c2_47 = arith.constant 2 : index
    %c0_48 = arith.constant 0 : index
    %c0_49 = arith.constant 0 : index
    %42 = vector.load %arg5[%c2_47, %c0_48, %c0_49] : memref<18x18x3xbf16, #tpu.memory_space<vmem>>, vector<16x16x3xbf16>
    %43 = vector.shape_cast %42 : vector<16x16x3xbf16> to vector<256x3xbf16>
    %c6 = arith.constant 6 : index
    %c0_50 = arith.constant 0 : index
    %c0_51 = arith.constant 0 : index
    %44 = vector.load %arg2[%c6, %c0_50, %c0_51] : memref<9x3x64xbf16, #tpu.memory_space<vmem>>, vector<1x3x64xbf16>
    %45 = vector.shape_cast %44 : vector<1x3x64xbf16> to vector<3x64xbf16>
    %cst_52 = arith.constant dense<0.000000e+00> : vector<256x64xf32>
    %46 = tpu.matmul %43, %45, %cst_52 {dimension_numbers = #tpu.dot_dimension_numbers<[1], [0], [0], [1], [0, 0, 1, 1], [], []>} : vector<256x3xbf16>, vector<3x64xbf16>, vector<256x64xf32> -> vector<256x64xf32>
    %47 = arith.addf %41, %46 : vector<256x64xf32>
    %c2_53 = arith.constant 2 : index
    %c1_54 = arith.constant 1 : index
    %c0_55 = arith.constant 0 : index
    %48 = vector.load %arg5[%c2_53, %c1_54, %c0_55] : memref<18x18x3xbf16, #tpu.memory_space<vmem>>, vector<16x16x3xbf16>
    %49 = vector.shape_cast %48 : vector<16x16x3xbf16> to vector<256x3xbf16>
    %c7 = arith.constant 7 : index
    %c0_56 = arith.constant 0 : index
    %c0_57 = arith.constant 0 : index
    %50 = vector.load %arg2[%c7, %c0_56, %c0_57] : memref<9x3x64xbf16, #tpu.memory_space<vmem>>, vector<1x3x64xbf16>
    %51 = vector.shape_cast %50 : vector<1x3x64xbf16> to vector<3x64xbf16>
    %cst_58 = arith.constant dense<0.000000e+00> : vector<256x64xf32>
    %52 = tpu.matmul %49, %51, %cst_58 {dimension_numbers = #tpu.dot_dimension_numbers<[1], [0], [0], [1], [0, 0, 1, 1], [], []>} : vector<256x3xbf16>, vector<3x64xbf16>, vector<256x64xf32> -> vector<256x64xf32>
    %53 = arith.addf %47, %52 : vector<256x64xf32>
    %c2_59 = arith.constant 2 : index
    %c2_60 = arith.constant 2 : index
    %c0_61 = arith.constant 0 : index
    %54 = vector.load %arg5[%c2_59, %c2_60, %c0_61] : memref<18x18x3xbf16, #tpu.memory_space<vmem>>, vector<16x16x3xbf16>
    %55 = vector.shape_cast %54 : vector<16x16x3xbf16> to vector<256x3xbf16>
    %c8 = arith.constant 8 : index
    %c0_62 = arith.constant 0 : index
    %c0_63 = arith.constant 0 : index
    %56 = vector.load %arg2[%c8, %c0_62, %c0_63] : memref<9x3x64xbf16, #tpu.memory_space<vmem>>, vector<1x3x64xbf16>
    %57 = vector.shape_cast %56 : vector<1x3x64xbf16> to vector<3x64xbf16>
    %cst_64 = arith.constant dense<0.000000e+00> : vector<256x64xf32>
    %58 = tpu.matmul %55, %57, %cst_64 {dimension_numbers = #tpu.dot_dimension_numbers<[1], [0], [0], [1], [0, 0, 1, 1], [], []>} : vector<256x3xbf16>, vector<3x64xbf16>, vector<256x64xf32> -> vector<256x64xf32>
    %59 = arith.addf %53, %58 : vector<256x64xf32>
    %c0_65 = arith.constant 0 : index
    %c0_66 = arith.constant 0 : index
    %60 = vector.load %arg3[%c0_65, %c0_66] : memref<1x64xf32, #tpu.memory_space<vmem>>, vector<1x64xf32>
    %61 = vector.broadcast %60 : vector<1x64xf32> to vector<256x64xf32>
    %62 = arith.addf %59, %61 : vector<256x64xf32>
    %cst_67 = arith.constant 0.000000e+00 : f32
    %63 = vector.broadcast %cst_67 : f32 to vector<256x64xf32>
    %64 = arith.maximumf %62, %63 : vector<256x64xf32>
    %65 = vector.shape_cast %64 : vector<256x64xf32> to vector<1x16x16x64xf32>
    %66 = arith.truncf %65 : vector<1x16x16x64xf32> to vector<1x16x16x64xbf16>
    %c0_68 = arith.constant 0 : index
    %c0_69 = arith.constant 0 : index
    %c0_70 = arith.constant 0 : index
    %c0_71 = arith.constant 0 : index
    %67 = vector.load %arg4[%c0_68, %c0_69, %c0_70, %c0_71] : memref<1x16x16x64xbf16, #tpu.memory_space<vmem>>, vector<1x16x16x64xbf16>
    tpu.vector_store %arg4[%c0_68, %c0_69, %c0_70, %c0_71], %66 {strides = array<i32>} : memref<1x16x16x64xbf16, #tpu.memory_space<vmem>>, vector<1x16x16x64xbf16>,
    return
  }
  func.func @transform_0(%arg0: i32) -> (i32, i32, i32, i32) {
    %c0_i32 = arith.constant 0 : i32
    %c0_i32_0 = arith.constant 0 : i32
    %c0_i32_1 = arith.constant 0 : i32
    %c0_i32_2 = arith.constant 0 : i32
    return %arg0, %c0_i32, %c0_i32_0, %c0_i32_1 : i32, i32, i32, i32
  }
  func.func @transform_1(%arg0: i32) -> (i32, i32, i32) {
    %c0_i32 = arith.constant 0 : i32
    %c0_i32_0 = arith.constant 0 : i32
    %c0_i32_1 = arith.constant 0 : i32
    %c0_i32_2 = arith.constant 0 : i32
    return %c0_i32, %c0_i32_0, %c0_i32_1 : i32, i32, i32
  }
  func.func @transform_2(%arg0: i32) -> (i32, i32) {
    %c0_i32 = arith.constant 0 : i32
    %c0_i32_0 = arith.constant 0 : i32
    %c0_i32_1 = arith.constant 0 : i32
    return %c0_i32, %c0_i32_0 : i32, i32
  }
  func.func @transform_3(%arg0: i32) -> (i32, i32, i32, i32) {
    %c0_i32 = arith.constant 0 : i32
    %c0_i32_0 = arith.constant 0 : i32
    %c0_i32_1 = arith.constant 0 : i32
    %c0_i32_2 = arith.constant 0 : i32
    return %arg0, %c0_i32, %c0_i32_0, %c0_i32_1 : i32, i32, i32, i32
  }
}

</mosaic_0001>

<bundles_post_ra>
// kernel: tpu_custom_call.1
= control target key start
LH: loop header
LB: loop body
LE: loop exit
PB: predicated region body
PF: predicated region fallthrough
CT: control target
= control target key end

     0   :  { %8 = vsyncpa [#allocation4], 0  ;;  %s9329_s0 = inlined_call_operand.vmem [shape: bf16[2,16,16,3], index: 0, kind: input, shape index: {}]   ;;  %s9330_s1 = inlined_call_operand.vmem [shape: bf16[9,3,64], index: 1, kind: input, shape index: {}]   ;;  %s9331_s2 = inlined_call_operand.vmem [shape: f32[1,64], index: 2, kind: input, shape index: {}]   ;;  %s9332_s3 = inlined_call_operand.hbm [shape: bf16[2,16,16,64], index: 3, kind: output, shape index: {}]  }
   0x1   :  { %10 = vsyncpa [#allocation4 + $0x1], 0  ;;  %s6634_s12 = smov 0   ;;  %s6636_s13 = smov 0  }
   0x2   :  { %s6638_s14 = smov 0   ;;  %s6640_s15 = smov 0  }
   0x3 LB: > { %s6655_s16 = sadd.s32 4294967295, %s6607_s15   ;;  %s5568_s17 = sadd.s32 4294967294, %s6607_s15   ;;  %s6607_s15 = sphi %s6640_s15, %s9561_s15   ;;  %s6603_s14 = sphi %s6638_s14, %s9560_s14   ;;  %s6599_s13 = sphi %s6636_s13, %s9559_s13   ;;  %s6595_s12 = sphi %s6634_s12, %s9558_s12  }
   0x4   : > { %s6659_s18 = sadd.s32 1, %s6607_s15   ;;  %s91_s19 = sadd.s32 1, %s6603_s14 }
   0x5   : > { %s88_s20 = ssub.s32 %s6607_s15, %s6659_s18  ;;  %p101_p0 = scmp.ne.s32.totalorder %s6603_s14, %s6599_s13 }
   0x6   : > { %p89_p1 = scmp.eq.s32.totalorder %s88_s20, 0  ;;  %p102_p2 = scmp.eq.s32.totalorder %s6655_s16, 1 }
   0x7   : > { %p107_p3 = scmp.ne.s32.totalorder %s6599_s13, %s6595_s12  ;;  %p108_p4 = scmp.eq.s32.totalorder %s5568_s17, 1 }
   0x8   : > { %s6670_s21 = scalar_select %p89_p1, %s6603_s14, %s91_s19  }
   0x9   : > { %p6672_p5 = por %p102_p2, %p101_p0  ;;  %p6676_p6 = por %p108_p4, %p107_p3 }
   0xa   : > { %p5571_p7 = scmp.ge.s32.totalorder %s6607_s15, 1  ;;  %p140_p8 = scmp.lt.s32.totalorder %s6607_s15, 3 }
   0xc   : > { %p141_p9 = pnand %p5571_p7, %p140_p8 }
   0xe   : > { %144 = sbr.rel (%p141_p9) target bundleno = 656 (0x290), region = 32 }
  0x13   : > { %v6685_v0 = vld [vmem:[%s9330_s1 + $0x2] sm:$0x3]  ;;  %vm1234_vm0 = vcmask 1040384   ;;  %vm1235_vm1 = vcmask 1041408   ;;  %vm170_vm2 = vcmask 19456   ;;  %v6609_v1 = vmov 65535  }
  0x14   : > { %v1236_v2 = vsel %vm1234_vm0, 4294967295, %v6609_v1  ;;  %vm173_vm3 = vcmask 16384   ;;  %p164_p10 = scmp.lt.s32.totalorder %s6655_s16, 1  ;;  %v6610_v4 = vmov 0   ;;  %v731_v6 = vld [vmem:[%s9330_s1] sm:$0x3] }
  0x15   : > { %v6688_v3 = vsel %vm1235_vm1, %v1236_v2, 0  ;;  %171 = vst.msk [vmem:[#allocation2] sm:$0xf] %vm170_vm2, %v6610_v4  ;;  %172 = vst.msk [vmem:[#allocation2 + $0x4] sm:$0xf] %vm170_vm2, %v6610_v4  ;;  %vm1185_vm9 = vcmask 23552  }
  0x16   : > { %174 = vst.msk [vmem:[#allocation2 + $0x8] sm:$0x1] %vm173_vm3, %v6610_v4  ;;  %177 = vst.msk [vmem:[#allocation2 + $0x14] sm:$0x1] %vm173_vm3, %v6610_v4  ;;  %v1239_v5 = vand.u32 %v6685_v0, %v6688_v3  ;;  %s165_s26 = scalar_select %p164_p10, %s6655_s16, 1  ;;  %v6756_v8 = vand.u32 %v6688_v3, %v731_v6  ;;  %v9342_v26 = vmov 0 }
  0x17   : > { %175 = vst.msk [vmem:[#allocation2 + $0xc] sm:$0xf] %vm170_vm2, %v6610_v4  ;;  %176 = vst.msk [vmem:[#allocation2 + $0x10] sm:$0xf] %vm170_vm2, %v6610_v4  ;;  %v5656_v7 = vld [vmem:[%s9330_s1 + $0x4] sm:$0x3] }
  0x18   : > { %178 = vst.msk [vmem:[#allocation2 + $0x18] sm:$0xf] %vm170_vm2, %v6610_v4  ;;  %179 = vst.msk [vmem:[#allocation2 + $0x1c] sm:$0xf] %vm170_vm2, %v6610_v4  ;;  %6144 = vmatprep.subr.bf16.mxu0 %v1239_v5  ;;  %6450 = vmatprep.subr.bf16.mxu1 %v1239_v5  ;;  %vm748_vm4 = vsmask.f32 3328  ;;  %v6759_v9 = vand.u32 %v5656_v7, %v6688_v3 }
  0x19   : > { %180 = vst.msk [vmem:[#allocation2 + $0x20] sm:$0x1] %vm173_vm3, %v6610_v4  ;;  %183 = vst.msk [vmem:[#allocation2 + $0x2c] sm:$0x1] %vm173_vm3, %v6610_v4  ;;  %s5957_s4 = sshll.u32 %s165_s26, 7  ;;  %6145 = vmatpush3.bf16.msra.mxu0 %v1239_v5  ;;  %6451 = vmatpush3.bf16.msra.mxu1 %v1239_v5  ;;  %v9345_v34 = vmov 0 }
  0x1a   : > { %181 = vst.msk [vmem:[#allocation2 + $0x24] sm:$0xf] %vm170_vm2, %v6610_v4  ;;  %182 = vst.msk [vmem:[#allocation2 + $0x28] sm:$0xf] %vm170_vm2, %v6610_v4  ;;  %vm749_vm5 = vsmask.f32 7440  ;;  %s6764_s7 = scalar_lea.vmem %s9329_s0, %s5957_s4  ;;  %6178 = vmatprep.subr.bf16.mxu1 %v6756_v8  ;;  %6212 = vmatprep.subr.bf16.mxu0 %v6759_v9 }
  0x1b   : > { %184 = vst.msk [vmem:[#allocation2 + $0x30] sm:$0xf] %vm170_vm2, %v6610_v4  ;;  %185 = vst.msk [vmem:[#allocation2 + $0x34] sm:$0xf] %vm170_vm2, %v6610_v4  ;;  %vm258_vm6 = vsmask.f32 256 }
  0x1c   : > { %186 = vst.msk [vmem:[#allocation2 + $0x38] sm:$0x1] %vm173_vm3, %v6610_v4  ;;  %189 = vst.msk [vmem:[#allocation2 + $0x44] sm:$0x1] %vm173_vm3, %v6610_v4  ;;  %vm259_vm7 = vsmask.f32 4368 }
  0x1d   : > { %187 = vst.msk [vmem:[#allocation2 + $0x3c] sm:$0xf] %vm170_vm2, %v6610_v4  ;;  %188 = vst.msk [vmem:[#allocation2 + $0x40] sm:$0xf] %vm170_vm2, %v6610_v4  ;;  %v226_v10 = vld [vmem:[%s6764_s7] sm:$0xf] }
  0x1e   : > { %190 = vst.msk [vmem:[#allocation2 + $0x48] sm:$0xf] %vm170_vm2, %v6610_v4  ;;  %191 = vst.msk [vmem:[#allocation2 + $0x4c] sm:$0xf] %vm170_vm2, %v6610_v4  ;;  %v227_v11 = vld [vmem:[%s6764_s7 + $0x4] sm:$0xf] }
  0x1f   : > { %192 = vst.msk [vmem:[#allocation2 + $0x50] sm:$0x1] %vm173_vm3, %v6610_v4  ;;  %195 = vst.msk [vmem:[#allocation2 + $0x5c] sm:$0x1] %vm173_vm3, %v6610_v4  ;;  %vm583_vm8 = vsmask.f32 7938 }
  0x20   : > { %193 = vst.msk [vmem:[#allocation2 + $0x54] sm:$0xf] %vm170_vm2, %v6610_v4  ;;  %194 = vst.msk [vmem:[#allocation2 + $0x58] sm:$0xf] %vm170_vm2, %v6610_v4  ;;  %v262_v12 = vshrl.u32 %v226_v10, 16  ;;  %v265_v13 = vshll.u32 %v226_v10, 16 }
  0x21   : > { %196 = vst.msk [vmem:[#allocation2 + $0x60] sm:$0xf] %vm170_vm2, %v6610_v4  ;;  %197 = vst.msk [vmem:[#allocation2 + $0x64] sm:$0xf] %vm170_vm2, %v6610_v4  ;;  %v270_v14 = vshrl.u32 %v227_v11, 16  ;;  %v273_v15 = vshll.u32 %v227_v11, 16 }
  0x22   : > { %198 = vst.msk [vmem:[#allocation2 + $0x68] sm:$0x1] %vm173_vm3, %v6610_v4  ;;  %201 = vst.msk [vmem:[#allocation2 + $0x74] sm:$0x1] %vm173_vm3, %v6610_v4  ;;  %v699_v16 = vld [vmem:[#allocation2] sm:$0xf] }
  0x23   : > { %199 = vst.msk [vmem:[#allocation2 + $0x6c] sm:$0xf] %vm170_vm2, %v6610_v4  ;;  %200 = vst.msk [vmem:[#allocation2 + $0x70] sm:$0xf] %vm170_vm2, %v6610_v4  ;;  %v700_v17 = vld [vmem:[#allocation2 + $0x4] sm:$0xf] }
  0x24   : > { %202 = vst.msk [vmem:[#allocation2 + $0x78] sm:$0xf] %vm170_vm2, %v6610_v4  ;;  %203 = vst.msk [vmem:[#allocation2 + $0x7c] sm:$0xf] %vm170_vm2, %v6610_v4  ;;  %v6770_v18 = vld [vmem:[#allocation2 + $0x8] sm:$0x1] }
  0x25   : > { %204 = vst.msk [vmem:[#allocation2 + $0x80] sm:$0x1] %vm173_vm3, %v6610_v4  ;;  %207 = vst.msk [vmem:[#allocation2 + $0x8c] sm:$0x1] %vm173_vm3, %v6610_v4  ;;  %v752_v19 = vshrl.u32 %v699_v16, 16  ;;  %v755_v20 = vshll.u32 %v699_v16, 16 }
  0x26   : > { %205 = vst.msk [vmem:[#allocation2 + $0x84] sm:$0xf] %vm170_vm2, %v6610_v4  ;;  %206 = vst.msk [vmem:[#allocation2 + $0x88] sm:$0xf] %vm170_vm2, %v6610_v4  ;;  %v761_v21 = vshll.u32 %v700_v17, 16  ;;  %v765_v22 = vshrl.u32 %v700_v17, 16 }
  0x27   : > { %208 = vst.msk [vmem:[#allocation2 + $0x90] sm:$0xf] %vm170_vm2, %v6610_v4  ;;  %209 = vst.msk [vmem:[#allocation2 + $0x94] sm:$0xf] %vm170_vm2, %v6610_v4  ;;  %v240_v23 = vld [vmem:[%s6764_s7 + $0x38] sm:$0xf] }
  0x28   : > { %210 = vst.msk [vmem:[#allocation2 + $0x98] sm:$0x1] %vm173_vm3, %v6610_v4  ;;  %213 = vst.msk [vmem:[#allocation2 + $0xa4] sm:$0x1] %vm173_vm3, %v6610_v4  ;;  %v771_v24 = vshll.u32 %v6770_v18, 16  ;;  %v264_v27 = vrot.slane %v262_v12, 7 }
  0x29   : > { %211 = vst.msk [vmem:[#allocation2 + $0x9c] sm:$0xf] %vm170_vm2, %v6610_v4  ;;  %212 = vst.msk [vmem:[#allocation2 + $0xa0] sm:$0xf] %vm170_vm2, %v6610_v4  ;;  %v272_v28 = vrot.slane %v270_v14, 7  ;;  %v754_v30 = vrot.slane %v752_v19, 4 }
  0x2a   : > { %214 = vst.msk [vmem:[#allocation2 + $0xa8] sm:$0xf] %vm170_vm2, %v6610_v4  ;;  %215 = vst.msk [vmem:[#allocation2 + $0xac] sm:$0xf] %vm170_vm2, %v6610_v4  ;;  %v241_v29 = vld [vmem:[%s6764_s7 + $0x3c] sm:$0xf]  ;;  %v267_v37 = vor.u32 %v265_v13, %v264_v27 }
  0x2b   : > { %216 = vst.msk [vmem:[#allocation2 + $0xb0] sm:$0x1] %vm173_vm3, %v6610_v4  ;;  %219 = vst.msk [vmem:[#allocation2 + $0xbc] sm:$0x1] %vm173_vm3, %v6610_v4  ;;  %v757_v31 = vrot.slane %v755_v20, 5  ;;  %v763_v32 = vrot.slane %v761_v21, 5  ;;  %v275_v39 = vor.u32 %v273_v15, %v272_v28 }
  0x2c   : > { %217 = vst.msk [vmem:[#allocation2 + $0xb4] sm:$0xf] %vm170_vm2, %v6610_v4  ;;  %218 = vst.msk [vmem:[#allocation2 + $0xb8] sm:$0xf] %vm170_vm2, %v6610_v4  ;;  %v767_v33 = vrot.slane %v765_v22, 4  ;;  %v773_v36 = vrot.slane %v771_v24, 5 }
  0x2d   : > { %220 = vst.msk [vmem:[#allocation2 + $0xc0] sm:$0xf] %vm170_vm2, %v6610_v4  ;;  %221 = vst.msk [vmem:[#allocation2 + $0xc4] sm:$0xf] %vm170_vm2, %v6610_v4  ;;  %v585_v35 = vld [vmem:[#allocation2 + $0xc] sm:$0xf]  ;;  %v758_v42 = vor.u32 %v757_v31, %v754_v30 }
  0x2e   : > { %222 = vst.msk [vmem:[#allocation2 + $0xc8] sm:$0x1] %vm173_vm3, %v6610_v4  ;;  %225 = vst.msk [vmem:[#allocation2 + $0xd4] sm:$0x1] %vm173_vm3, %v6610_v4  ;;  %v268_v38 = vrot.slane %v264_v27, 4  ;;  %v9348_v40 = vmov 0  ;;  %v768_v43 = vor.u32 %v767_v33, %v763_v32 }
  0x2f   : > { %223 = vst.msk [vmem:[#allocation2 + $0xcc] sm:$0xf] %vm170_vm2, %v6610_v4  ;;  %224 = vst.msk [vmem:[#allocation2 + $0xd0] sm:$0xf] %vm170_vm2, %v6610_v4  ;;  %v591_v41 = vld [vmem:[#allocation2 + $0x14] sm:$0x1] }
  0x30   : > { %vm6777_vm10 = vmor %vm258_vm6, %vm259_vm7  ;;  %v277_v44 = vrot.slane %v272_v28, 4  ;;  %v381_v45 = vshrl.u32 %v240_v23, 16  ;;  %v242_v46 = vld [vmem:[%s6764_s7 + $0x40] sm:$0xf]  ;;  %v384_v50 = vshll.u32 %v240_v23, 16  ;;  %v389_v51 = vshrl.u32 %v241_v29, 16 }
  0x31   : > { %v9343_v26 = vsel %vm6777_vm10, 4294967295, %v9342_v26  ;;  %vm6784_vm11 = vmand %vm170_vm2, %vm583_vm8  ;;  %v276_v48 = vsel %vm6777_vm10, %v268_v38, %v275_v39  ;;  %v636_v52 = vld [vmem:[#allocation2 + $0x60] sm:$0xf]  ;;  %v759_v53 = vrot.slane %v758_v42, 4  ;;  %v769_v54 = vrot.slane %v768_v43, 4  ;;  %s161_s29 = sand.u32 1, %s6599_s13  }
  0x32   : > { %9344 = vst [vmem:[#allocation6_spill] sm:$0xff] %v9343_v26  ;;  %v9346_v34 = vsel %vm6784_vm11, 4294967295, %v9345_v34  ;;  %vm6790_vm12 = vmand %vm173_vm3, %vm258_vm6  ;;  %v586_v49 = vsel %vm6784_vm11, %v267_v37, %v585_v35  ;;  %v383_v56 = vrot.slane %v381_v45, 7  ;;  %v243_v57 = vld [vmem:[%s6764_s7 + $0x44] sm:$0xf]  ;;  %v391_v58 = vrot.slane %v389_v51, 7 }
  0x33   : > { %9347 = vst [vmem:[#allocation7_spill] sm:$0xff] %v9346_v34  ;;  %v9349_v40 = vsel %vm6790_vm12, 4294967295, %v9348_v40  ;;  %vm6797_vm13 = vmor %vm748_vm4, %vm749_vm5  ;;  %v592_v55 = vsel %vm6790_vm12, %v277_v44, %v591_v41  ;;  %v392_v59 = vshll.u32 %v241_v29, 16  ;;  %v398_v60 = vshrl.u32 %v242_v46, 16  ;;  %v228_v62 = vld [vmem:[%s6764_s7 + $0x8] sm:$0xf] }
  0x34   : > { %9350 = vst [vmem:[#allocation8_spill] sm:$0xff] %v9349_v40  ;;  %587 = vst [vmem:[#allocation2 + $0xc] sm:$0xf] %v586_v49  ;;  %v401_v61 = vshll.u32 %v242_v46, 16  ;;  %v764_v63 = vsel %vm6797_vm13, %v759_v53, %v763_v32  ;;  %v774_v0 = vsel %vm6797_vm13, %v769_v54, %v773_v36  ;;  %v386_v1 = vor.u32 %v384_v50, %v383_v56  ;;  %v640_v4 = vld [vmem:[#allocation2 + $0x68] sm:$0x1] }
  0x35   : > { %588 = vst.msk [vmem:[#allocation2 + $0x10] sm:$0xf] %vm170_vm2, %v276_v48  ;;  %593 = vst [vmem:[#allocation2 + $0x14] sm:$0x1] %v592_v55  ;;  %v387_v2 = vrot.slane %v383_v56, 4  ;;  %v5576_v5 = vcombine.low %v764_v63, %v774_v0  ;;  %v394_v6 = vor.u32 %v392_v59, %v391_v58  ;;  %v396_v7 = vrot.slane %v391_v58, 4 }
  0x36   : > { %v400_v10 = vrot.slane %v398_v60, 7  ;;  %v637_v11 = vsel %vm6784_vm11, %v386_v1, %v636_v52  ;;  %v406_v12 = vshrl.u32 %v243_v57, 16  ;;  %v643_v13 = vld [vmem:[#allocation2 + $0x6c] sm:$0xf]  ;;  %v279_v15 = vshrl.u32 %v228_v62, 16  ;;  %s5572_s5 = sshll.u32 %s161_s29, 7 }
  0x37   : > { %v6817_v14 = vld [vmem:[%s6764_s7 + $0xc] sm:$0xf]  ;;  %6146 = vmatprep.mubr.msk.bf16.mxu0 %vm1185_vm9, %v5576_v5  ;;  %v395_v16 = vsel %vm6777_vm10, %v387_v2, %v394_v6  ;;  %638 = vst [vmem:[#allocation2 + $0x60] sm:$0xf] %v637_v11  ;;  %v641_v17 = vsel %vm6790_vm12, %v396_v7, %v640_v4  ;;  %v409_v20 = vshll.u32 %v243_v57, 16  ;;  %v282_v24 = vshll.u32 %v228_v62, 16 }
  0x38   : > { %v403_v19 = vor.u32 %v401_v61, %v400_v10  ;;  %639 = vst.msk [vmem:[#allocation2 + $0x64] sm:$0xf] %vm170_vm2, %v395_v16  ;;  %642 = vst [vmem:[#allocation2 + $0x68] sm:$0x1] %v641_v17  ;;  %v404_v21 = vrot.slane %v400_v10, 4  ;;  %v408_v22 = vrot.slane %v406_v12, 7 }
  0x39   : > { %v6825_v23 = vrot.slane %v279_v15, 7  ;;  %v6828_v27 = vld [vmem:[%s6764_s7 + $0x10] sm:$0xf]  ;;  %v287_v31 = vshrl.u32 %v6817_v14, 16  ;;  %v290_v32 = vshll.u32 %v6817_v14, 16  ;;  %vm1742_vm14 = vcmask 1042432  }
  0x3a   : > { %v644_v30 = vsel %vm6784_vm11, %v403_v19, %v643_v13  ;;  %v411_v42 = vor.u32 %v409_v20, %v408_v22  ;;  %v647_v43 = vld [vmem:[#allocation2 + $0x74] sm:$0x1]  ;;  %v296_v44 = vshrl.u32 %v6828_v27, 16  ;;  %v594_v50 = vld [vmem:[#allocation2 + $0x18] sm:$0xf]  ;;  %v413_v53 = vrot.slane %v408_v22, 4 }
  0x3b   : > { %v6830_v28 = vld [vmem:[#allocation2 + $0xc] sm:$0xf]  ;;  %645 = vst [vmem:[#allocation2 + $0x6c] sm:$0xf] %v644_v30  ;;  %v284_v54 = vor.u32 %v282_v24, %v6825_v23  ;;  %v289_v59 = vrot.slane %v287_v31, 7  ;;  %v285_v13 = vrot.slane %v6825_v23, 4 }
  0x3c   : > { %v6832_v29 = vld [vmem:[#allocation2 + $0x10] sm:$0xf]  ;;  %v6838_v33 = vld [vmem:[#allocation2 + $0x14] sm:$0x1]  ;;  %v776_v35 = vshrl.u32 %v6830_v28, 16  ;;  %v779_v36 = vshll.u32 %v6830_v28, 16  ;;  %v412_v52 = vsel %vm6777_vm10, %v404_v21, %v411_v42  ;;  %v648_v0 = vsel %vm6790_vm12, %v413_v53, %v647_v43 }
  0x3d   : > { %v785_v37 = vshll.u32 %v6832_v29, 16  ;;  %v789_v38 = vshrl.u32 %v6832_v29, 16  ;;  %v795_v39 = vshll.u32 %v6838_v33, 16  ;;  %646 = vst.msk [vmem:[#allocation2 + $0x70] sm:$0xf] %vm170_vm2, %v412_v52  ;;  %v595_v1 = vsel %vm6784_vm11, %v284_v54, %v594_v50  ;;  %s9066_s6 = scalar_lea.vmem [#allocation3], %s5572_s5 }
  0x3e   : > { %v778_v45 = vrot.slane %v776_v35, 4  ;;  %v781_v46 = vrot.slane %v779_v36, 5  ;;  %v715_v58 = vld [vmem:[#allocation2 + $0x60] sm:$0xf]  ;;  %649 = vst [vmem:[#allocation2 + $0x74] sm:$0x1] %v648_v0  ;;  %v292_v31 = vor.u32 %v290_v32, %v289_v59 }
  0x3f   : > { %v787_v48 = vrot.slane %v785_v37, 5  ;;  %v791_v49 = vrot.slane %v789_v38, 4  ;;  %v797_v57 = vrot.slane %v795_v39, 5  ;;  %v716_v60 = vld [vmem:[#allocation2 + $0x64] sm:$0xf]  ;;  %v944_v62 = vshrl.u32 %v715_v58, 16 }
  0x40   : > { %v782_v55 = vor.u32 %v781_v46, %v778_v45  ;;  %v740_v61 = vld [vmem:[#allocation2 + $0x68] sm:$0x1]  ;;  %v947_v63 = vshll.u32 %v715_v58, 16  ;;  %v953_v5 = vshll.u32 %v716_v60, 16  ;;  %v957_v6 = vshrl.u32 %v716_v60, 16  ;;  %s5506_s8 = sshll.u32 %s9066_s6, 4  ;;  %s9281_s8 = int_to_ptr.vmem [resolvable:$true] %s5506_s8 }
  0x41   : > { %v792_v56 = vor.u32 %v791_v49, %v787_v48  ;;  %596 = vst [vmem:[#allocation2 + $0x18] sm:$0xf] %v595_v1  ;;  %v946_v7 = vrot.slane %v944_v62, 4  ;;  %v963_v11 = vshll.u32 %v740_v61, 16  ;;  %v294_v35 = vrot.slane %v289_v59, 4  ;;  %s6547_s17 = scalar_lea.vmem %s9281_s8, 2048 }
  0x42   : > { %v783_v2 = vrot.slane %v782_v55, 4  ;;  %v949_v10 = vrot.slane %v947_v63, 5  ;;  %v717_v12 = vld [vmem:[#allocation2 + $0x6c] sm:$0xf]  ;;  %v955_v16 = vrot.slane %v953_v5, 5  ;;  %v959_v17 = vrot.slane %v957_v6, 4  ;;  %p6548_p11 = scmp.ne.s32.totalorder %s9281_s8, %s6547_s17 }
  0x43   : > { %v793_v4 = vrot.slane %v792_v56, 4  ;;  %v965_v21 = vrot.slane %v963_v11, 5  ;;  %v968_v22 = vshrl.u32 %v717_v12, 16  ;;  %v971_v30 = vshll.u32 %v717_v12, 16  ;;  %v598_v36 = vld [vmem:[#allocation2 + $0x20] sm:$0x1] }
  0x44   : > { %v788_v14 = vsel %vm6797_vm13, %v783_v2, %v787_v48  ;;  %v950_v20 = vor.u32 %v949_v10, %v946_v7  ;;  %v960_v24 = vor.u32 %v959_v17, %v955_v16  ;;  %v718_v37 = vld [vmem:[#allocation2 + $0x70] sm:$0xf]  ;;  %v298_v39 = vrot.slane %v296_v44, 7  ;;  %v231_v53 = vld [vmem:[%s6764_s7 + $0x14] sm:$0xf]  ;;  %p6549_p12 = pnand %p6548_p11, %p6672_p5  ;;  %s6611_s19 = smov [#allocation3]  }
  0x45   : > { %v798_v15 = vsel %vm6797_vm13, %v793_v4, %v797_v57  ;;  %v970_v38 = vrot.slane %v968_v22, 4  ;;  %v299_v42 = vshll.u32 %v6828_v27, 16  ;;  %v973_v45 = vrot.slane %v971_v30, 5  ;;  %v741_v49 = vld [vmem:[#allocation2 + $0x74] sm:$0x1]  ;;  %s6551_s20 = sshll.u32 %s6611_s19, 4  ;;  %s6552_s20 = int_to_ptr.vmem [resolvable:$false] %s6551_s20 }
  0x46   : > { %v5577_v19 = vcombine.low %v788_v14, %v798_v15  ;;  %v951_v23 = vrot.slane %v950_v20, 4  ;;  %v961_v43 = vrot.slane %v960_v24, 4  ;;  %v977_v46 = vshll.u32 %v718_v37, 16  ;;  %v601_v57 = vld [vmem:[#allocation2 + $0x24] sm:$0xf]  ;;  %p6550_p13 = pneg %p6549_p12  ;;  %s6553_s24 = scalar_lea.vmem %s6552_s20, 4096 }
  0x47   : > { %v981_v48 = vshrl.u32 %v718_v37, 16  ;;  %v293_v50 = vsel %vm6777_vm10, %v285_v13, %v292_v31  ;;  %v599_v52 = vsel %vm6790_vm12, %v294_v35, %v598_v36  ;;  %v301_v27 = vor.u32 %v299_v42, %v298_v39  ;;  %v244_v62 = vld [vmem:[%s6764_s7 + $0x48] sm:$0xf]  ;;  %v245_v4 = vld [vmem:[%s6764_s7 + $0x4c] sm:$0xf]  ;;  %p6554_p0 = scmp.lt.s32.totalorder %s9281_s8, %s6552_s20  ;;  %p6555_p1 = scmp.lt.s32.totalorder %s6553_s24, %s6547_s17 }
  0x48   : > { %6147 = vmatmul.mubr.msk.bf16.vlgmr.msra.gmra.mxu0 %vm1185_vm9, %v5577_v19  ;;  %v956_v32 = vsel %vm6797_vm13, %v951_v23, %v955_v16  ;;  %v703_v44 = vld [vmem:[#allocation2 + $0x18] sm:$0xf]  ;;  %v966_v54 = vsel %vm6797_vm13, %v961_v43, %v965_v21  ;;  %v974_v55 = vor.u32 %v973_v45, %v970_v38  ;;  %597 = vst.msk [vmem:[#allocation2 + $0x1c] sm:$0xf] %vm170_vm2, %v293_v50  ;;  %600 = vst [vmem:[#allocation2 + $0x20] sm:$0x1] %v599_v52 }
  0x49   : > { %6213 = vmatpush3.bf16.msra.mxu0 %v6759_v9  ;;  %v979_v9 = vrot.slane %v977_v46, 5  ;;  %v983_v56 = vrot.slane %v981_v48, 4  ;;  %v5584_v58 = vcombine.low %v956_v32, %v966_v54  ;;  %v987_v59 = vshll.u32 %v741_v49, 16  ;;  %v605_v24 = vld [vmem:[#allocation2 + $0x2c] sm:$0x1]  ;;  %p6556_p2 = por %p6555_p1, %p6554_p0 }
  0x4a   : > { %v800_v60 = vshrl.u32 %v703_v44, 16  ;;  %v803_v61 = vshll.u32 %v703_v44, 16  ;;  %v975_v63 = vrot.slane %v974_v55, 4  ;;  %v302_v1 = vrot.slane %v298_v39, 4  ;;  %v246_v31 = vld [vmem:[%s6764_s7 + $0x50] sm:$0xf] }
  0x4b   : > { %v984_v0 = vor.u32 %v983_v56, %v979_v9  ;;  %v304_v2 = vshrl.u32 %v231_v53, 16  ;;  %6162 = vmatprep.mubr.msk.bf16.mxu1 %vm1185_vm9, %v5584_v58  ;;  %v989_v5 = vrot.slane %v987_v59, 5  ;;  %v307_v10 = vshll.u32 %v231_v53, 16  ;;  %v650_v48 = vld [vmem:[#allocation2 + $0x78] sm:$0xf]  ;;  %p6557_p3 = pnand %p6556_p2, %p6550_p13 }
  0x4c   : > { %v802_v6 = vrot.slane %v800_v60, 4  ;;  %v805_v7 = vrot.slane %v803_v61, 5  ;;  %v980_v11 = vsel %vm6797_vm13, %v975_v63, %v979_v9  ;;  %v602_v14 = vsel %vm6784_vm11, %v301_v27, %v601_v57  ;;  %v247_v44 = vld [vmem:[%s6764_s7 + $0x54] sm:$0xf]  ;;  %v654_v55 = vld [vmem:[#allocation2 + $0x80] sm:$0x1] }
  0x4d   : > { %v985_v12 = vrot.slane %v984_v0, 4  ;;  %v306_v13 = vrot.slane %v304_v2, 7  ;;  %603 = vst [vmem:[#allocation2 + $0x24] sm:$0xf] %v602_v14  ;;  %v415_v16 = vshrl.u32 %v244_v62, 16  ;;  %v418_v17 = vshll.u32 %v244_v62, 16 }
  0x4e   : > { %v806_v15 = vor.u32 %v805_v7, %v802_v6  ;;  %v423_v19 = vshrl.u32 %v245_v4, 16  ;;  %v426_v30 = vshll.u32 %v245_v4, 16  ;;  %v432_v9 = vshrl.u32 %v246_v31, 16  ;;  %v232_v0 = vld [vmem:[%s6764_s7 + $0x18] sm:$0xf] }
  0x4f   : > { %v990_v20 = vsel %vm6797_vm13, %v985_v12, %v989_v5  ;;  %v309_v21 = vor.u32 %v307_v10, %v306_v13  ;;  %v311_v22 = vrot.slane %v306_v13, 4  ;;  %v6884_v36 = vld [vmem:[#allocation2 + $0x1c] sm:$0xf]  ;;  %v6886_v23 = vld [vmem:[#allocation2 + $0x20] sm:$0x1]  ;;  %v417_v38 = vrot.slane %v415_v16, 7 }
  0x50   : > { %v5585_v35 = vcombine.low %v980_v11, %v990_v20  ;;  %v807_v37 = vrot.slane %v806_v15, 4  ;;  %v809_v42 = vshll.u32 %v6884_v36, 16  ;;  %v813_v43 = vshrl.u32 %v6884_v36, 16  ;;  %v657_v6 = vld [vmem:[#allocation2 + $0x84] sm:$0xf] }
  0x51   : > { %v819_v45 = vshll.u32 %v6886_v23, 16  ;;  %v310_v46 = vsel %vm6777_vm10, %v302_v1, %v309_v21  ;;  %v606_v32 = vsel %vm6790_vm12, %v311_v22, %v605_v24  ;;  %v420_v49 = vor.u32 %v418_v17, %v417_v38  ;;  %v661_v16 = vld [vmem:[#allocation2 + $0x8c] sm:$0x1]  ;;  %v233_v24 = vld [vmem:[%s6764_s7 + $0x1c] sm:$0xf] }
  0x52   : > { %6163 = vmatmul.mubr.msk.bf16.vlgmr.msra.gmra.mxu1 %vm1185_vm9, %v5585_v35  ;;  %604 = vst.msk [vmem:[#allocation2 + $0x28] sm:$0xf] %vm170_vm2, %v310_v46  ;;  %v421_v50 = vrot.slane %v417_v38, 4  ;;  %v425_v52 = vrot.slane %v423_v19, 7  ;;  %v811_v53 = vrot.slane %v809_v42, 5  ;;  %v815_v27 = vrot.slane %v813_v43, 4 }
  0x53   : > { %6179 = vmatpush3.bf16.msra.mxu1 %v6756_v8  ;;  %v821_v54 = vrot.slane %v819_v45, 5  ;;  %607 = vst [vmem:[#allocation2 + $0x2c] sm:$0x1] %v606_v32  ;;  %v651_v58 = vsel %vm6784_vm11, %v420_v49, %v650_v48  ;;  %v435_v59 = vshll.u32 %v246_v31, 16  ;;  %v434_v8 = vrot.slane %v432_v9, 7 }
  0x54   : > { %v428_v56 = vor.u32 %v426_v30, %v425_v52  ;;  %v430_v57 = vrot.slane %v425_v52, 4  ;;  %v812_v60 = vsel %vm6797_vm13, %v807_v37, %v811_v53  ;;  %v816_v61 = vor.u32 %v815_v27, %v811_v53  ;;  %v705_v62 = vld [vmem:[#allocation2 + $0x24] sm:$0xf]  ;;  %652 = vst [vmem:[#allocation2 + $0x78] sm:$0xf] %v651_v58 }
  0x55   : > { %v440_v63 = vshrl.u32 %v247_v44, 16  ;;  %v824_v1 = vshrl.u32 %v705_v62, 16  ;;  %v827_v2 = vshll.u32 %v705_v62, 16  ;;  %v437_v10 = vor.u32 %v435_v59, %v434_v8  ;;  %v608_v9 = vld [vmem:[#allocation2 + $0x30] sm:$0xf] }
  0x56   : > { %v429_v4 = vsel %vm6777_vm10, %v421_v50, %v428_v56  ;;  %v655_v5 = vsel %vm6790_vm12, %v430_v57, %v654_v55  ;;  %v817_v7 = vrot.slane %v816_v61, 4  ;;  %v438_v11 = vrot.slane %v434_v8, 4 }
  0x57   : > { %653 = vst.msk [vmem:[#allocation2 + $0x7c] sm:$0xf] %vm170_vm2, %v429_v4  ;;  %656 = vst [vmem:[#allocation2 + $0x80] sm:$0x1] %v655_v5  ;;  %v442_v12 = vrot.slane %v440_v63, 7  ;;  %v826_v13 = vrot.slane %v824_v1, 4  ;;  %v658_v22 = vsel %vm6784_vm11, %v437_v10, %v657_v6 }
  0x58   : > { %v829_v14 = vrot.slane %v827_v2, 5  ;;  %v443_v15 = vshll.u32 %v247_v44, 16  ;;  %v313_v17 = vshrl.u32 %v232_v0, 16  ;;  %v822_v19 = vsel %vm6797_vm13, %v817_v7, %v821_v54  ;;  %659 = vst [vmem:[#allocation2 + $0x84] sm:$0xf] %v658_v22 }
  0x59   : > { %v6913_v20 = vld [vmem:[#allocation2 + $0x28] sm:$0xf]  ;;  %v447_v21 = vrot.slane %v442_v12, 4  ;;  %v316_v30 = vshll.u32 %v232_v0, 16  ;;  %v5578_v31 = vcombine.low %v812_v60, %v822_v19  ;;  %v321_v44 = vshrl.u32 %v233_v24, 16 }
  0x5a   : > { %v6918_v35 = vld [vmem:[#allocation2 + $0x2c] sm:$0x1]  ;;  %v830_v37 = vor.u32 %v829_v14, %v826_v13  ;;  %v833_v38 = vshll.u32 %v6913_v20, 16  ;;  %v837_v42 = vshrl.u32 %v6913_v20, 16  ;;  %v445_v45 = vor.u32 %v443_v15, %v442_v12 }
  0x5b   : > { %v843_v43 = vshll.u32 %v6918_v35, 16  ;;  %v662_v46 = vsel %vm6790_vm12, %v447_v21, %v661_v16  ;;  %v315_v48 = vrot.slane %v313_v17, 7  ;;  %6150 = vmatprep.mubr.msk.bf16.mxu0 %vm1185_vm9, %v5578_v31  ;;  %v719_v52 = vld [vmem:[#allocation2 + $0x78] sm:$0xf]  ;;  %v323_v4 = vrot.slane %v321_v44, 7 }
  0x5c   : > { %v831_v32 = vrot.slane %v830_v37, 4  ;;  %v835_v49 = vrot.slane %v833_v38, 5  ;;  %v839_v50 = vrot.slane %v837_v42, 4  ;;  %663 = vst [vmem:[#allocation2 + $0x8c] sm:$0x1] %v662_v46  ;;  %v992_v27 = vshrl.u32 %v719_v52, 16 }
  0x5d   : > { %v845_v53 = vrot.slane %v843_v43, 5  ;;  %v995_v54 = vshll.u32 %v719_v52, 16  ;;  %v446_v55 = vsel %vm6777_vm10, %v438_v11, %v445_v45  ;;  %v318_v60 = vor.u32 %v316_v30, %v315_v48  ;;  %v234_v17 = vld [vmem:[%s6764_s7 + $0x20] sm:$0xf]  ;;  %v612_v43 = vld [vmem:[#allocation2 + $0x38] sm:$0x1] }
  0x5e   : > { %v836_v56 = vsel %vm6797_vm13, %v831_v32, %v835_v49  ;;  %v840_v57 = vor.u32 %v839_v50, %v835_v49  ;;  %v6930_v58 = vld [vmem:[#allocation2 + $0x7c] sm:$0xf]  ;;  %v6932_v59 = vld [vmem:[#allocation2 + $0x80] sm:$0x1]  ;;  %660 = vst.msk [vmem:[#allocation2 + $0x88] sm:$0xf] %vm170_vm2, %v446_v55 }
  0x5f   : > { %v319_v61 = vrot.slane %v315_v48, 4  ;;  %v994_v62 = vrot.slane %v992_v27, 4  ;;  %v997_v8 = vrot.slane %v995_v54, 5  ;;  %v1001_v63 = vshll.u32 %v6930_v58, 16  ;;  %v721_v11 = vld [vmem:[#allocation2 + $0x84] sm:$0xf] }
  0x60   : > { %v1005_v0 = vshrl.u32 %v6930_v58, 16  ;;  %v841_v1 = vrot.slane %v840_v57, 4  ;;  %v1011_v2 = vshll.u32 %v6932_v59, 16  ;;  %v324_v5 = vshll.u32 %v233_v24, 16  ;;  %v235_v49 = vld [vmem:[%s6764_s7 + $0x24] sm:$0xf] }
  0x61   : > { %v998_v6 = vor.u32 %v997_v8, %v994_v62  ;;  %v1003_v7 = vrot.slane %v1001_v63, 5  ;;  %v609_v12 = vsel %vm6784_vm11, %v318_v60, %v608_v9  ;;  %v1016_v15 = vshrl.u32 %v721_v11, 16  ;;  %v615_v54 = vld [vmem:[#allocation2 + $0x3c] sm:$0xf]  ;;  %v248_v55 = vld [vmem:[%s6764_s7 + $0x58] sm:$0xf] }
  0x62   : > { %v1007_v10 = vrot.slane %v1005_v0, 4  ;;  %v846_v13 = vsel %vm6797_vm13, %v841_v1, %v845_v53  ;;  %v1013_v14 = vrot.slane %v1011_v2, 5  ;;  %v1019_v16 = vshll.u32 %v721_v11, 16  ;;  %610 = vst [vmem:[#allocation2 + $0x30] sm:$0xf] %v609_v12 }
  0x63   : > { %v5579_v19 = vcombine.low %v836_v56, %v846_v13  ;;  %v999_v21 = vrot.slane %v998_v6, 4  ;;  %v743_v24 = vld [vmem:[#allocation2 + $0x8c] sm:$0x1]  ;;  %v326_v30 = vor.u32 %v324_v5, %v323_v4  ;;  %v1018_v31 = vrot.slane %v1016_v15, 4  ;;  %v249_v0 = vld [vmem:[%s6764_s7 + $0x5c] sm:$0xf] }
  0x64   : > { %v1008_v22 = vor.u32 %v1007_v10, %v1003_v7  ;;  %v1021_v37 = vrot.slane %v1019_v16, 5  ;;  %v1035_v38 = vshll.u32 %v743_v24, 16  ;;  %v328_v42 = vrot.slane %v323_v4, 4 }
  0x65   : > { %6151 = vmatmul.mubr.msk.bf16.gmra.mxu0 %vm1185_vm9, %v5579_v19  ;;  %v1004_v45 = vsel %vm6797_vm13, %v999_v21, %v1003_v7  ;;  %v6946_v48 = vld [vmem:[#allocation2 + $0x88] sm:$0xf]  ;;  %v327_v32 = vsel %vm6777_vm10, %v319_v61, %v326_v30  ;;  %v330_v50 = vshrl.u32 %v234_v17, 16  ;;  %v333_v60 = vshll.u32 %v234_v17, 16 }
  0x66   : > { %v1009_v46 = vrot.slane %v1008_v22, 4  ;;  %v1022_v52 = vor.u32 %v1021_v37, %v1018_v31  ;;  %v1025_v44 = vshll.u32 %v6946_v48, 16  ;;  %v1029_v53 = vshrl.u32 %v6946_v48, 16  ;;  %611 = vst.msk [vmem:[#allocation2 + $0x34] sm:$0xf] %vm170_vm2, %v327_v32 }
  0x67   : > { %v1037_v27 = vrot.slane %v1035_v38, 5  ;;  %v613_v56 = vsel %vm6790_vm12, %v328_v42, %v612_v43  ;;  %v332_v57 = vrot.slane %v330_v50, 7  ;;  %v338_v5 = vshrl.u32 %v235_v49, 16  ;;  %v619_v22 = vld [vmem:[#allocation2 + $0x44] sm:$0x1] }
  0x68   : > { %v1014_v9 = vsel %vm6797_vm13, %v1009_v46, %v1013_v14  ;;  %v1023_v62 = vrot.slane %v1022_v52, 4  ;;  %v1027_v8 = vrot.slane %v1025_v44, 5  ;;  %v1031_v63 = vrot.slane %v1029_v53, 4  ;;  %614 = vst [vmem:[#allocation2 + $0x38] sm:$0x1] %v613_v56 }
  0x69   : > { %v5586_v61 = vcombine.low %v1004_v45, %v1014_v9  ;;  %v6960_v1 = vld [vmem:[#allocation2 + $0x30] sm:$0xf]  ;;  %v335_v2 = vor.u32 %v333_v60, %v332_v57  ;;  %v336_v4 = vrot.slane %v332_v57, 4  ;;  %v341_v6 = vshll.u32 %v235_v49, 16  ;;  %v250_v50 = vld [vmem:[%s6764_s7 + $0x60] sm:$0xf] }
  0x6a   : > { %v1028_v7 = vsel %vm6797_vm13, %v1023_v62, %v1027_v8  ;;  %v1032_v10 = vor.u32 %v1031_v63, %v1027_v8  ;;  %v848_v11 = vshrl.u32 %v6960_v1, 16  ;;  %v851_v12 = vshll.u32 %v6960_v1, 16  ;;  %v664_v49 = vld [vmem:[#allocation2 + $0x90] sm:$0xf]  ;;  %v251_v9 = vld [vmem:[%s6764_s7 + $0x64] sm:$0xf] }
  0x6b   : > { %6166 = vmatprep.mubr.msk.bf16.mxu1 %vm1185_vm9, %v5586_v61  ;;  %v340_v13 = vrot.slane %v338_v5, 7  ;;  %v616_v14 = vsel %vm6784_vm11, %v335_v2, %v615_v54  ;;  %v449_v15 = vshrl.u32 %v248_v55, 16  ;;  %v452_v16 = vshll.u32 %v248_v55, 16  ;;  %v668_v63 = vld [vmem:[#allocation2 + $0x98] sm:$0x1] }
  0x6c   : > { %v1033_v17 = vrot.slane %v1032_v10, 4  ;;  %v850_v19 = vrot.slane %v848_v11, 4  ;;  %v853_v21 = vrot.slane %v851_v12, 5  ;;  %617 = vst [vmem:[#allocation2 + $0x3c] sm:$0xf] %v616_v14  ;;  %v457_v24 = vshrl.u32 %v249_v0, 16 }
  0x6d   : > { %v6969_v30 = vld [vmem:[#allocation2 + $0x34] sm:$0xf]  ;;  %v343_v31 = vor.u32 %v341_v6, %v340_v13  ;;  %v345_v37 = vrot.slane %v340_v13, 4  ;;  %v451_v38 = vrot.slane %v449_v15, 7  ;;  %v460_v42 = vshll.u32 %v249_v0, 16 }
  0x6e   : > { %v1038_v43 = vsel %vm6797_vm13, %v1033_v17, %v1037_v27  ;;  %v854_v45 = vor.u32 %v853_v21, %v850_v19  ;;  %v857_v46 = vshll.u32 %v6969_v30, 16  ;;  %v861_v32 = vshrl.u32 %v6969_v30, 16  ;;  %v236_v21 = vld [vmem:[%s6764_s7 + $0x28] sm:$0xf] }
  0x6f   : > { %v5587_v52 = vcombine.low %v1028_v7, %v1038_v43  ;;  %v6976_v44 = vld [vmem:[#allocation2 + $0x38] sm:$0x1]  ;;  %v344_v53 = vsel %vm6777_vm10, %v336_v4, %v343_v31  ;;  %v620_v54 = vsel %vm6790_vm12, %v345_v37, %v619_v22  ;;  %v454_v55 = vor.u32 %v452_v16, %v451_v38  ;;  %v671_v7 = vld [vmem:[#allocation2 + $0x9c] sm:$0xf] }
  0x70   : > { %v855_v56 = vrot.slane %v854_v45, 4  ;;  %v859_v27 = vrot.slane %v857_v46, 5  ;;  %v863_v57 = vrot.slane %v861_v32, 4  ;;  %v867_v60 = vshll.u32 %v6976_v44, 16  ;;  %618 = vst.msk [vmem:[#allocation2 + $0x40] sm:$0xf] %vm170_vm2, %v344_v53 }
  0x71   : > { %621 = vst [vmem:[#allocation2 + $0x44] sm:$0x1] %v620_v54  ;;  %6167 = vmatmul.mubr.msk.bf16.gmra.mxu1 %vm1185_vm9, %v5587_v52  ;;  %v455_v61 = vrot.slane %v451_v38, 4  ;;  %v459_v62 = vrot.slane %v457_v24, 7  ;;  %v665_v8 = vsel %vm6784_vm11, %v454_v55, %v664_v49  ;;  %v466_v0 = vshrl.u32 %v250_v50, 16 }
  0x72   : > { %v860_v2 = vsel %vm6797_vm13, %v855_v56, %v859_v27  ;;  %v864_v4 = vor.u32 %v863_v57, %v859_v27  ;;  %v869_v5 = vrot.slane %v867_v60, 5  ;;  %666 = vst [vmem:[#allocation2 + $0x90] sm:$0xf] %v665_v8  ;;  %v469_v6 = vshll.u32 %v250_v50, 16  ;;  %v675_v46 = vld [vmem:[#allocation2 + $0xa4] sm:$0x1] }
  0x73   : > { %v6990_v10 = vld [vmem:[#allocation2 + $0x3c] sm:$0xf]  ;;  %v462_v11 = vor.u32 %v460_v42, %v459_v62  ;;  %v464_v12 = vrot.slane %v459_v62, 4  ;;  %v468_v13 = vrot.slane %v466_v0, 7  ;;  %v474_v14 = vshrl.u32 %v251_v9, 16 }
  0x74   : > { %v865_v15 = vrot.slane %v864_v4, 4  ;;  %v872_v16 = vshrl.u32 %v6990_v10, 16  ;;  %v875_v17 = vshll.u32 %v6990_v10, 16  ;;  %v477_v19 = vshll.u32 %v251_v9, 16  ;;  %v7003_v32 = vld [vmem:[%s6764_s7 + $0x2c] sm:$0xf] }
  0x75   : > { %v463_v22 = vsel %vm6777_vm10, %v455_v61, %v462_v11  ;;  %v669_v24 = vsel %vm6790_vm12, %v464_v12, %v668_v63  ;;  %v471_v31 = vor.u32 %v469_v6, %v468_v13  ;;  %v472_v37 = vrot.slane %v468_v13, 4  ;;  %v5689_v60 = vld [vmem:[%s9330_s1 + $0x6] sm:$0x3] }
  0x76   : > { %v870_v38 = vsel %vm6797_vm13, %v865_v15, %v869_v5  ;;  %v874_v42 = vrot.slane %v872_v16, 4  ;;  %v877_v43 = vrot.slane %v875_v17, 5  ;;  %667 = vst.msk [vmem:[#allocation2 + $0x94] sm:$0xf] %vm170_vm2, %v463_v22  ;;  %670 = vst [vmem:[#allocation2 + $0x98] sm:$0x1] %v669_v24 }
  0x77   : > { %v476_v45 = vrot.slane %v474_v14, 7  ;;  %v5580_v49 = vcombine.low %v860_v2, %v870_v38  ;;  %v7005_v50 = vld [vmem:[#allocation2 + $0x40] sm:$0xf]  ;;  %v672_v53 = vsel %vm6784_vm11, %v471_v31, %v671_v7  ;;  %v347_v54 = vshrl.u32 %v236_v21, 16  ;;  %v5722_v7 = vld [vmem:[%s9330_s1 + $0x8] sm:$0x3] }
  0x78   : > { %v7007_v52 = vld [vmem:[#allocation2 + $0x44] sm:$0x1]  ;;  %v350_v55 = vshll.u32 %v236_v21, 16  ;;  %v878_v9 = vor.u32 %v877_v43, %v874_v42  ;;  %v881_v56 = vshll.u32 %v7005_v50, 16  ;;  %v885_v27 = vshrl.u32 %v7005_v50, 16 }
  0x79   : > { %v891_v57 = vshll.u32 %v7007_v52, 16  ;;  %673 = vst [vmem:[#allocation2 + $0x9c] sm:$0xf] %v672_v53  ;;  %6154 = vmatprep.mubr.msk.bf16.mxu0 %vm1185_vm9, %v5580_v49  ;;  %v7018_v61 = vld [vmem:[#allocation2 + $0x90] sm:$0xf]  ;;  %v479_v62 = vor.u32 %v477_v19, %v476_v45  ;;  %v481_v8 = vrot.slane %v476_v45, 4  ;;  %v7042_v38 = vand.u32 %v5689_v60, %v6688_v3 }
  0x7a   : > { %v7020_v63 = vrot.slane %v347_v54, 7  ;;  %v355_v0 = vshrl.u32 %v7003_v32, 16  ;;  %v879_v2 = vrot.slane %v878_v9, 4  ;;  %v883_v4 = vrot.slane %v881_v56, 5  ;;  %v622_v15 = vld [vmem:[#allocation2 + $0x48] sm:$0xf] }
  0x7b   : > { %v887_v5 = vrot.slane %v885_v27, 4  ;;  %v893_v6 = vrot.slane %v891_v57, 5  ;;  %v1040_v11 = vshrl.u32 %v7018_v61, 16  ;;  %v1043_v12 = vshll.u32 %v7018_v61, 16  ;;  %v238_v27 = vld [vmem:[%s6764_s7 + $0x30] sm:$0xf]  ;;  %6246 = vmatprep.subr.bf16.mxu1 %v7042_v38 }
  0x7c   : > { %v480_v13 = vsel %vm6777_vm10, %v472_v37, %v479_v62  ;;  %v676_v14 = vsel %vm6790_vm12, %v481_v8, %v675_v46  ;;  %v884_v16 = vsel %vm6797_vm13, %v879_v2, %v883_v4  ;;  %v352_v19 = vor.u32 %v350_v55, %v7020_v63 }
  0x7d   : > { %v888_v17 = vor.u32 %v887_v5, %v883_v4  ;;  %674 = vst.msk [vmem:[#allocation2 + $0xa0] sm:$0xf] %vm170_vm2, %v480_v13  ;;  %677 = vst [vmem:[#allocation2 + $0xa4] sm:$0x1] %v676_v14  ;;  %v353_v21 = vrot.slane %v7020_v63, 4  ;;  %v1042_v31 = vrot.slane %v1040_v11, 4  ;;  %v7045_v42 = vand.u32 %v5722_v7, %v6688_v3 }
  0x7e   : > { %v7037_v22 = vld [vmem:[#allocation2 + $0x94] sm:$0xf]  ;;  %v7039_v24 = vld [vmem:[#allocation2 + $0x98] sm:$0x1]  ;;  %v1045_v37 = vrot.slane %v1043_v12, 5  ;;  %v357_v55 = vrot.slane %v355_v0, 7  ;;  %v623_v56 = vsel %vm6784_vm11, %v352_v19, %v622_v15 }
  0x7f   : > { %v889_v43 = vrot.slane %v888_v17, 4  ;;  %v1049_v45 = vshll.u32 %v7037_v22, 16  ;;  %v1053_v46 = vshrl.u32 %v7037_v22, 16  ;;  %v1059_v49 = vshll.u32 %v7039_v24, 16  ;;  %6280 = vmatprep.subr.bf16.mxu0 %v7045_v42  ;;  %624 = vst [vmem:[#allocation2 + $0x48] sm:$0xf] %v623_v56 }
  0x80   : > { %v1046_v53 = vor.u32 %v1045_v37, %v1042_v31  ;;  %v7050_v54 = vld [vmem:[#allocation2 + $0x9c] sm:$0xf]  ;;  %v358_v9 = vshll.u32 %v7003_v32, 16  ;;  %v626_v4 = vld [vmem:[#allocation2 + $0x50] sm:$0x1]  ;;  %v362_v11 = vrot.slane %v357_v55, 4 }
  0x81   : > { %v894_v57 = vsel %vm6797_vm13, %v889_v43, %v893_v6  ;;  %v1051_v60 = vrot.slane %v1049_v45, 5  ;;  %v1055_v62 = vrot.slane %v1053_v46, 4  ;;  %v1061_v8 = vrot.slane %v1059_v49, 5  ;;  %v239_v49 = vld [vmem:[%s6764_s7 + $0x34] sm:$0xf] }
  0x82   : > { %v5581_v63 = vcombine.low %v884_v16, %v894_v57  ;;  %v1047_v2 = vrot.slane %v1046_v53, 4  ;;  %v1064_v0 = vshrl.u32 %v7050_v54, 16  ;;  %v1067_v32 = vshll.u32 %v7050_v54, 16 }
  0x83   : > { %v1056_v5 = vor.u32 %v1055_v62, %v1051_v60  ;;  %v360_v7 = vor.u32 %v358_v9, %v357_v55  ;;  %v364_v12 = vshrl.u32 %v238_v27, 16  ;;  %v627_v46 = vsel %vm6790_vm12, %v362_v11, %v626_v4  ;;  %v252_v55 = vld [vmem:[%s6764_s7 + $0x68] sm:$0xf]  ;;  %v629_v62 = vld [vmem:[#allocation2 + $0x54] sm:$0xf] }
  0x84   : > { %6155 = vmatmul.mubr.msk.bf16.gmra.mxu0 %vm1185_vm9, %v5581_v63  ;;  %v1052_v6 = vsel %vm6797_vm13, %v1047_v2, %v1051_v60  ;;  %v7065_v13 = vld [vmem:[#allocation2 + $0xa0] sm:$0xf]  ;;  %v7067_v14 = vld [vmem:[#allocation2 + $0xa4] sm:$0x1]  ;;  %v1066_v15 = vrot.slane %v1064_v0, 4  ;;  %v1069_v16 = vrot.slane %v1067_v32, 5 }
  0x85   : > { %v1057_v17 = vrot.slane %v1056_v5, 4  ;;  %v1073_v19 = vshll.u32 %v7065_v13, 16  ;;  %v1077_v31 = vshrl.u32 %v7065_v13, 16  ;;  %v1083_v37 = vshll.u32 %v7067_v14, 16  ;;  %628 = vst [vmem:[#allocation2 + $0x50] sm:$0x1] %v627_v46 }
  0x86   : > { %v1070_v43 = vor.u32 %v1069_v16, %v1066_v15  ;;  %v361_v45 = vsel %vm6777_vm10, %v353_v21, %v360_v7  ;;  %v366_v53 = vrot.slane %v364_v12, 7  ;;  %v7081_v21 = vld [vmem:[#allocation2 + $0x48] sm:$0xf]  ;;  %v367_v0 = vshll.u32 %v238_v27, 16  ;;  %v253_v11 = vld [vmem:[%s6764_s7 + $0x6c] sm:$0xf] }
  0x87   : > { %v1062_v9 = vsel %vm6797_vm13, %v1057_v17, %v1061_v8  ;;  %v1075_v56 = vrot.slane %v1073_v19, 5  ;;  %v1079_v57 = vrot.slane %v1077_v31, 4  ;;  %v1085_v60 = vrot.slane %v1083_v37, 5  ;;  %625 = vst.msk [vmem:[#allocation2 + $0x4c] sm:$0xf] %vm170_vm2, %v361_v45 }
  0x88   : > { %v5588_v63 = vcombine.low %v1052_v6, %v1062_v9  ;;  %v1071_v2 = vrot.slane %v1070_v43, 4  ;;  %v370_v32 = vrot.slane %v366_v53, 4  ;;  %v896_v5 = vshrl.u32 %v7081_v21, 16  ;;  %v633_v43 = vld [vmem:[#allocation2 + $0x5c] sm:$0x1] }
  0x89   : > { %v1080_v4 = vor.u32 %v1079_v57, %v1075_v56  ;;  %v899_v7 = vshll.u32 %v7081_v21, 16  ;;  %v372_v8 = vshrl.u32 %v239_v49, 16  ;;  %v369_v15 = vor.u32 %v367_v0, %v366_v53 }
  0x8a   : > { %6170 = vmatprep.mubr.msk.bf16.mxu1 %vm1185_vm9, %v5588_v63  ;;  %v1076_v12 = vsel %vm6797_vm13, %v1071_v2, %v1075_v56  ;;  %v375_v16 = vshll.u32 %v239_v49, 16  ;;  %v483_v6 = vshrl.u32 %v252_v55, 16  ;;  %v898_v19 = vrot.slane %v896_v5, 4  ;;  %v678_v49 = vld [vmem:[#allocation2 + $0xa8] sm:$0xf] }
  0x8b   : > { %v1081_v17 = vrot.slane %v1080_v4, 4  ;;  %v901_v31 = vrot.slane %v899_v7, 5  ;;  %v374_v27 = vrot.slane %v372_v8, 7  ;;  %v630_v37 = vsel %vm6784_vm11, %v369_v15, %v629_v62  ;;  %v682_v2 = vld [vmem:[#allocation2 + $0xb0] sm:$0x1] }
  0x8c   : > { %v485_v45 = vrot.slane %v483_v6, 7  ;;  %v486_v46 = vshll.u32 %v252_v55, 16  ;;  %v491_v9 = vshrl.u32 %v253_v11, 16  ;;  %631 = vst [vmem:[#allocation2 + $0x54] sm:$0xf] %v630_v37  ;;  %vm1743_vm15 = vcmask 1046532  }
  0x8d   : > { %v1086_v57 = vsel %vm6797_vm13, %v1081_v17, %v1085_v60  ;;  %v902_v63 = vor.u32 %v901_v31, %v898_v19  ;;  %v377_v56 = vor.u32 %v375_v16, %v374_v27  ;;  %v379_v53 = vrot.slane %v374_v27, 4  ;;  %v7095_v5 = vld [vmem:[#allocation2 + $0x50] sm:$0x1]  ;;  %v255_v27 = vld [vmem:[%s6764_s7 + $0x74] sm:$0xf]  ;;  %vm7121_vm0 = vmor %vm1742_vm14, %vm1743_vm15 }
  0x8e   : > { %v5589_v0 = vcombine.low %v1076_v12, %v1086_v57  ;;  %v7093_v4 = vld [vmem:[#allocation2 + $0x4c] sm:$0xf]  ;;  %v488_v62 = vor.u32 %v486_v46, %v485_v45  ;;  %v489_v7 = vrot.slane %v485_v45, 4  ;;  %v493_v55 = vrot.slane %v491_v9, 7  ;;  %v254_v6 = vld [vmem:[%s6764_s7 + $0x70] sm:$0xf] }
  0x8f   : > { %v903_v8 = vrot.slane %v902_v63, 4  ;;  %v905_v15 = vshll.u32 %v7093_v4, 16  ;;  %v909_v60 = vshrl.u32 %v7093_v4, 16  ;;  %v915_v16 = vshll.u32 %v7095_v5, 16 }
  0x90   : > { %6171 = vmatmul.mubr.msk.bf16.gmra.mxu1 %vm1185_vm9, %v5589_v0  ;;  %v378_v12 = vsel %vm6777_vm10, %v370_v32, %v377_v56  ;;  %v634_v17 = vsel %vm6790_vm12, %v379_v53, %v633_v43  ;;  %v494_v19 = vshll.u32 %v253_v11, 16  ;;  %v498_v31 = vrot.slane %v493_v55, 4 }
  0x91   : > { %v907_v37 = vrot.slane %v905_v15, 5  ;;  %v911_v45 = vrot.slane %v909_v60, 4  ;;  %v917_v46 = vrot.slane %v915_v16, 5  ;;  %632 = vst.msk [vmem:[#allocation2 + $0x58] sm:$0xf] %vm170_vm2, %v378_v12  ;;  %v679_v9 = vsel %vm6784_vm11, %v488_v62, %v678_v49 }
  0x92   : > { %635 = vst [vmem:[#allocation2 + $0x5c] sm:$0x1] %v634_v17  ;;  %v496_v57 = vor.u32 %v494_v19, %v493_v55  ;;  %680 = vst [vmem:[#allocation2 + $0xa8] sm:$0xf] %v679_v9  ;;  %v683_v32 = vsel %vm6790_vm12, %v498_v31, %v682_v2  ;;  %v500_v63 = vshrl.u32 %v254_v6, 16  ;;  %v503_v56 = vshll.u32 %v254_v6, 16 }
  0x93   : > { %v908_v11 = vsel %vm6797_vm13, %v903_v8, %v907_v37  ;;  %v912_v43 = vor.u32 %v911_v45, %v907_v37  ;;  %684 = vst [vmem:[#allocation2 + $0xb0] sm:$0x1] %v683_v32  ;;  %v508_v53 = vshrl.u32 %v255_v27, 16  ;;  %v511_v0 = vshll.u32 %v255_v27, 16  ;;  %v1694_v15 = vld [vmem:[#allocation2] sm:$0xe] }
  0x94   : > { %v7114_v60 = vld [vmem:[#allocation2 + $0x54] sm:$0xf]  ;;  %v497_v49 = vsel %vm6777_vm10, %v489_v7, %v496_v57  ;;  %v502_v62 = vrot.slane %v500_v63, 7  ;;  %v5640_v31 = vrot.slane %v1694_v15, 9  ;;  %v7125_v7 = vld [vmem:[#allocation2 + $0x4] sm:$0xf] }
  0x95   : > { %v913_v55 = vrot.slane %v912_v43, 4  ;;  %v920_v2 = vshrl.u32 %v7114_v60, 16  ;;  %v923_v16 = vshll.u32 %v7114_v60, 16  ;;  %681 = vst.msk [vmem:[#allocation2 + $0xac] sm:$0xf] %vm170_vm2, %v497_v49  ;;  %v510_v8 = vrot.slane %v508_v53, 7 }
  0x96   : > { %v685_v6 = vld [vmem:[#allocation2 + $0xb4] sm:$0xf]  ;;  %v505_v17 = vor.u32 %v503_v56, %v502_v62  ;;  %v506_v19 = vrot.slane %v502_v62, 4  ;;  %v1747_v27 = vrot.slane %v7125_v7, 5  ;;  %v689_v32 = vld [vmem:[#allocation2 + $0xbc] sm:$0x1] }
  0x97   : > { %v918_v37 = vsel %vm6797_vm13, %v913_v55, %v917_v46  ;;  %v922_v45 = vrot.slane %v920_v2, 4  ;;  %v925_v9 = vrot.slane %v923_v16, 5  ;;  %v513_v57 = vor.u32 %v511_v0, %v510_v8 }
  0x98   : > { %v5582_v63 = vcombine.low %v908_v11, %v918_v37  ;;  %v7130_v43 = vld [vmem:[#allocation2 + $0x58] sm:$0xf]  ;;  %v515_v49 = vrot.slane %v510_v8, 4  ;;  %v686_v56 = vsel %vm6784_vm11, %v505_v17, %v685_v6  ;;  %v7138_v15 = vsel %vm7121_vm0, %v5640_v31, %v1747_v27 }
  0x99   : > { %v7132_v53 = vld [vmem:[#allocation2 + $0x5c] sm:$0x1]  ;;  %v926_v62 = vor.u32 %v925_v9, %v922_v45  ;;  %v929_v46 = vshll.u32 %v7130_v43, 16  ;;  %v933_v55 = vshrl.u32 %v7130_v43, 16  ;;  %v7143_v11 = vld [vmem:[#allocation2 + $0xa8] sm:$0xf]  ;;  %v514_v6 = vsel %vm6777_vm10, %v506_v19, %v513_v57 }
  0x9a   : > { %v939_v0 = vshll.u32 %v7132_v53, 16  ;;  %687 = vst [vmem:[#allocation2 + $0xb4] sm:$0xf] %v686_v56  ;;  %6158 = vmatprep.mubr.msk.bf16.mxu0 %vm1185_vm9, %v5582_v63  ;;  %v7146_v2 = vld [vmem:[#allocation2 + $0xb0] sm:$0x1]  ;;  %v1088_v16 = vshrl.u32 %v7143_v11, 16  ;;  %v690_v17 = vsel %vm6790_vm12, %v515_v49, %v689_v32 }
  0x9b   : > { %v1091_v8 = vshll.u32 %v7143_v11, 16  ;;  %v927_v31 = vrot.slane %v926_v62, 4  ;;  %v931_v37 = vrot.slane %v929_v46, 5  ;;  %v935_v45 = vrot.slane %v933_v55, 4  ;;  %688 = vst.msk [vmem:[#allocation2 + $0xb8] sm:$0xf] %vm170_vm2, %v514_v6 }
  0x9c   : > { %v941_v9 = vrot.slane %v939_v0, 5  ;;  %691 = vst [vmem:[#allocation2 + $0xbc] sm:$0x1] %v690_v17  ;;  %v1695_v63 = vld [vmem:[#allocation2 + $0xc] sm:$0xe]  ;;  %v1090_v39 = vrot.slane %v1088_v16, 4 }
  0x9d   : > { %v7155_v56 = vld [vmem:[#allocation2 + $0xac] sm:$0xf]  ;;  %v1093_v51 = vrot.slane %v1091_v8, 5  ;;  %v1107_v41 = vshll.u32 %v7146_v2, 16  ;;  %v1749_v25 = vrot.slane %v1747_v27, 4  ;;  %v932_v19 = vsel %vm6797_vm13, %v927_v31, %v931_v37 }
  0x9e   : > { %v936_v57 = vor.u32 %v935_v45, %v931_v37  ;;  %v1097_v32 = vshll.u32 %v7155_v56, 16  ;;  %v1101_v49 = vshrl.u32 %v7155_v56, 16  ;;  %v1696_v62 = vld [vmem:[#allocation2 + $0x18] sm:$0xe]  ;;  %v9355_v0 = vrot.slane %v6770_v18, 5 }
  0x9f   : > { %v1094_v46 = vor.u32 %v1093_v51, %v1090_v39  ;;  %v1109_v55 = vrot.slane %v1107_v41, 5  ;;  %v5641_v8 = vrot.slane %v1695_v63, 9  ;;  %v9356_v45 = vrot.slane %v6832_v29, 5 }
  0xa0   : > { %v1751_v16 = vsel %vm7121_vm0, %v1749_v25, %v9355_v0  ;;  %v937_v6 = vrot.slane %v936_v57, 4  ;;  %v1099_v17 = vrot.slane %v1097_v32, 5  ;;  %v1103_v27 = vrot.slane %v1101_v49, 4 }
  0xa1   : > { %v5657_v40 = vcombine.low %v7138_v15, %v1751_v16  ;;  %v1095_v31 = vrot.slane %v1094_v46, 4  ;;  %v7167_v37 = vld [vmem:[#allocation2 + $0xb4] sm:$0xf]  ;;  %v1755_v51 = vsel %vm7121_vm0, %v5641_v8, %v9356_v45  ;;  %v9357_v41 = vmov %v9356_v45 }
  0xa2   : > { %v1756_v18 = vrot.slane %v9357_v41, 4  ;;  %v5642_v39 = vrot.slane %v1696_v62, 9  ;;  %v942_v25 = vsel %vm6797_vm13, %v937_v6, %v941_v9  ;;  %v1104_v63 = vor.u32 %v1103_v27, %v1099_v17  ;;  %v7181_v46 = vld [vmem:[#allocation2 + $0xb8] sm:$0xf] }
  0xa3   : > { %v1112_v57 = vshrl.u32 %v7167_v37, 16  ;;  %v1115_v15 = vshll.u32 %v7167_v37, 16  ;;  %v5583_v32 = vcombine.low %v932_v19, %v942_v25  ;;  %v1100_v49 = vsel %vm6797_vm13, %v1095_v31, %v1099_v17  ;;  %v7183_v0 = vld [vmem:[#allocation2 + $0xbc] sm:$0x1]  ;;  %v1697_v19 = vld [vmem:[#allocation2 + $0x24] sm:$0xe] }
  0xa4   : > { %v9358_v16 = vrot.slane %v6838_v33, 5  ;;  %v1761_v9 = vrot.slane %v6884_v36, 5  ;;  %v1105_v8 = vrot.slane %v1104_v63, 4  ;;  %v1121_v45 = vshll.u32 %v7181_v46, 16 }
  0xa5   : > { %v1114_v6 = vrot.slane %v1112_v57, 4  ;;  %v1117_v27 = vrot.slane %v1115_v15, 5  ;;  %6159 = vmatmul.mubr.msk.bf16.gmra.mxu0 %vm1185_vm9, %v5583_v32  ;;  %v1125_v17 = vshrl.u32 %v7181_v46, 16  ;;  %v1131_v31 = vshll.u32 %v7183_v0, 16 }
  0xa6   : > { %v1758_v62 = vsel %vm7121_vm0, %v1756_v18, %v9358_v16  ;;  %v1110_v33 = vsel %vm6797_vm13, %v1105_v8, %v1109_v55  ;;  %v1123_v18 = vrot.slane %v1121_v45, 5  ;;  %6214 = vmatprep.mubr.msk.bf16.mxu0 %vm1185_vm9, %v5657_v40  ;;  %v1763_v36 = vrot.slane %v1761_v9, 4  ;;  %v1698_v16 = vld [vmem:[#allocation2 + $0x30] sm:$0xe] }
  0xa7   : > { %v5658_v41 = vcombine.low %v1755_v51, %v1758_v62  ;;  %v1118_v25 = vor.u32 %v1117_v27, %v1114_v6  ;;  %v5590_v63 = vcombine.low %v1100_v49, %v1110_v33  ;;  %v1127_v57 = vrot.slane %v1125_v17, 4  ;;  %v1699_v6 = vld [vmem:[#allocation2 + $0x3c] sm:$0xe] }
  0xa8   : > { %v1762_v15 = vsel %vm7121_vm0, %v5642_v39, %v1761_v9  ;;  %v1764_v32 = vrot.slane %v6886_v23, 5  ;;  %v5643_v34 = vrot.slane %v1697_v19, 9  ;;  %v1768_v51 = vrot.slane %v6913_v20, 5 }
  0xa9   : > { %v1119_v26 = vrot.slane %v1118_v25, 4  ;;  %6174 = vmatprep.mubr.msk.bf16.mxu1 %vm1185_vm9, %v5590_v63  ;;  %v1128_v55 = vor.u32 %v1127_v57, %v1123_v18  ;;  %v1133_v62 = vrot.slane %v1131_v31, 5  ;;  %v1771_v49 = vrot.slane %v6918_v35, 5  ;;  %v6529_v31 = vld [vmem:[#allocation2] sm:$0xf] }
  0xaa   : > { %v1765_v40 = vsel %vm7121_vm0, %v1763_v36, %v1764_v32  ;;  %v1770_v9 = vrot.slane %v1768_v51, 4  ;;  %v5644_v23 = vrot.slane %v1698_v16, 9  ;;  %v1775_v45 = vrot.slane %v6969_v30, 5  ;;  %v1700_v25 = vld [vmem:[#allocation2 + $0x48] sm:$0xe] }
  0xab   : > { %v1124_v8 = vsel %vm6797_vm13, %v1119_v26, %v1123_v18  ;;  %v5659_v39 = vcombine.low %v1762_v15, %v1765_v40  ;;  %v1129_v27 = vrot.slane %v1128_v55, 4  ;;  %v1778_v19 = vrot.slane %v6976_v44, 5  ;;  %v1701_v55 = vld [vmem:[#allocation2 + $0x54] sm:$0xe] }
  0xac   : > { %v5612_v17 = vcombine.low %v6960_v1, %v6969_v30  ;;  %v5608_v33 = vcombine.low %v6529_v31, %v7125_v7  ;;  %v1769_v35 = vsel %vm7121_vm0, %v5643_v34, %v1768_v51  ;;  %v1782_v26 = vrot.slane %v7005_v50, 5 }
  0xad   : > { %v1134_v18 = vsel %vm6797_vm13, %v1129_v27, %v1133_v62  ;;  %6215 = vmatmul.mubr.msk.bf16.vlgmr.msra.gmra.mxu0 %vm1185_vm9, %v5658_v41  ;;  %v1772_v44 = vsel %vm7121_vm0, %v1770_v9, %v1771_v49  ;;  %v1777_v36 = vrot.slane %v1775_v45, 4  ;;  %v5645_v63 = vrot.slane %v1699_v6, 9  ;;  %v1702_v49 = vld [vmem:[#allocation2 + $0x60] sm:$0xe]  ;;  %v7236_v6 = vld [vmem:[#allocation2 + $0x64] sm:$0xf] }
  0xae   : > { %v5591_v57 = vcombine.low %v1124_v8, %v1134_v18  ;;  %6281 = vmatpush3.bf16.msra.mxu0 %v7045_v42  ;;  %6218 = vmatprep.mubr.msk.bf16.mxu0 %vm1185_vm9, %v5659_v39  ;;  %v1776_v34 = vsel %vm7121_vm0, %v5644_v23, %v1775_v45  ;;  %v1785_v7 = vrot.slane %v7007_v52, 5  ;;  %v5613_v15 = vcombine.low %v6990_v10, %v7005_v50  ;;  %v6530_v8 = vld [vmem:[#allocation2 + $0x68] sm:$0x1]  ;;  %v2514_v50 = vld [vmem:[#allocation2 + $0x20] sm:$0x1] }
  0xaf   : > { %v1779_v41 = vsel %vm7121_vm0, %v1777_v36, %v1778_v19  ;;  %v1784_v32 = vrot.slane %v1782_v26, 4  ;;  %v5646_v16 = vrot.slane %v1700_v25, 9  ;;  %v1789_v51 = vrot.slane %v7093_v4, 5 }
  0xb0   : > { %6175 = vmatmul.mubr.msk.bf16.gmra.mxu1 %vm1185_vm9, %v5591_v57  ;;  %v1792_v42 = vrot.slane %v7095_v5, 5  ;;  %v5660_v62 = vcombine.low %v1769_v35, %v1772_v44  ;;  %v1796_v52 = vrot.slane %v7130_v43, 5  ;;  %v1806_v39 = vrot.slane %v6530_v8, 5  ;;  %v6533_v44 = vld [vmem:[#allocation2 + $0x1c] sm:$0xf] }
  0xb1   : > { %6180 = vmatprep.mubr.msk.bf16.mxu1 %vm1185_vm9, %v5608_v33  ;;  %v1791_v40 = vrot.slane %v1789_v51, 4  ;;  %v5661_v9 = vcombine.low %v1776_v34, %v1779_v41  ;;  %v1783_v23 = vsel %vm7121_vm0, %v5645_v63, %v1782_v26  ;;  %v1803_v27 = vrot.slane %v7236_v6, 5  ;;  %v6532_v26 = vld [vmem:[#allocation2 + $0x18] sm:$0xf]  ;;  %v1703_v63 = vld [vmem:[#allocation2 + $0x6c] sm:$0xe] }
  0xb2   : > { %v1786_v5 = vsel %vm7121_vm0, %v1784_v32, %v1785_v7  ;;  %v1790_v45 = vsel %vm7121_vm0, %v5646_v16, %v1789_v51  ;;  %v5647_v19 = vrot.slane %v1701_v55, 9  ;;  %v1799_v31 = vrot.slane %v7132_v53, 5  ;;  %v6534_v57 = vld [vmem:[#allocation2 + $0x24] sm:$0xf]  ;;  %v7251_v41 = vld [vmem:[#allocation2 + $0x70] sm:$0xf] }
  0xb3   : > { %v1793_v33 = vsel %vm7121_vm0, %v1791_v40, %v1792_v42  ;;  %v1798_v35 = vrot.slane %v1796_v52, 4  ;;  %v5648_v25 = vrot.slane %v1702_v49, 9  ;;  %v1805_v18 = vrot.slane %v1803_v27, 4  ;;  %v1704_v16 = vld [vmem:[#allocation2 + $0x78] sm:$0xe] }
  0xb4   : > { %v5610_v36 = vcombine.low %v6532_v26, %v6533_v44  ;;  %v5611_v34 = vcombine.low %v6534_v57, %v6913_v20  ;;  %v5662_v7 = vcombine.low %v1783_v23, %v1786_v5  ;;  %v1810_v32 = vrot.slane %v7251_v41, 5  ;;  %v7260_v20 = vld [vmem:[#allocation2 + $0x60] sm:$0xf]  ;;  %v1706_v40 = vld [vmem:[#allocation2 + $0x90] sm:$0xe] }
  0xb5   : > { %6219 = vmatmul.mubr.msk.bf16.gmra.mxu0 %vm1185_vm9, %v5660_v62  ;;  %v5663_v51 = vcombine.low %v1790_v45, %v1793_v33  ;;  %v7256_v42 = vsel %vm7121_vm0, %v5647_v19, %v1796_v52  ;;  %v9359_v49 = vcombine.low %v6830_v28, %v6832_v29  ;;  %v7270_v8 = vsel %vm7121_vm0, %v1798_v35, %v1799_v31  ;;  %v1707_v5 = vld [vmem:[#allocation2 + $0x9c] sm:$0xe]  ;;  %v6537_v28 = vld [vmem:[#allocation2 + $0x74] sm:$0x1]  ;;  %v7282_v45 = vld [vmem:[#allocation2 + $0x6c] sm:$0xf] }
  0xb6   : > { %6222 = vmatprep.mubr.msk.bf16.mxu0 %vm1185_vm9, %v5661_v9  ;;  %v7274_v52 = vsel %vm7121_vm0, %v5648_v25, %v1803_v27  ;;  %v7278_v9 = vsel %vm7121_vm0, %v1805_v18, %v1806_v39  ;;  %v5649_v23 = vrot.slane %v1703_v63, 9  ;;  %v1813_v29 = vrot.slane %v6537_v28, 5  ;;  %v7288_v35 = vld [vmem:[#allocation2 + $0x84] sm:$0xe]  ;;  %v2513_v63 = vld [vmem:[#allocation2 + $0x1c] sm:$0xf] }
  0xb7   : > { %v5650_v31 = vrot.slane %v1704_v16, 9  ;;  %v1817_v27 = vrot.slane %v6930_v58, 5  ;;  %v1812_v33 = vrot.slane %v1810_v32, 4  ;;  %v1820_v39 = vrot.slane %v6932_v59, 5  ;;  %v1708_v16 = vld [vmem:[#allocation2 + $0xa8] sm:$0xe] }
  0xb8   : > { %6181 = vmatmul.mubr.msk.bf16.vlgmr.msra.gmra.mxu1 %vm1185_vm9, %v9359_v49  ;;  %v5652_v25 = vrot.slane %v1706_v40, 9  ;;  %v5664_v18 = vcombine.low %v7256_v42, %v7270_v8  ;;  %v5665_v26 = vcombine.low %v7274_v52, %v7278_v9  ;;  %v1824_v44 = vrot.slane %v6946_v48, 5  ;;  %v2509_v8 = vld [vmem:[#allocation2 + $0xc] sm:$0xf]  ;;  %v5771_v19 = vld [vmem:[%s9330_s1 + $0xa] sm:$0x3] }
  0xb9   : > { %6247 = vmatpush3.bf16.msra.mxu1 %v7042_v38  ;;  %6184 = vmatprep.mubr.msk.bf16.mxu1 %vm1185_vm9, %v5610_v36  ;;  %v1831_v38 = vrot.slane %v7037_v22, 5  ;;  %v1834_v36 = vrot.slane %v7039_v24, 5  ;;  %v5653_v57 = vrot.slane %v1707_v5, 9  ;;  %v7306_v42 = vsel %vm7121_vm0, %v5649_v23, %v1810_v32 }
  0xba   : > { %v1838_v40 = vrot.slane %v7065_v13, 5  ;;  %v1841_v24 = vrot.slane %v7067_v14, 5  ;;  %v7315_v52 = vsel %vm7121_vm0, %v5650_v31, %v1817_v27  ;;  %v1819_v9 = vrot.slane %v1817_v27, 4  ;;  %v6539_v31 = vld [vmem:[#allocation2 + $0x8c] sm:$0x1] }
  0xbb   : > { %v7299_v58 = vsel %vm7121_vm0, %v5652_v25, %v1831_v38  ;;  %v1833_v59 = vrot.slane %v1831_v38, 4  ;;  %v1826_v28 = vrot.slane %v1824_v44, 4  ;;  %v1827_v27 = vrot.slane %v6539_v31, 5  ;;  %v7334_v38 = vld [vmem:[#allocation2 + $0x10] sm:$0xf] }
  0xbc   : > { %v7326_v23 = vsel %vm7121_vm0, %v5653_v57, %v1838_v40  ;;  %v1840_v5 = vrot.slane %v1838_v40, 4  ;;  %v1852_v57 = vrot.slane %v7181_v46, 5  ;;  %v2512_v40 = vld [vmem:[#allocation2 + $0x18] sm:$0xf]  ;;  %v7350_v25 = vld [vmem:[#allocation2 + $0x7c] sm:$0xf] }
  0xbd   : > { %6223 = vmatmul.mubr.msk.bf16.gmra.mxu0 %vm1185_vm9, %v5662_v7  ;;  %v5651_v7 = vrot.slane %v7288_v35, 9  ;;  %v7320_v32 = vsel %vm7121_vm0, %v1833_v59, %v1834_v36  ;;  %v5654_v35 = vrot.slane %v1708_v16, 9  ;;  %v1709_v59 = vld [vmem:[#allocation2 + $0xb4] sm:$0xe]  ;;  %v7348_v31 = vld [vmem:[#allocation2 + $0x78] sm:$0xf] }
  0xbe   : > { %6226 = vmatprep.mubr.msk.bf16.mxu0 %vm1185_vm9, %v5663_v51  ;;  %v1845_v51 = vrot.slane %v7155_v56, 5  ;;  %v7342_v36 = vsel %vm7121_vm0, %v1840_v5, %v1841_v24  ;;  %v2561_v24 = vshll.u32 %v2509_v8, 16  ;;  %v1821_v5 = vsel %vm7121_vm0, %v1819_v9, %v1820_v39 }
  0xbf   : > { %v2567_v49 = vshll.u32 %v7334_v38, 16  ;;  %v5655_v1 = vrot.slane %v1709_v59, 9  ;;  %v2571_v30 = vshrl.u32 %v7334_v38, 16  ;;  %v1855_v39 = vrot.slane %v7183_v0, 5 }
  0xc0   : > { %6185 = vmatmul.mubr.msk.bf16.gmra.mxu1 %vm1185_vm9, %v5611_v34  ;;  %v1848_v34 = vrot.slane %v7146_v2, 5  ;;  %v1814_v2 = vsel %vm7121_vm0, %v1812_v33, %v1813_v29  ;;  %v1847_v16 = vrot.slane %v1845_v51, 4  ;;  %v2563_v62 = vrot.slane %v2561_v24, 5  ;;  %v5804_v29 = vld [vmem:[%s9330_s1 + $0xc] sm:$0x3] }
  0xc1   : > { %6188 = vmatprep.mubr.msk.bf16.mxu1 %vm1185_vm9, %v5612_v17  ;;  %v2558_v17 = vshrl.u32 %v2509_v8, 16  ;;  %v1854_v33 = vrot.slane %v1852_v57, 4  ;;  %v2582_v8 = vshrl.u32 %v2512_v40, 16  ;;  %v2585_v9 = vshll.u32 %v2512_v40, 16 }
  0xc2   : > { %v5666_v55 = vcombine.low %v7306_v42, %v1814_v2  ;;  %v2573_v24 = vrot.slane %v2571_v30, 4  ;;  %v5667_v53 = vcombine.low %v7315_v52, %v1821_v5  ;;  %v7383_v0 = vsel %vm7121_vm0, %v1826_v28, %v1827_v27  ;;  %v2515_v52 = vld [vmem:[#allocation2 + $0x24] sm:$0xf]  ;;  %v2518_v27 = vld [vmem:[#allocation2 + $0x30] sm:$0xf] }
  0xc3   : > { %v2560_v14 = vrot.slane %v2558_v17, 4  ;;  %v7372_v17 = vrot.slane %v2567_v49, 5  ;;  %v7395_v48 = vsel %vm7121_vm0, %v1847_v16, %v1848_v34  ;;  %v2595_v42 = vshrl.u32 %v2513_v63, 16  ;;  %v7423_v34 = vld [vmem:[#allocation2 + $0x84] sm:$0xf] }
  0xc4   : > { %v7398_v49 = vand.u32 %v5771_v19, %v6688_v3  ;;  %v7406_v10 = vsel %vm7121_vm0, %v5655_v1, %v1852_v57  ;;  %v7415_v19 = vsel %vm7121_vm0, %v1854_v33, %v1855_v39  ;;  %v7425_v57 = vld [vmem:[#allocation2 + $0x88] sm:$0xf]  ;;  %v2606_v40 = vshrl.u32 %v2515_v52, 16  ;;  %v7430_v30 = vld [vmem:[#allocation2 + $0x34] sm:$0xf] }
  0xc5   : > { %6227 = vmatmul.mubr.msk.bf16.gmra.mxu0 %vm1185_vm9, %v5664_v18  ;;  %v2564_v59 = vor.u32 %v2563_v62, %v2560_v14  ;;  %v7379_v18 = vsel %vm7121_vm0, %v5651_v7, %v1824_v44  ;;  %v2511_v62 = vld [vmem:[#allocation2 + $0x14] sm:$0x1]  ;;  %v2591_v44 = vshll.u32 %v2513_v63, 16  ;;  %v9360_v7 = vcombine.low %v7081_v21, %v7093_v4  ;;  %v7411_v63 = vld [vmem:[#allocation2 + $0x28] sm:$0xf] }
  0xc6   : > { %6230 = vmatprep.mubr.msk.bf16.mxu0 %vm1185_vm9, %v5665_v26  ;;  %v7387_v26 = vsel %vm7121_vm0, %v5654_v35, %v1845_v51  ;;  %v2587_v14 = vrot.slane %v2585_v9, 5  ;;  %v7409_v51 = vand.u32 %v5804_v29, %v6688_v3  ;;  %v2574_v21 = vor.u32 %v2573_v24, %v7372_v17  ;;  %6314 = vmatprep.subr.bf16.mxu1 %v7398_v49 }
  0xc7   : > { %v7417_v28 = vrot.slane %v2564_v59, 4  ;;  %v2577_v4 = vshll.u32 %v2511_v62, 16  ;;  %v5668_v35 = vcombine.low %v7379_v18, %v7383_v0  ;;  %v2609_v1 = vshll.u32 %v2515_v52, 16  ;;  %v7446_v62 = vld [vmem:[#allocation2 + $0x2c] sm:$0x1] }
  0xc8   : > { %6189 = vmatmul.mubr.msk.bf16.gmra.mxu1 %vm1185_vm9, %v5613_v15  ;;  %v2584_v15 = vrot.slane %v2582_v8, 4  ;;  %6348 = vmatprep.subr.bf16.mxu0 %v7409_v51  ;;  %v7432_v2 = vrot.slane %v2591_v44, 5  ;;  %v2597_v5 = vrot.slane %v2595_v42, 4  ;;  %v2615_v29 = vshll.u32 %v7411_v63, 16  ;;  %v2521_v8 = vld [vmem:[#allocation2 + $0x3c] sm:$0xf] }
  0xc9   : > { %6192 = vmatprep.mubr.msk.bf16.mxu1 %vm1185_vm9, %v9360_v7  ;;  %v2619_v33 = vshrl.u32 %v7411_v63, 16  ;;  %v2601_v59 = vshll.u32 %v2514_v50, 16  ;;  %v2570_v24 = vsel %vm6797_vm13, %v7417_v28, %v7372_v17  ;;  %v2575_v18 = vrot.slane %v2574_v21, 4  ;;  %v7457_v28 = vld [vmem:[#allocation2 + $0x40] sm:$0xf] }
  0xca   : > { %v2588_v9 = vor.u32 %v2587_v14, %v2584_v15  ;;  %v2579_v0 = vrot.slane %v2577_v4, 5  ;;  %v2608_v44 = vrot.slane %v2606_v40, 4  ;;  %v2611_v42 = vrot.slane %v2609_v1, 5 }
  0xcb   : > { %v2633_v52 = vshll.u32 %v2518_v27, 16  ;;  %v2639_v7 = vshll.u32 %v7430_v30, 16  ;;  %v9361_v50 = vcombine.low %v7114_v60, %v7130_v43  ;;  %v7454_v15 = vrot.slane %v2615_v29, 5  ;;  %v7463_v43 = vld [vmem:[#allocation2 + $0x38] sm:$0x1] }
  0xcc   : > { %v2621_v17 = vrot.slane %v2619_v33, 4  ;;  %v2643_v14 = vshrl.u32 %v7430_v30, 16  ;;  %v9362_v21 = vcombine.low %v7260_v20, %v7236_v6  ;;  %v2589_v4 = vrot.slane %v2588_v9, 4  ;;  %v2524_v20 = vld [vmem:[#allocation2 + $0x48] sm:$0xf] }
  0xcd   : > { %6231 = vmatmul.mubr.msk.bf16.gmra.mxu0 %vm1185_vm9, %v5666_v55  ;;  %v2630_v55 = vshrl.u32 %v2518_v27, 16  ;;  %v2603_v27 = vrot.slane %v2601_v59, 5  ;;  %v2635_v60 = vrot.slane %v2633_v52, 5  ;;  %v7465_v1 = vrot.slane %v2639_v7, 5 }
  0xce   : > { %6234 = vmatprep.mubr.msk.bf16.mxu0 %vm1185_vm9, %v5667_v53  ;;  %v2598_v53 = vor.u32 %v2597_v5, %v7432_v2  ;;  %v2645_v5 = vrot.slane %v2643_v14, 4  ;;  %v2654_v29 = vshrl.u32 %v2521_v8, 16  ;;  %v2657_v33 = vshll.u32 %v2521_v8, 16  ;;  %v7474_v8 = vld [vmem:[#allocation2 + $0x44] sm:$0x1] }
  0xcf   : > { %v2632_v40 = vrot.slane %v2630_v55, 4  ;;  %v2612_v16 = vor.u32 %v2611_v42, %v2608_v44  ;;  %v2625_v39 = vshll.u32 %v7446_v62, 16  ;;  %v2663_v6 = vshll.u32 %v7457_v28, 16 }
  0xd0   : > { %6193 = vmatmul.mubr.msk.bf16.gmra.mxu1 %vm1185_vm9, %v9361_v50  ;;  %v2580_v50 = vsel %vm6797_vm13, %v2575_v18, %v2579_v0  ;;  %v2599_v9 = vrot.slane %v2598_v53, 4  ;;  %v2622_v59 = vor.u32 %v2621_v17, %v7454_v15  ;;  %v2656_v55 = vrot.slane %v2654_v29, 4  ;;  %v7489_v53 = vld [vmem:[#allocation2 + $0x4c] sm:$0xf] }
  0xd1   : > { %6196 = vmatprep.mubr.msk.bf16.mxu1 %vm1185_vm9, %v9362_v21  ;;  %v2659_v52 = vrot.slane %v2657_v33, 5  ;;  %v2636_v7 = vor.u32 %v2635_v60, %v2632_v40  ;;  %v2649_v14 = vshll.u32 %v7463_v43, 16  ;;  %v7476_v21 = vrot.slane %v2663_v6, 5 }
  0xd2   : > { %v2667_v18 = vshrl.u32 %v7457_v28, 16  ;;  %v9363_v0 = vcombine.low %v7299_v58, %v7320_v32  ;;  %v7483_v44 = vcombine.low %v2570_v24, %v2580_v50  ;;  %v2646_v42 = vor.u32 %v2645_v5, %v7465_v1 }
  0xd3   : > { %v2678_v17 = vshrl.u32 %v2524_v20, 16  ;;  %v2613_v40 = vrot.slane %v2612_v16, 4  ;;  %v2660_v60 = vor.u32 %v2659_v52, %v2656_v55  ;;  %v2681_v33 = vshll.u32 %v2524_v20, 16  ;;  %v7512_v52 = vld [vmem:[#allocation2 + $0x50] sm:$0x1] }
  0xd4   : > { %v2669_v29 = vrot.slane %v2667_v18, 4  ;;  %v9364_v58 = vcombine.low %v7282_v45, %v7251_v41  ;;  %v2604_v32 = vsel %vm6797_vm13, %v2599_v9, %v2603_v27  ;;  %v2623_v24 = vrot.slane %v2622_v59, 4  ;;  %v7504_v45 = vld [vmem:[#allocation2 + $0x58] sm:$0xf] }
  0xd5   : > { %6235 = vmatmul.mubr.msk.bf16.gmra.mxu0 %vm1185_vm9, %v5668_v35  ;;  %v2594_v35 = vsel %vm6797_vm13, %v2589_v4, %v7432_v2  ;;  %v2627_v50 = vrot.slane %v2625_v39, 5  ;;  %v2673_v2 = vshll.u32 %v7474_v8, 16  ;;  %v2527_v4 = vld [vmem:[#allocation2 + $0x54] sm:$0xf]  ;;  %v9365_v5 = vcombine.low %v7348_v31, %v7350_v25 }
  0xd6   : > { %6238 = vmatprep.mubr.msk.bf16.mxu0 %vm1185_vm9, %v9363_v0  ;;  %v2637_v16 = vrot.slane %v2636_v7, 4  ;;  %v2651_v6 = vrot.slane %v2649_v14, 5  ;;  %v2670_v20 = vor.u32 %v2669_v29, %v7476_v21  ;;  %v2687_v41 = vshll.u32 %v7489_v53, 16 }
  0xd7   : > { %v2647_v55 = vrot.slane %v2646_v42, 4  ;;  %v2680_v27 = vrot.slane %v2678_v17, 4  ;;  %v2683_v9 = vrot.slane %v2681_v33, 5  ;;  %v2691_v39 = vshrl.u32 %v7489_v53, 16  ;;  %v2530_v42 = vld [vmem:[#allocation2 + $0x60] sm:$0xf] }
  0xd8   : > { %6197 = vmatmul.mubr.msk.bf16.gmra.mxu1 %vm1185_vm9, %v9364_v58  ;;  %v7507_v59 = vcombine.low %v2594_v35, %v2604_v32  ;;  %v2618_v25 = vsel %vm6797_vm13, %v2613_v40, %v7454_v15  ;;  %v2661_v31 = vrot.slane %v2660_v60, 4  ;;  %v2702_v7 = vshrl.u32 %v2527_v4, 16  ;;  %v7524_v60 = vld [vmem:[#allocation2 + $0x64] sm:$0xf] }
  0xd9   : > { %6200 = vmatprep.mubr.msk.bf16.mxu1 %vm1185_vm9, %v9365_v5  ;;  %v2671_v14 = vrot.slane %v2670_v20, 4  ;;  %v2675_v18 = vrot.slane %v2673_v2, 5  ;;  %v2705_v0 = vshll.u32 %v2527_v4, 16  ;;  %v2711_v29 = vshll.u32 %v7504_v45, 16 }
  0xda   : > { %v9366_v17 = vcombine.low %v7326_v23, %v7342_v36  ;;  %v2628_v35 = vsel %vm6797_vm13, %v2623_v24, %v2627_v50  ;;  %v7521_v33 = vrot.slane %v2687_v41, 5  ;;  %v2693_v15 = vrot.slane %v2691_v39, 4  ;;  %v7536_v50 = vld [vmem:[#allocation2 + $0x5c] sm:$0x1] }
  0xdb   : > { %v2715_v40 = vshrl.u32 %v7504_v45, 16  ;;  %v9367_v58 = vcombine.low %v7387_v26, %v7395_v48  ;;  %v2642_v23 = vsel %vm6797_vm13, %v2637_v16, %v7465_v1  ;;  %v2652_v36 = vsel %vm6797_vm13, %v2647_v55, %v2651_v6 }
  0xdc   : > { %v2684_v32 = vor.u32 %v2683_v9, %v2680_v27  ;;  %v2697_v24 = vshll.u32 %v7512_v52, 16  ;;  %v2666_v2 = vsel %vm6797_vm13, %v2661_v31, %v7476_v21  ;;  %v2704_v4 = vrot.slane %v2702_v7, 4  ;;  %v2533_v27 = vld [vmem:[#allocation2 + $0x6c] sm:$0xf] }
  0xdd   : > { %6239 = vmatmul.mubr.msk.bf16.gmra.mxu0 %vm1185_vm9, %v9366_v17  ;;  %v2726_v26 = vshrl.u32 %v2530_v42, 16  ;;  %v2729_v48 = vshll.u32 %v2530_v42, 16  ;;  %v9368_v5 = vcombine.low %v7423_v34, %v7425_v57  ;;  %v2676_v1 = vsel %vm6797_vm13, %v2671_v14, %v2675_v18  ;;  %v7565_v14 = vld [vmem:[#allocation2 + $0x70] sm:$0xf] }
  0xde   : > { %6242 = vmatprep.mubr.msk.bf16.mxu0 %vm1185_vm9, %v9367_v58  ;;  %v2707_v16 = vrot.slane %v2705_v0, 5  ;;  %v7547_v6 = vrot.slane %v2711_v29, 5  ;;  %v2735_v20 = vshll.u32 %v7524_v60, 16  ;;  %v9369_v41 = vcombine.low %v7018_v61, %v7037_v22  ;;  %v7567_v61 = vld [vmem:[#allocation2 + $0x68] sm:$0x1] }
  0xdf   : > { %v2694_v21 = vor.u32 %v2693_v15, %v7521_v33  ;;  %v2717_v55 = vrot.slane %v2715_v40, 4  ;;  %v2721_v34 = vshll.u32 %v7536_v50, 16  ;;  %v2739_v57 = vshrl.u32 %v7524_v60, 16  ;;  %v2536_v15 = vld [vmem:[#allocation2 + $0x78] sm:$0xf] }
  0xe0   : > { %6201 = vmatmul.mubr.msk.bf16.gmra.mxu1 %vm1185_vm9, %v9368_v5  ;;  %v7557_v9 = vcombine.low %v2618_v25, %v2628_v35  ;;  %v7559_v39 = vcombine.low %v2642_v23, %v2652_v36  ;;  %v7561_v31 = vrot.slane %v2684_v32, 4  ;;  %v7563_v7 = vrot.slane %v2697_v24, 5  ;;  %v7582_v32 = vld [vmem:[#allocation2 + $0x74] sm:$0x1] }
  0xe1   : > { %6204 = vmatprep.mubr.msk.bf16.mxu1 %vm1185_vm9, %v9369_v41  ;;  %v2728_v22 = vrot.slane %v2726_v26, 4  ;;  %v2731_v18 = vrot.slane %v2729_v48, 5  ;;  %v7569_v0 = vrot.slane %v2735_v20, 5  ;;  %v2741_v29 = vrot.slane %v2739_v57, 4 }
  0xe2   : > { %v7571_v42 = vcombine.low %v2666_v2, %v2676_v1  ;;  %v2708_v17 = vor.u32 %v2707_v16, %v2704_v4  ;;  %v2750_v25 = vshrl.u32 %v2533_v27, 16  ;;  %v2753_v35 = vshll.u32 %v2533_v27, 16 }
  0xe3   : > { %v9370_v40 = vcombine.low %v7406_v10, %v7415_v19  ;;  %v7577_v58 = vrot.slane %v2694_v21, 4  ;;  %v2718_v23 = vor.u32 %v2717_v55, %v7547_v6  ;;  %v7580_v36 = vrot.slane %v2721_v34, 5  ;;  %v7589_v19 = vld [vmem:[#allocation2 + $0x7c] sm:$0xf]  ;;  %v2539_v34 = vld [vmem:[#allocation2 + $0x84] sm:$0xf] }
  0xe4   : > { %v2759_v24 = vshll.u32 %v7565_v14, 16  ;;  %v2745_v2 = vshll.u32 %v7567_v61, 16  ;;  %v2752_v4 = vrot.slane %v2750_v25, 4  ;;  %v2755_v26 = vrot.slane %v2753_v35, 5 }
  0xe5   : > { %6243 = vmatmul.mubr.msk.bf16.gmra.mxu0 %vm1185_vm9, %v9370_v40  ;;  %v2763_v10 = vshrl.u32 %v7565_v14, 16  ;;  %v2732_v48 = vor.u32 %v2731_v18, %v2728_v22  ;;  %v2742_v5 = vor.u32 %v2741_v29, %v7569_v0  ;;  %v2774_v16 = vshrl.u32 %v2536_v15, 16  ;;  %v7603_v22 = vld [vmem:[#allocation2 + $0x80] sm:$0x1] }
  0xe6   : > { %6282 = vmatprep.mubr.msk.bf16.mxu0 %vm1185_vm9, %v7483_v44  ;;  %v7592_v1 = vrot.slane %v2759_v24, 5  ;;  %v9371_v20 = vcombine.low %v7050_v54, %v7065_v13  ;;  %v2756_v44 = vor.u32 %v2755_v26, %v2752_v4  ;;  %v2769_v21 = vshll.u32 %v7582_v32, 16 }
  0xe7   : > { %v2765_v41 = vrot.slane %v2763_v10, 4  ;;  %v2777_v55 = vshll.u32 %v2536_v15, 16  ;;  %v9372_v57 = vcombine.low %v7143_v11, %v7155_v56  ;;  %v2709_v27 = vrot.slane %v2708_v17, 4  ;;  %v7608_v15 = vld [vmem:[#allocation2 + $0x88] sm:$0xf] }
  0xe8   : > { %6205 = vmatmul.mubr.msk.bf16.gmra.mxu1 %vm1185_vm9, %v9371_v20  ;;  %v2776_v18 = vrot.slane %v2774_v16, 4  ;;  %v2783_v29 = vshll.u32 %v7589_v19, 16  ;;  %v2787_v54 = vshrl.u32 %v7589_v19, 16  ;;  %v2719_v13 = vrot.slane %v2718_v23, 4  ;;  %v6496_v20 = vld [vmem:[#allocation2 + $0xc] sm:$0xff]  }
  0xe9   : > { %6208 = vmatprep.mubr.msk.bf16.mxu1 %vm1185_vm9, %v9372_v57  ;;  %v2747_v25 = vrot.slane %v2745_v2, 5  ;;  %v2766_v35 = vor.u32 %v2765_v41, %v7592_v1  ;;  %v2779_v40 = vrot.slane %v2777_v55, 5  ;;  %v2733_v24 = vrot.slane %v2732_v48, 4  ;;  %v2542_v57 = vld [vmem:[#allocation2 + $0x90] sm:$0xf] }
  0xea   : > { %v7610_v4 = vrot.slane %v2783_v29, 5  ;;  %v2789_v11 = vrot.slane %v2787_v54, 4  ;;  %v2798_v56 = vshrl.u32 %v2539_v34, 16  ;;  %v2743_v17 = vrot.slane %v2742_v5, 4 }
  0xeb   : > { %v2757_v26 = vrot.slane %v2756_v44, 4  ;;  %v2771_v10 = vrot.slane %v2769_v21, 5  ;;  %v2801_v16 = vshll.u32 %v2539_v34, 16  ;;  %v2767_v23 = vrot.slane %v2766_v35, 4 }
  0xec   : > { %v2780_v2 = vor.u32 %v2779_v40, %v2776_v18  ;;  %v2793_v41 = vshll.u32 %v7603_v22, 16  ;;  %v2807_v55 = vshll.u32 %v7608_v15, 16  ;;  %v2790_v48 = vor.u32 %v2789_v11, %v7610_v4  ;;  %v7635_v18 = vld [vmem:[#allocation2 + $0x8c] sm:$0x1]  ;;  %v2545_v40 = vld [vmem:[#allocation2 + $0x9c] sm:$0xf] }
  0xed   : > { %6283 = vmatmul.mubr.msk.bf16.vlgmr.msra.gmra.mxu0 %vm1185_vm9, %v7507_v59  ;;  %v2800_v5 = vrot.slane %v2798_v56, 4  ;;  %v2803_v44 = vrot.slane %v2801_v16, 5  ;;  %v2811_v21 = vshrl.u32 %v7608_v15, 16  ;;  %v2690_v59 = vsel %vm6797_vm13, %v7561_v31, %v7521_v33 }
  0xee   : > { %6349 = vmatpush3.bf16.msra.mxu0 %v7409_v51  ;;  %6286 = vmatprep.mubr.msk.bf16.mxu0 %vm1185_vm9, %v7557_v9  ;;  %v2700_v34 = vsel %vm6797_vm13, %v7577_v58, %v7563_v7  ;;  %v2714_v51 = vsel %vm6797_vm13, %v2709_v27, %v7547_v6  ;;  %v2724_v9 = vsel %vm6797_vm13, %v2719_v13, %v7580_v36  ;;  %v7644_v31 = vrot.slane %v2807_v55, 5  ;;  %v7646_v58 = vld [vmem:[#allocation2 + $0x94] sm:$0xf]  ;;  %v7668_v55 = vld [vmem:[#allocation2 + $0x98] sm:$0x1] }
  0xef   : > { %v9373_v29 = vcombine.low %v7167_v37, %v7181_v46  ;;  %v2738_v33 = vsel %vm6797_vm13, %v2733_v24, %v7569_v0  ;;  %v2813_v7 = vrot.slane %v2811_v21, 4  ;;  %v2822_v6 = vshrl.u32 %v2542_v57, 16 }
  0xf0   : > { %v2748_v36 = vsel %vm6797_vm13, %v2743_v17, %v2747_v25  ;;  %v2762_v37 = vsel %vm6797_vm13, %v2757_v26, %v7592_v1  ;;  %v2795_v46 = vrot.slane %v2793_v41, 5  ;;  %v2825_v27 = vshll.u32 %v2542_v57, 16  ;;  %v7658_v25 = vld [vmem:[#allocation2 + $0xa0] sm:$0xf]  ;;  %v6497_v17 = vld [vmem:[#allocation2 + $0x18] sm:$0xff]  }
  0xf1   : > { %6209 = vmatmul.mubr.msk.bf16.gmra.mxu1 %vm1185_vm9, %v9373_v29  ;;  %v2772_v0 = vsel %vm6797_vm13, %v2767_v23, %v2771_v10  ;;  %v2781_v54 = vrot.slane %v2780_v2, 4  ;;  %v2791_v13 = vrot.slane %v2790_v48, 4  ;;  %v2804_v35 = vor.u32 %v2803_v44, %v2800_v5  ;;  %v2548_v5 = vld [vmem:[#allocation2 + $0xa8] sm:$0xf] }
  0xf2   : > { %6248 = vmatprep.mubr.msk.bf16.mxu1 %vm1185_vm9, %v6496_v20  ;;  %v2817_v24 = vshll.u32 %v7635_v18, 16  ;;  %v2824_v11 = vrot.slane %v2822_v6, 4  ;;  %v2827_v56 = vrot.slane %v2825_v27, 5  ;;  %v2831_v16 = vshll.u32 %v7646_v58, 16  ;;  %v6498_v20 = vld [vmem:[#allocation2 + $0x24] sm:$0xff]  }
  0xf3   : > { %v5728_v1 = vcombine.low %v2690_v59, %v2700_v34  ;;  %v5729_v26 = vcombine.low %v2714_v51, %v2724_v9  ;;  %v2814_v41 = vor.u32 %v2813_v7, %v7644_v31  ;;  %v2835_v10 = vshrl.u32 %v7646_v58, 16  ;;  %v7677_v34 = vld [vmem:[#allocation2 + $0xac] sm:$0xf] }
  0xf4   : > { %v7664_v23 = vcombine.low %v2738_v33, %v2748_v36  ;;  %v7666_v2 = vcombine.low %v2762_v37, %v2772_v0  ;;  %v2846_v57 = vshrl.u32 %v2545_v40, 16  ;;  %v2849_v48 = vshll.u32 %v2545_v40, 16  ;;  %9374 = vst [vmem:[#allocation9_spill] sm:$0xff] %v7677_v34 }
  0xf5   : > { %6287 = vmatmul.mubr.msk.bf16.gmra.mxu0 %vm1185_vm9, %v7559_v39  ;;  %v2786_v44 = vsel %vm6797_vm13, %v2781_v54, %v7610_v4  ;;  %v2805_v21 = vrot.slane %v2804_v35, 4  ;;  %v2855_v59 = vshll.u32 %v7658_v25, 16  ;;  %v2859_v39 = vshrl.u32 %v7658_v25, 16 }
  0xf6   : > { %6290 = vmatprep.mubr.msk.bf16.mxu0 %vm1185_vm9, %v7571_v42  ;;  %v2796_v51 = vsel %vm6797_vm13, %v2791_v13, %v2795_v46  ;;  %v2819_v9 = vrot.slane %v2817_v24, 5  ;;  %v2828_v29 = vor.u32 %v2827_v56, %v2824_v11  ;;  %v7681_v33 = vrot.slane %v2831_v16, 5  ;;  %v7693_v13 = vld [vmem:[#allocation2 + $0xa4] sm:$0x1]  ;;  %v2551_v24 = vld [vmem:[#allocation2 + $0xb4] sm:$0xf] }
  0xf7   : > { %v2815_v42 = vrot.slane %v2814_v41, 4  ;;  %v2837_v7 = vrot.slane %v2835_v10, 4  ;;  %v2841_v4 = vshll.u32 %v7668_v55, 16  ;;  %v2870_v6 = vshrl.u32 %v2548_v5, 16  ;;  %9375 = vst [vmem:[#allocation10_spill] sm:$0xff] %v7693_v13 }
  0xf8   : > { %v2848_v36 = vrot.slane %v2846_v57, 4  ;;  %v2851_v37 = vrot.slane %v2849_v48, 5  ;;  %v2873_v27 = vshll.u32 %v2548_v5, 16  ;;  %v2879_v46 = vshll.u32 %v7677_v34, 16  ;;  %v6500_v48 = vld [vmem:[#allocation2 + $0x3c] sm:$0xff]  }
  0xf9   : > { %6249 = vmatmul.mubr.msk.bf16.vlgmr.msra.gmra.mxu1 %vm1185_vm9, %v6497_v17  ;;  %v7688_v0 = vcombine.low %v2786_v44, %v2796_v51  ;;  %v2810_v54 = vsel %vm6797_vm13, %v2805_v21, %v7644_v31  ;;  %v7695_v35 = vrot.slane %v2855_v59, 5  ;;  %v2861_v40 = vrot.slane %v2859_v39, 4  ;;  %v7700_v17 = vld [vmem:[#allocation2 + $0xb8] sm:$0xf]  ;;  %v7708_v44 = vld [vmem:[#allocation2 + $0xb0] sm:$0x1] }
  0xfa   : > { %6315 = vmatpush3.bf16.msra.mxu1 %v7398_v49  ;;  %6252 = vmatprep.mubr.msk.bf16.mxu1 %vm1185_vm9, %v6498_v20  ;;  %v7697_v49 = vrot.slane %v2828_v29, 4  ;;  %v2872_v11 = vrot.slane %v2870_v6, 4  ;;  %v2875_v56 = vrot.slane %v2873_v27, 5  ;;  %v2883_v16 = vshrl.u32 %v7677_v34, 16  ;;  %9376 = vst [vmem:[#allocation11_spill] sm:$0xff] %v7700_v17  ;;  %v6499_v20 = vld [vmem:[#allocation2 + $0x30] sm:$0xff]  }
  0xfb   : > { %v2820_v41 = vsel %vm6797_vm13, %v2815_v42, %v2819_v9  ;;  %v2838_v31 = vor.u32 %v2837_v7, %v7681_v33  ;;  %v2843_v10 = vrot.slane %v2841_v4, 5  ;;  %v7705_v57 = vrot.slane %v2879_v46, 5  ;;  %9377 = vst [vmem:[#allocation12_spill] sm:$0xff] %v7708_v44  ;;  %v256_v7 = vld [vmem:[%s6764_s7 + $0x78] sm:$0xf] }
  0xfc   : > { %v2852_v5 = vor.u32 %v2851_v37, %v2848_v36  ;;  %v2885_v21 = vrot.slane %v2883_v16, 4  ;;  %v2894_v59 = vshrl.u32 %v2551_v24, 16  ;;  %v2897_v39 = vshll.u32 %v2551_v24, 16  ;;  %v257_v37 = vld [vmem:[%s6764_s7 + $0x7c] sm:$0xf]  ;;  %s5990_s7 = sshll.u32 %s6655_s16, 11 }
  0xfd   : > { %6291 = vmatmul.mubr.msk.bf16.gmra.mxu0 %vm1185_vm9, %v5728_v1  ;;  %v2862_v51 = vor.u32 %v2861_v40, %v7695_v35  ;;  %v2865_v9 = vshll.u32 %v7693_v13, 16  ;;  %v2903_v29 = vshll.u32 %v7700_v17, 16  ;;  %v2907_v42 = vshrl.u32 %v7700_v17, 16  ;;  %v692_v13 = vld [vmem:[#allocation2 + $0xc0] sm:$0xf]  ;;  %s9279_s11 = scalar_lea.hbm %s9332_s3, %s5990_s7  ;;  %s9289_s16 = scalar_lea.sflag [#allocation4], %s161_s29 }
  0xfe   : > { %6294 = vmatprep.mubr.msk.bf16.mxu0 %vm1185_vm9, %v5729_v26  ;;  %v7716_v4 = vcombine.low %v2810_v54, %v2820_v41  ;;  %v2834_v1 = vsel %vm6797_vm13, %v7697_v49, %v7681_v33  ;;  %v2876_v6 = vor.u32 %v2875_v56, %v2872_v11  ;;  %v2896_v36 = vrot.slane %v2894_v59, 4  ;;  %v7729_v11 = vld [vmem:[#allocation2 + $0xbc] sm:$0x1] }
  0xff   : > { %v2839_v26 = vrot.slane %v2838_v31, 4  ;;  %v2886_v27 = vor.u32 %v2885_v21, %v7705_v57  ;;  %v2889_v46 = vshll.u32 %v7708_v44, 16  ;;  %v2899_v40 = vrot.slane %v2897_v39, 5  ;;  %v6502_v44 = vld [vmem:[#allocation2 + $0x54] sm:$0xff]  }
 0x100   : > { %v7727_v54 = vrot.slane %v2903_v29, 5  ;;  %v2909_v24 = vrot.slane %v2907_v42, 4  ;;  %v517_v16 = vshrl.u32 %v256_v7, 16  ;;  %v520_v41 = vshll.u32 %v256_v7, 16 }
 0x101   : > { %6253 = vmatmul.mubr.msk.bf16.gmra.mxu1 %vm1185_vm9, %v6499_v20  ;;  %v2853_v17 = vrot.slane %v2852_v5, 4  ;;  %v2863_v33 = vrot.slane %v2862_v51, 4  ;;  %v2867_v49 = vrot.slane %v2865_v9, 5  ;;  %v525_v56 = vshrl.u32 %v257_v37, 16  ;;  %v6501_v20 = vld [vmem:[#allocation2 + $0x48] sm:$0xff]  }
 0x102   : > { %6256 = vmatprep.mubr.msk.bf16.mxu1 %vm1185_vm9, %v6500_v48  ;;  %v2877_v31 = vrot.slane %v2876_v6, 4  ;;  %v2900_v59 = vor.u32 %v2899_v40, %v2896_v36  ;;  %v519_v21 = vrot.slane %v517_v16, 7  ;;  %v528_v34 = vshll.u32 %v257_v37, 16  ;;  %v696_v6 = vld [vmem:[#allocation2 + $0xc8] sm:$0x1] }
 0x103   : > { %v2844_v48 = vsel %vm6797_vm13, %v2839_v26, %v2843_v10  ;;  %v2887_v39 = vrot.slane %v2886_v27, 4  ;;  %v2891_v29 = vrot.slane %v2889_v46, 5  ;;  %v527_v42 = vrot.slane %v525_v56, 7  ;;  %v5837_v36 = vld [vmem:[%s9330_s1 + $0xe] sm:$0x3] }
 0x104   : > { %v2910_v5 = vor.u32 %v2909_v24, %v7727_v54  ;;  %v2913_v51 = vshll.u32 %v7729_v11, 16  ;;  %v522_v9 = vor.u32 %v520_v41, %v519_v21  ;;  %v523_v7 = vrot.slane %v519_v21, 4  ;;  %v5886_v27 = vld [vmem:[%s9330_s1 + $0x10] sm:$0x3]  ;;  %v3239_v21 = vld [vmem:[#allocation2 + $0x3c] sm:$0xe] }
 0x105   : > { %6295 = vmatmul.mubr.msk.bf16.gmra.mxu0 %vm1185_vm9, %v7664_v23  ;;  %v2858_v10 = vsel %vm6797_vm13, %v2853_v17, %v7695_v35  ;;  %v2868_v23 = vsel %vm6797_vm13, %v2863_v33, %v2867_v49  ;;  %v530_v37 = vor.u32 %v528_v34, %v527_v42  ;;  %v532_v26 = vrot.slane %v527_v42, 4  ;;  %v7757_v35 = vld [vmem:[#allocation2 + $0xc] sm:$0xe]  ;;  %v3237_v17 = vld [vmem:[#allocation2 + $0x24] sm:$0xe] }
 0x106   : > { %6298 = vmatprep.mubr.msk.bf16.mxu0 %vm1185_vm9, %v7666_v2  ;;  %v7750_v46 = vcombine.low %v2834_v1, %v2844_v48  ;;  %v2882_v40 = vsel %vm6797_vm13, %v2877_v31, %v7705_v57  ;;  %v2901_v2 = vrot.slane %v2900_v59, 4  ;;  %v693_v16 = vsel %vm6784_vm11, %v522_v9, %v692_v13  ;;  %v3238_v56 = vld [vmem:[#allocation2 + $0x30] sm:$0xe]  ;;  %v3240_v9 = vld [vmem:[#allocation2 + $0x48] sm:$0xe] }
 0x107   : > { %v2892_v34 = vsel %vm6797_vm13, %v2887_v39, %v2891_v29  ;;  %v531_v1 = vsel %vm6777_vm10, %v523_v7, %v530_v37  ;;  %694 = vst [vmem:[#allocation2 + $0xc0] sm:$0xf] %v693_v16  ;;  %v697_v49 = vsel %vm6790_vm12, %v532_v26, %v696_v6  ;;  %v7767_v57 = vand.u32 %v5837_v36, %v6688_v3  ;;  %v6503_v7 = vld [vmem:[#allocation2 + $0x60] sm:$0xff]   ;;  %v3241_v16 = vld [vmem:[#allocation2 + $0x54] sm:$0xe] }
 0x108   : > { %v7770_v13 = vcombine.low %v2858_v10, %v2868_v23  ;;  %v2911_v31 = vrot.slane %v2910_v5, 4  ;;  %695 = vst.msk [vmem:[#allocation2 + $0xc4] sm:$0xf] %vm170_vm2, %v531_v1  ;;  %698 = vst [vmem:[#allocation2 + $0xc8] sm:$0x1] %v697_v49  ;;  %v7774_v59 = vand.u32 %v5886_v27, %v6688_v3  ;;  %v5755_v48 = vrot.slane %v7757_v35, 9 }
 0x109   : > { %6257 = vmatmul.mubr.msk.bf16.gmra.mxu1 %vm1185_vm9, %v6501_v20  ;;  %v2915_v20 = vrot.slane %v2913_v51, 5  ;;  %6382 = vmatprep.subr.bf16.mxu1 %v7767_v57  ;;  %v5757_v39 = vrot.slane %v3237_v17, 9  ;;  %v3315_v29 = vrot.slane %v7411_v63, 5  ;;  %v7780_v42 = vcombine.low %v2882_v40, %v2892_v34  ;;  %v6504_v10 = vld [vmem:[#allocation2 + $0x6c] sm:$0xff]   ;;  %v3242_v49 = vld [vmem:[#allocation2 + $0x60] sm:$0xe] }
 0x10a   : > { %6260 = vmatprep.mubr.msk.bf16.mxu1 %vm1185_vm9, %v6502_v44  ;;  %v3318_v44 = vrot.slane %v7446_v62, 5  ;;  %v2906_v5 = vsel %vm6797_vm13, %v2901_v2, %v7727_v54  ;;  %6416 = vmatprep.subr.bf16.mxu0 %v7774_v59  ;;  %v5758_v3 = vrot.slane %v3238_v56, 9  ;;  %v3322_v51 = vrot.slane %v7430_v30, 5 }
 0x10b   : > { %v7789_v6 = vsel %vm7121_vm0, %v5757_v39, %v3315_v29  ;;  %v3317_v63 = vrot.slane %v3315_v29, 4  ;;  %v3325_v62 = vrot.slane %v7463_v43, 5  ;;  %v5759_v36 = vrot.slane %v3239_v21, 9 }
 0x10c   : > { %v2916_v54 = vsel %vm6797_vm13, %v2911_v31, %v2915_v20  ;;  %v7798_v30 = vsel %vm7121_vm0, %v5758_v3, %v3322_v51  ;;  %v3324_v23 = vrot.slane %v3322_v51, 4  ;;  %v3329_v37 = vrot.slane %v7457_v28, 5 }
 0x10d   : > { %6299 = vmatmul.mubr.msk.bf16.gmra.mxu0 %vm1185_vm9, %v7688_v0  ;;  %v3301_v43 = vrot.slane %v7334_v38, 5  ;;  %v7806_v26 = vsel %vm7121_vm0, %v3317_v63, %v3318_v44  ;;  %v3332_v0 = vrot.slane %v7474_v8, 5  ;;  %v5760_v27 = vrot.slane %v3240_v9, 9  ;;  %v6505_v63 = vld [vmem:[#allocation2 + $0x78] sm:$0xff]   ;;  %v6546_v38 = vld [vmem:[#allocation2 + $0x20] sm:$0x1] }
 0x10e   : > { %6302 = vmatprep.mubr.msk.bf16.mxu0 %vm1185_vm9, %v7716_v4  ;;  %v2554_v40 = vld [vmem:[#allocation2 + $0xc0] sm:$0xf]  ;;  %v5774_v2 = vcombine.low %v7789_v6, %v7806_v26  ;;  %v7813_v24 = vsel %vm7121_vm0, %v3324_v23, %v3325_v62  ;;  %v7817_v28 = vsel %vm7121_vm0, %v5759_v36, %v3329_v37  ;;  %v3331_v4 = vrot.slane %v3329_v37, 4  ;;  %v6506_v23 = vld [vmem:[#allocation2 + $0x84] sm:$0xff]   ;;  %v4070_v6 = vld [vmem:[#allocation2 + $0x30] sm:$0xf] }
 0x10f   : > { %v7820_v17 = vcombine.low %v2906_v5, %v2916_v54  ;;  %v7822_v8 = vld [vmem:[#allocation2 + $0xc4] sm:$0xf]  ;;  %v7824_v34 = vld [vmem:[#allocation2 + $0xc8] sm:$0x1]  ;;  %v2918_v41 = vshrl.u32 %v2554_v40, 16  ;;  %v2921_v1 = vshll.u32 %v2554_v40, 16  ;;  %v5775_v33 = vcombine.low %v7798_v30, %v7813_v24 }
 0x110   : > { %v2927_v56 = vshll.u32 %v7822_v8, 16  ;;  %v2931_v31 = vshrl.u32 %v7822_v8, 16  ;;  %v2937_v20 = vshll.u32 %v7824_v34, 16  ;;  %v7834_v21 = vsel %vm7121_vm0, %v3331_v4, %v3332_v0  ;;  %v3243_v4 = vld [vmem:[#allocation2 + $0x6c] sm:$0xe]  ;;  %v6520_v24 = vld [vmem:[#allocation2 + $0x78] sm:$0xff]  }
 0x111   : > { %6261 = vmatmul.mubr.msk.bf16.gmra.mxu1 %vm1185_vm9, %v6503_v7  ;;  %v2920_v39 = vrot.slane %v2918_v41, 4  ;;  %v2923_v29 = vrot.slane %v2921_v1, 5  ;;  %v5776_v44 = vcombine.low %v7817_v28, %v7834_v21  ;;  %v3336_v5 = vrot.slane %v7489_v53, 5  ;;  %v6519_v30 = vld [vmem:[#allocation2 + $0x6c] sm:$0xff]  }
 0x112   : > { %6264 = vmatprep.mubr.msk.bf16.mxu1 %vm1185_vm9, %v6504_v10  ;;  %v2929_v3 = vrot.slane %v2927_v56, 5  ;;  %v2933_v51 = vrot.slane %v2931_v31, 4  ;;  %v2939_v9 = vrot.slane %v2937_v20, 5  ;;  %v3339_v7 = vrot.slane %v7512_v52, 5 }
 0x113   : > { %v2924_v62 = vor.u32 %v2923_v29, %v2920_v39  ;;  %v7842_v36 = vsel %vm7121_vm0, %v5760_v27, %v3336_v5  ;;  %v3338_v10 = vrot.slane %v3336_v5, 4  ;;  %v5761_v54 = vrot.slane %v3241_v16, 9  ;;  %v3245_v5 = vld [vmem:[#allocation2 + $0x84] sm:$0xe] }
 0x114   : > { %v2934_v37 = vor.u32 %v2933_v51, %v2929_v3  ;;  %v3343_v53 = vrot.slane %v7504_v45, 5  ;;  %v3346_v0 = vrot.slane %v7536_v50, 5  ;;  %v5762_v40 = vrot.slane %v3242_v49, 9  ;;  %v3244_v49 = vld [vmem:[#allocation2 + $0x78] sm:$0xe] }
 0x115   : > { %6303 = vmatmul.mubr.msk.bf16.gmra.mxu0 %vm1185_vm9, %v7750_v46  ;;  %v2925_v52 = vrot.slane %v2924_v62, 4  ;;  %v7852_v27 = vsel %vm7121_vm0, %v3338_v10, %v3339_v7  ;;  %v3350_v16 = vrot.slane %v7524_v60, 5  ;;  %v3353_v41 = vrot.slane %v7567_v61, 5  ;;  %v3246_v62 = vld [vmem:[#allocation2 + $0x90] sm:$0xe] }
 0x116   : > { %6306 = vmatprep.mubr.msk.bf16.mxu0 %vm1185_vm9, %v7770_v13  ;;  %v2935_v46 = vrot.slane %v2934_v37, 4  ;;  %v7860_v50 = vsel %vm7121_vm0, %v5761_v54, %v3343_v53  ;;  %v3345_v1 = vrot.slane %v3343_v53, 4  ;;  %v5763_v56 = vrot.slane %v3243_v4, 9  ;;  %v6508_v4 = vld [vmem:[#allocation2 + $0x9c] sm:$0xff]  }
 0x117   : > { %v2930_v13 = vsel %vm6797_vm13, %v2925_v52, %v2929_v3  ;;  %v7867_v60 = vsel %vm7121_vm0, %v5762_v40, %v3350_v16  ;;  %v3352_v61 = vrot.slane %v3350_v16, 4  ;;  %v3357_v39 = vrot.slane %v7565_v14, 5  ;;  %v3247_v40 = vld [vmem:[#allocation2 + $0x9c] sm:$0xe] }
 0x118   : > { %v2940_v31 = vsel %vm6797_vm13, %v2935_v46, %v2939_v9  ;;  %v7874_v20 = vsel %vm7121_vm0, %v3345_v1, %v3346_v0  ;;  %v3360_v29 = vrot.slane %v7582_v32, 5  ;;  %v6507_v9 = vld [vmem:[#allocation2 + $0x90] sm:$0xff]   ;;  %v3364_v54 = vrot.slane %v7589_v19, 5 }
 0x119   : > { %6265 = vmatmul.mubr.msk.bf16.gmra.mxu1 %vm1185_vm9, %v6505_v63  ;;  %v5738_v3 = vcombine.low %v2930_v13, %v2940_v31  ;;  %v7882_v7 = vsel %vm7121_vm0, %v3352_v61, %v3353_v41  ;;  %v5764_v63 = vrot.slane %v3244_v49, 9  ;;  %v7888_v14 = vsel %vm7121_vm0, %v5763_v56, %v3357_v39  ;;  %v8033_v61 = vld [vmem:[#allocation2 + $0x2c] sm:$0x1] }
 0x11a   : > { %6268 = vmatprep.mubr.msk.bf16.mxu1 %vm1185_vm9, %v6506_v23  ;;  %v3359_v32 = vrot.slane %v3357_v39, 4  ;;  %v3367_v23 = vrot.slane %v7603_v22, 5  ;;  %v5765_v37 = vrot.slane %v3245_v5, 9  ;;  %v3371_v53 = vrot.slane %v7608_v15, 5  ;;  %v3249_v39 = vld [vmem:[#allocation2 + $0xb4] sm:$0xe] }
 0x11b   : > { %v3374_v0 = vrot.slane %v7635_v18, 5  ;;  %v7902_v16 = vsel %vm7121_vm0, %v5764_v63, %v3364_v54  ;;  %v3366_v19 = vrot.slane %v3364_v54, 4  ;;  %v5766_v22 = vrot.slane %v3246_v62, 9  ;;  %v9381_v5 = vld [vmem:[#allocation10_spill] sm:$0xff]  ;;  %v9382_v54 = vld [vmem:[#allocation9_spill] sm:$0xff] }
 0x11c   : > { %v7898_v52 = vsel %vm7121_vm0, %v3359_v32, %v3360_v29  ;;  %v7910_v18 = vsel %vm7121_vm0, %v5765_v37, %v3371_v53  ;;  %v3378_v41 = vrot.slane %v7646_v58, 5  ;;  %v3381_v1 = vrot.slane %v7668_v55, 5  ;;  %v6512_v62 = vld [vmem:[#allocation2 + $0x18] sm:$0xff]   ;;  %v9383_v37 = vld [vmem:[#allocation12_spill] sm:$0xff] }
 0x11d   : > { %6307 = vmatmul.mubr.msk.bf16.gmra.mxu0 %vm1185_vm9, %v7780_v42  ;;  %v3373_v42 = vrot.slane %v3371_v53, 4  ;;  %v7915_v46 = vsel %vm7121_vm0, %v3366_v19, %v3367_v23  ;;  %v5767_v49 = vrot.slane %v3247_v40, 9  ;;  %v3385_v13 = vrot.slane %v7658_v25, 5  ;;  %v4791_v40 = vld [vmem:[#allocation2 + $0x24] sm:$0xe] }
 0x11e   : > { %6310 = vmatprep.mubr.msk.bf16.mxu0 %vm1185_vm9, %v7820_v17  ;;  %v3248_v17 = vld [vmem:[#allocation2 + $0xa8] sm:$0xe]  ;;  %v7928_v58 = vsel %vm7121_vm0, %v5766_v22, %v3378_v41  ;;  %v3380_v31 = vrot.slane %v3378_v41, 4  ;;  %v3388_v63 = vrot.slane %v9381_v5, 5  ;;  %v3392_v23 = vrot.slane %v9382_v54, 5  ;;  %v9384_v22 = vld [vmem:[#allocation11_spill] sm:$0xff] }
 0x11f   : > { %v7924_v56 = vsel %vm7121_vm0, %v3373_v42, %v3374_v0  ;;  %v7935_v55 = vsel %vm7121_vm0, %v5767_v49, %v3385_v13  ;;  %v3387_v29 = vrot.slane %v3385_v13, 4  ;;  %v5768_v32 = vrot.slane %v3248_v17, 9  ;;  %v3250_v0 = vld [vmem:[#allocation2 + $0xc0] sm:$0xe]  ;;  %v6509_v41 = vld [vmem:[#allocation2 + $0xa8] sm:$0xff]  }
 0x120   : > { %v3395_v53 = vrot.slane %v9383_v37, 5  ;;  %v5769_v19 = vrot.slane %v3249_v39, 9  ;;  %v3399_v42 = vrot.slane %v9384_v22, 5  ;;  %v3394_v13 = vrot.slane %v3392_v23, 4  ;;  %v6544_v54 = vld [vmem:[#allocation2 + $0x14] sm:$0x1] }
 0x121   : > { %6269 = vmatmul.mubr.msk.bf16.gmra.mxu1 %vm1185_vm9, %v6507_v9  ;;  %v7940_v9 = vsel %vm7121_vm0, %v3380_v31, %v3381_v1  ;;  %v7955_v49 = vsel %vm7121_vm0, %v5768_v32, %v3392_v23  ;;  %v3402_v17 = vrot.slane %v7729_v11, 5  ;;  %v6510_v31 = vld [vmem:[#allocation2 + $0xb4] sm:$0xff]   ;;  %v5770_v5 = vrot.slane %v3250_v0, 9 }
 0x122   : > { %6272 = vmatprep.mubr.msk.bf16.mxu1 %vm1185_vm9, %v6508_v4  ;;  %v7948_v4 = vsel %vm7121_vm0, %v3387_v29, %v3388_v63  ;;  %v7961_v29 = vsel %vm7121_vm0, %v5769_v19, %v3399_v42  ;;  %v3401_v39 = vrot.slane %v3399_v42, 4  ;;  %v3406_v63 = vrot.slane %v7822_v8, 5  ;;  %v6545_v19 = vld [vmem:[#allocation2 + $0x1c] sm:$0xf] }
 0x123   : > { %v3303_v32 = vrot.slane %v3301_v43, 4  ;;  %v3304_v23 = vrot.slane %v6544_v54, 5  ;;  %v7969_v11 = vsel %vm7121_vm0, %v3394_v13, %v3395_v53  ;;  %v3308_v22 = vrot.slane %v6545_v19, 5  ;;  %v8010_v19 = vpop.f32.mrf.mxu0 }
 0x124   : > { %v7976_v0 = vsel %vm7121_vm0, %v3401_v39, %v3402_v17  ;;  %v7980_v8 = vsel %vm7121_vm0, %v5770_v5, %v3406_v63  ;;  %v3302_v13 = vsel %vm7121_vm0, %v5755_v48, %v3301_v43  ;;  %v3236_v17 = vld [vmem:[#allocation2 + $0x18] sm:$0xe]  ;;  %v6514_v39 = vld [vmem:[#allocation2 + $0x30] sm:$0xff]   ;;  %v6511_v5 = vld [vmem:[#allocation2 + $0xc0] sm:$0xff]   ;;  %9385 = vst [vmem:[#allocation7_spill] sm:$0xff] %v8010_v19  ;;  %vm5459_vm1 = vcmask 519168  }
 0x125   : > { %6311 = vmatmul.mubr.msk.bf16.gmra.mxu0 %vm1185_vm9, %v5738_v3  ;;  %v3409_v3 = vrot.slane %v7824_v34, 5  ;;  %v6513_v34 = vld [vmem:[#allocation2 + $0x24] sm:$0xff]   ;;  %v5756_v54 = vrot.slane %v3236_v17, 9  ;;  %v6515_v43 = vld [vmem:[#allocation2 + $0x3c] sm:$0xff]   ;;  %v4790_v17 = vld [vmem:[#allocation2 + $0x18] sm:$0xe] }
 0x126   : > { %6350 = vmatprep.mubr.msk.bf16.mxu0 %vm1185_vm9, %v6512_v62  ;;  %v3408_v62 = vrot.slane %v3406_v63, 4 }
 0x127   : > { %v3309_v35 = vsel %vm7121_vm0, %v5756_v54, %v3308_v22 }
 0x128   : > { %v7988_v42 = vsel %vm7121_vm0, %v3408_v62, %v3409_v3  ;;  %v3310_v3 = vrot.slane %v3308_v22, 4  ;;  %v3311_v62 = vrot.slane %v6546_v38, 5  ;;  %v6517_v38 = vld [vmem:[#allocation2 + $0x54] sm:$0xff]  }
 0x129   : > { %6273 = vmatmul.mubr.msk.bf16.gmra.mxu1 %vm1185_vm9, %v6509_v41  ;;  %v3305_v41 = vsel %vm7121_vm0, %v3303_v32, %v3304_v23  ;;  %v6516_v32 = vld [vmem:[#allocation2 + $0x48] sm:$0xff]  }
 0x12a   : > { %6276 = vmatprep.mubr.msk.bf16.mxu1 %vm1185_vm9, %v6510_v31  ;;  %v5772_v63 = vcombine.low %v3302_v13, %v3305_v41  ;;  %v3312_v48 = vsel %vm7121_vm0, %v3310_v3, %v3311_v62  ;;  %v8013_v13 = vld [vmem:[#allocation2 + $0x28] sm:$0xf]  ;;  %v4067_v41 = vld [vmem:[#allocation2 + $0x24] sm:$0xf]  ;;  %v8021_v62 = vpop.f32.mrf.mxu0  ;;  %v8025_v31 = vld [vmem:[#allocation2 + $0x34] sm:$0xf] }
 0x12b   : > { %v5773_v23 = vcombine.low %v3309_v35, %v3312_v48  ;;  %9386 = vst [vmem:[#allocation6_spill] sm:$0xff] %v8021_v62  ;;  %v4137_v35 = vshrl.u32 %v4067_v41, 16  ;;  %v4140_v48 = vshll.u32 %v4067_v41, 16  ;;  %v4863_v41 = vrot.slane %v8013_v13, 5 }
 0x12c   : > { %v8031_v25 = vpop.f32.mrf.mxu0 }
 0x12d   : > { %6351 = vmatmul.mubr.msk.bf16.vlgmr.msra.gmra.mxu0 %vm1185_vm9, %v6513_v34  ;;  %v4064_v34 = vld [vmem:[#allocation2 + $0x18] sm:$0xf]  ;;  %9387 = vst [vmem:[#allocation8_spill] sm:$0xff] %v8031_v25  ;;  %v4142_v15 = vrot.slane %v4140_v48, 5  ;;  %v5871_v48 = vrot.slane %v4791_v40, 9  ;;  %v4865_v40 = vrot.slane %v4863_v41, 4 }
 0x12e   : > { %6417 = vmatpush3.bf16.msra.mxu0 %v7774_v59  ;;  %6354 = vmatprep.mubr.msk.bf16.mxu0 %vm1185_vm9, %v6514_v39  ;;  %v4065_v59 = vld [vmem:[#allocation2 + $0x1c] sm:$0xf]  ;;  %v4113_v22 = vshrl.u32 %v4064_v34, 16 }
 0x12f   : > { %v4856_v39 = vrot.slane %v4065_v59, 5  ;;  %v4122_v54 = vshll.u32 %v4065_v59, 16  ;;  %v4126_v3 = vshrl.u32 %v4065_v59, 16 }
 0x130   : > { %v4115_v53 = vrot.slane %v4113_v22, 4 }
 0x131   : > { %6277 = vmatmul.mubr.msk.bf16.gmra.mxu1 %vm1185_vm9, %v6511_v5  ;;  %v4066_v5 = vld [vmem:[#allocation2 + $0x20] sm:$0x1]  ;;  %v4858_v59 = vrot.slane %v4856_v39, 4  ;;  %v4128_v1 = vrot.slane %v4126_v3, 4  ;;  %v4174_v3 = vshrl.u32 %v8025_v31, 16 }
 0x132   : > { %6316 = vmatprep.mubr.msk.bf16.mxu1 %vm1185_vm9, %v5772_v63  ;;  %v4116_v63 = vshll.u32 %v4064_v34, 16  ;;  %v5870_v34 = vrot.slane %v4790_v17, 9  ;;  %v4132_v37 = vshll.u32 %v4066_v5, 16  ;;  %v4139_v17 = vrot.slane %v4137_v35, 4 }
 0x134   : > { %v4118_v26 = vrot.slane %v4116_v63, 5  ;;  %v4164_v63 = vshll.u32 %v4070_v6, 16  ;;  %v8048_v35 = vrot.slane %v4132_v37, 5  ;;  %v4143_v37 = vor.u32 %v4142_v15, %v4139_v17 }
 0x135   : > { %6355 = vmatmul.mubr.msk.bf16.gmra.mxu0 %vm1185_vm9, %v6515_v43  ;;  %v4146_v43 = vshll.u32 %v8013_v13, 16 }
 0x136   : > { %6358 = vmatprep.mubr.msk.bf16.mxu0 %vm1185_vm9, %v6516_v32  ;;  %v4150_v32 = vshrl.u32 %v8013_v13, 16  ;;  %v8042_v13 = vsel %vm7121_vm0, %v5870_v34, %v4856_v39  ;;  %v4866_v39 = vrot.slane %v8033_v61, 5  ;;  %v4156_v34 = vshll.u32 %v8033_v61, 16  ;;  %v4072_v61 = vld [vmem:[#allocation2 + $0x38] sm:$0x1] }
 0x137   : > { %v8035_v10 = vrot.slane %v4146_v43, 5  ;;  %v8054_v43 = vpop.f32.mrf.mxu1  ;;  %v4166_v51 = vrot.slane %v4164_v63, 5 }
 0x138   : > { %v4152_v22 = vrot.slane %v4150_v32, 4  ;;  %9388 = vst [vmem:[#allocation10_spill] sm:$0xff] %v8054_v43  ;;  %v4119_v32 = vor.u32 %v4118_v26, %v4115_v53  ;;  %v4792_v53 = vld [vmem:[#allocation2 + $0x30] sm:$0xe]  ;;  %v4176_v43 = vrot.slane %v4174_v3, 4  ;;  %v4873_v3 = vrot.slane %v4072_v61, 5 }
 0x139   : > { %6317 = vmatmul.mubr.msk.bf16.vlgmr.msra.gmra.mxu1 %vm1185_vm9, %v5773_v23  ;;  %v6518_v23 = vld [vmem:[#allocation2 + $0x60] sm:$0xff]   ;;  %v5872_v62 = vrot.slane %v4792_v53, 9 }
 0x13a   : > { %6383 = vmatpush3.bf16.msra.mxu1 %v7767_v57  ;;  %6320 = vmatprep.mubr.msk.bf16.mxu1 %vm1185_vm9, %v5774_v2  ;;  %v4859_v57 = vrot.slane %v4066_v5, 5  ;;  %v8027_v2 = vrot.slane %v4122_v54, 5  ;;  %v4161_v5 = vshrl.u32 %v4070_v6, 16  ;;  %v4170_v54 = vshll.u32 %v8025_v31, 16  ;;  %v8059_v6 = vld [vmem:[#allocation2 + $0x40] sm:$0xf] }
 0x13b   : > { %v4198_v25 = vshrl.u32 %v8059_v6, 16  ;;  %v4120_v15 = vrot.slane %v4119_v32, 4 }
 0x13c   : > { %v4163_v26 = vrot.slane %v4161_v5, 4  ;;  %v8069_v45 = vrot.slane %v4170_v54, 5  ;;  %v4144_v5 = vrot.slane %v4143_v37, 4 }
 0x13d   : > { %6359 = vmatmul.mubr.msk.bf16.gmra.mxu0 %vm1185_vm9, %v6517_v38  ;;  %v8046_v38 = vsel %vm7121_vm0, %v4858_v59, %v4859_v57  ;;  %v4073_v59 = vld [vmem:[#allocation2 + $0x3c] sm:$0xf]  ;;  %v4870_v57 = vrot.slane %v8025_v31, 5  ;;  %v4200_v37 = vrot.slane %v4198_v25, 4 }
 0x13e   : > { %6362 = vmatprep.mubr.msk.bf16.mxu0 %vm1185_vm9, %v6518_v23  ;;  %v4129_v23 = vor.u32 %v4128_v1, %v8027_v2  ;;  %v4153_v1 = vor.u32 %v4152_v22, %v8035_v10  ;;  %v4185_v28 = vshrl.u32 %v4073_v59, 16  ;;  %v4188_v21 = vshll.u32 %v4073_v59, 16 }
 0x13f   : > { %v4158_v22 = vrot.slane %v4156_v34, 5  ;;  %v4872_v54 = vrot.slane %v4870_v57, 4  ;;  %v8081_v59 = vsel %vm7121_vm0, %v5871_v48, %v4863_v41  ;;  %v4167_v19 = vor.u32 %v4166_v51, %v4163_v26  ;;  %v8084_v34 = vld [vmem:[#allocation2 + $0x44] sm:$0x1] }
 0x140   : > { %v4130_v17 = vrot.slane %v4129_v23, 4  ;;  %v4154_v63 = vrot.slane %v4153_v1, 4  ;;  %v4177_v32 = vor.u32 %v4176_v43, %v8069_v45  ;;  %v4180_v23 = vshll.u32 %v4072_v61, 16  ;;  %v6522_v43 = vld [vmem:[#allocation2 + $0x90] sm:$0xff]   ;;  %v4793_v61 = vld [vmem:[#allocation2 + $0x3c] sm:$0xe] }
 0x141   : > { %6321 = vmatmul.mubr.msk.bf16.gmra.mxu1 %vm1185_vm9, %v5775_v33  ;;  %v8065_v33 = vpop.f32.mrf.mxu0  ;;  %v4187_v53 = vrot.slane %v4185_v28, 4  ;;  %v9391_v1 = vcombine.low %v7842_v36, %v7852_v27  ;;  %v4125_v51 = vsel %vm6797_vm13, %v4120_v15, %v8027_v2  ;;  %v8102_v48 = vsel %vm7121_vm0, %v4865_v40, %v4866_v39  ;;  %v6521_v27 = vld [vmem:[#allocation2 + $0x84] sm:$0xff]  }
 0x142   : > { %6324 = vmatprep.mubr.msk.bf16.mxu1 %vm1185_vm9, %v5776_v44  ;;  %9389 = vst [vmem:[#allocation9_spill] sm:$0xff] %v8065_v33  ;;  %v4194_v44 = vshll.u32 %v8059_v6, 16  ;;  %v8073_v33 = vpop.f32.mrf.mxu1  ;;  %v4135_v41 = vsel %vm6797_vm13, %v4130_v17, %v8048_v35  ;;  %v8106_v25 = vsel %vm7121_vm0, %v5872_v62, %v4870_v57  ;;  %v9393_v36 = vcombine.low %v7860_v50, %v7874_v20  ;;  %v4794_v15 = vld [vmem:[#allocation2 + $0x48] sm:$0xe]  ;;  %v8183_v28 = vld [vmem:[#allocation2 + $0x64] sm:$0xf] }
 0x143   : > { %9390 = vst [vmem:[#allocation12_spill] sm:$0xff] %v8073_v33  ;;  %v8076_v31 = vpop.f32.mrf.mxu0  ;;  %v4149_v35 = vsel %vm6797_vm13, %v4144_v5, %v8035_v10  ;;  %v4159_v39 = vsel %vm6797_vm13, %v4154_v63, %v4158_v22  ;;  %v8121_v62 = vsel %vm7121_vm0, %v4872_v54, %v4873_v3  ;;  %v4877_v40 = vrot.slane %v8059_v6, 5  ;;  %v4076_v63 = vld [vmem:[#allocation2 + $0x48] sm:$0xf] }
 0x144   : > { %v8086_v33 = vrot.slane %v4194_v44, 5  ;;  %v4168_v50 = vrot.slane %v4167_v19, 4  ;;  %v4178_v20 = vrot.slane %v4177_v32, 4  ;;  %v4182_v57 = vrot.slane %v4180_v23, 5  ;;  %v4077_v44 = vld [vmem:[#allocation2 + $0x4c] sm:$0xf] }
 0x145   : > { %6363 = vmatmul.mubr.msk.bf16.gmra.mxu0 %vm1185_vm9, %v6519_v30  ;;  %v4190_v30 = vrot.slane %v4188_v21, 5  ;;  %v8112_v2 = vpop.f32.mrf.mxu0  ;;  %v4204_v26 = vshll.u32 %v8084_v34, 16  ;;  %v8130_v22 = vcombine.low %v4125_v51, %v4135_v41  ;;  %v4884_v5 = vrot.slane %v4077_v44, 5 }
 0x146   : > { %6366 = vmatprep.mubr.msk.bf16.mxu0 %vm1185_vm9, %v6520_v24  ;;  %v8092_v24 = vpop.f32.mrf.mxu1  ;;  %v4201_v10 = vor.u32 %v4200_v37, %v8086_v33  ;;  %v8139_v3 = vcombine.low %v4149_v35, %v4159_v39  ;;  %v5873_v32 = vrot.slane %v4793_v61, 9  ;;  %v4879_v23 = vrot.slane %v4877_v40, 4 }
 0x147   : > { %9392 = vst [vmem:[#allocation11_spill] sm:$0xff] %v8092_v24  ;;  %v4191_v21 = vor.u32 %v4190_v30, %v4187_v53  ;;  %v8137_v54 = vpop.f32.mrf.mxu0  ;;  %v4880_v53 = vrot.slane %v8084_v34, 5  ;;  %v4078_v30 = vld [vmem:[#allocation2 + $0x50] sm:$0x1]  ;;  %v4173_v37 = vsel %vm6797_vm13, %v4168_v50, %v8069_v45  ;;  %v4206_v51 = vrot.slane %v4204_v26, 5  ;;  %v6523_v26 = vld [vmem:[#allocation2 + $0x9c] sm:$0xff]  }
 0x148   : > { %v8128_v17 = vpop.f32.mrf.mxu1  ;;  %9395 = vst [vmem:[#allocation14_spill] sm:$0xff] %v8137_v54  ;;  %v5874_v41 = vrot.slane %v4794_v15, 9  ;;  %v4202_v39 = vrot.slane %v4201_v10, 4  ;;  %v4209_v61 = vshrl.u32 %v4076_v63, 16  ;;  %v4212_v6 = vshll.u32 %v4076_v63, 16  ;;  %v6524_v63 = vld [vmem:[#allocation2 + $0xa8] sm:$0xff]  }
 0x149   : > { %6325 = vmatmul.mubr.msk.bf16.gmra.mxu1 %vm1185_vm9, %v9391_v1  ;;  %9394 = vst [vmem:[#allocation13_spill] sm:$0xff] %v8128_v17  ;;  %v4183_v1 = vsel %vm6797_vm13, %v4178_v20, %v4182_v57  ;;  %v4192_v35 = vrot.slane %v4191_v21, 4  ;;  %v9396_v34 = vcombine.low %v7867_v60, %v7882_v7  ;;  %v4886_v45 = vrot.slane %v4884_v5, 4  ;;  %v8160_v21 = vpop.f32.mrf.mxu0 }
 0x14a   : > { %6328 = vmatprep.mubr.msk.bf16.mxu1 %vm1185_vm9, %v9393_v36  ;;  %v8148_v36 = vld [vmem:[#allocation2 + $0x58] sm:$0xf]  ;;  %v4887_v50 = vrot.slane %v4078_v30, 5  ;;  %v4218_v19 = vshll.u32 %v4077_v44, 16  ;;  %v4222_v20 = vshrl.u32 %v4077_v44, 16  ;;  %v9398_v57 = vcombine.low %v7888_v14, %v7898_v52  ;;  %9399 = vst [vmem:[#allocation16_spill] sm:$0xff] %v8160_v21 }
 0x14b   : > { %v4242_v60 = vshll.u32 %v8148_v36, 16  ;;  %v4246_v7 = vshrl.u32 %v8148_v36, 16  ;;  %v8168_v44 = vsel %vm7121_vm0, %v5873_v32, %v4877_v40  ;;  %v8172_v14 = vsel %vm7121_vm0, %v4879_v23, %v4880_v53  ;;  %v4082_v40 = vld [vmem:[#allocation2 + $0x60] sm:$0xf] }
 0x14c   : > { %v8176_v52 = vsel %vm7121_vm0, %v5874_v41, %v4884_v5  ;;  %v8189_v23 = vsel %vm7121_vm0, %v4886_v45, %v4887_v50  ;;  %v8191_v5 = vrot.slane %v4218_v19, 5  ;;  %v4224_v53 = vrot.slane %v4222_v20, 4 }
 0x14d   : > { %6367 = vmatmul.mubr.msk.bf16.gmra.mxu0 %vm1185_vm9, %v6521_v27  ;;  %v4079_v27 = vld [vmem:[#allocation2 + $0x54] sm:$0xf]  ;;  %v4228_v41 = vshll.u32 %v4078_v30, 16  ;;  %v4260_v45 = vshll.u32 %v4082_v40, 16  ;;  %v4266_v19 = vshll.u32 %v8183_v28, 16  ;;  %v4270_v50 = vshrl.u32 %v8183_v28, 16 }
 0x14e   : > { %6370 = vmatprep.mubr.msk.bf16.mxu0 %vm1185_vm9, %v6522_v43  ;;  %v8154_v43 = vpop.f32.mrf.mxu1  ;;  %v4233_v10 = vshrl.u32 %v4079_v27, 16  ;;  %v4236_v15 = vshll.u32 %v4079_v27, 16  ;;  %v4197_v27 = vsel %vm6797_vm13, %v4192_v35, %v8086_v33  ;;  %v8194_v33 = vpop.f32.mrf.mxu0 }
 0x14f   : > { %9397 = vst [vmem:[#allocation15_spill] sm:$0xff] %v8154_v43  ;;  %9401 = vst [vmem:[#allocation18_spill] sm:$0xff] %v8194_v33  ;;  %v4257_v43 = vshrl.u32 %v4082_v40, 16  ;;  %v8216_v40 = vrot.slane %v4228_v41, 5  ;;  %v6526_v41 = vld [vmem:[#allocation2 + $0xc0] sm:$0xff]   ;;  %v8226_v24 = vrot.slane %v4266_v19, 5 }
 0x150   : > { %v8185_v32 = vpop.f32.mrf.mxu1  ;;  %v4235_v35 = vrot.slane %v4233_v10, 4  ;;  %v4084_v33 = vld [vmem:[#allocation2 + $0x68] sm:$0x1] }
 0x151   : > { %6329 = vmatmul.mubr.msk.bf16.gmra.mxu1 %vm1185_vm9, %v9396_v34  ;;  %v8164_v34 = vcombine.low %v4173_v37, %v4183_v1  ;;  %v4207_v37 = vsel %vm6797_vm13, %v4202_v39, %v4206_v51  ;;  %v4211_v1 = vrot.slane %v4209_v61, 4  ;;  %9400 = vst [vmem:[#allocation17_spill] sm:$0xff] %v8185_v32  ;;  %v4795_v51 = vld [vmem:[#allocation2 + $0x54] sm:$0xe]  ;;  %v8196_v39 = vrot.slane %v4242_v60, 5 }
 0x152   : > { %6332 = vmatprep.mubr.msk.bf16.mxu1 %vm1185_vm9, %v9398_v57  ;;  %v4214_v57 = vrot.slane %v4212_v6, 5  ;;  %v4238_v6 = vrot.slane %v4236_v15, 5  ;;  %v4248_v61 = vrot.slane %v4246_v7, 4  ;;  %v4081_v32 = vld [vmem:[#allocation2 + $0x5c] sm:$0x1]  ;;  %v8203_v20 = vcombine.low %v4197_v27, %v4207_v37  ;;  %v8213_v7 = vpop.f32.mrf.mxu1 }
 0x153   : > { %v8207_v15 = vld [vmem:[#allocation2 + $0x70] sm:$0xf]  ;;  %v9402_v60 = vcombine.low %v7902_v16, %v7915_v46  ;;  %9403 = vst [vmem:[#allocation19_spill] sm:$0xff] %v8213_v7  ;;  %v5875_v30 = vrot.slane %v4795_v51, 9  ;;  %v4891_v27 = vrot.slane %v8148_v36, 5  ;;  %v4894_v16 = vrot.slane %v4081_v32, 5 }
 0x154   : > { %v4215_v10 = vor.u32 %v4214_v57, %v4211_v1  ;;  %v4085_v37 = vld [vmem:[#allocation2 + $0x6c] sm:$0xf]  ;;  %v9404_v1 = vcombine.low %v7910_v18, %v7924_v56  ;;  %v6525_v57 = vld [vmem:[#allocation2 + $0xb4] sm:$0xff]   ;;  %v4239_v46 = vor.u32 %v4238_v6, %v4235_v35  ;;  %v4252_v7 = vshll.u32 %v4081_v32, 16 }
 0x155   : > { %6371 = vmatmul.mubr.msk.bf16.gmra.mxu0 %vm1185_vm9, %v6523_v26  ;;  %v8223_v26 = vpop.f32.mrf.mxu0  ;;  %v4259_v17 = vrot.slane %v4257_v43, 4  ;;  %v4262_v51 = vrot.slane %v4260_v45, 5  ;;  %v4272_v36 = vrot.slane %v4270_v50, 4  ;;  %v4281_v21 = vshrl.u32 %v4085_v37, 16 }
 0x156   : > { %6374 = vmatprep.mubr.msk.bf16.mxu0 %vm1185_vm9, %v6524_v63  ;;  %v4225_v63 = vor.u32 %v4224_v53, %v8191_v5  ;;  %9405 = vst [vmem:[#allocation20_spill] sm:$0xff] %v8223_v26  ;;  %v4796_v53 = vld [vmem:[#allocation2 + $0x60] sm:$0xe]  ;;  %v4284_v18 = vshll.u32 %v4085_v37, 16  ;;  %v4290_v56 = vshll.u32 %v8207_v15, 16  ;;  %v8230_v26 = vpop.f32.mrf.mxu1  ;;  %v8232_v35 = vrot.slane %v4215_v10, 4 }
 0x157   : > { %9406 = vst [vmem:[#allocation21_spill] sm:$0xff] %v8230_v26  ;;  %v8236_v32 = vsel %vm7121_vm0, %v5875_v30, %v4891_v27  ;;  %v4893_v43 = vrot.slane %v4891_v27, 4  ;;  %v4898_v6 = vrot.slane %v8183_v28, 5  ;;  %v8244_v19 = vrot.slane %v4239_v46, 4  ;;  %v8252_v28 = vld [vmem:[#allocation2 + $0x74] sm:$0x1] }
 0x158   : > { %v8242_v45 = vrot.slane %v4225_v63, 4  ;;  %v8246_v50 = vrot.slane %v4252_v7, 5  ;;  %v5876_v37 = vrot.slane %v4796_v53, 9  ;;  %v4263_v30 = vor.u32 %v4262_v51, %v4259_v17  ;;  %v8260_v46 = vpop.f32.mrf.mxu1 }
 0x159   : > { %6333 = vmatmul.mubr.msk.bf16.gmra.mxu1 %vm1185_vm9, %v9402_v60  ;;  %v4249_v60 = vor.u32 %v4248_v61, %v8196_v39  ;;  %v8240_v61 = vpop.f32.mrf.mxu0  ;;  %v4273_v27 = vor.u32 %v4272_v36, %v8226_v24  ;;  %v4276_v26 = vshll.u32 %v4084_v33, 16  ;;  %v4286_v54 = vrot.slane %v4284_v18, 5  ;;  %9409 = vst [vmem:[#allocation23_spill] sm:$0xff] %v8260_v46 }
 0x15a   : > { %6336 = vmatprep.mubr.msk.bf16.mxu1 %vm1185_vm9, %v9404_v1  ;;  %v4294_v1 = vshrl.u32 %v8207_v15, 16  ;;  %9407 = vst [vmem:[#allocation22_spill] sm:$0xff] %v8240_v61  ;;  %v8254_v61 = vrot.slane %v4290_v56, 5  ;;  %v9408_v7 = vcombine.low %v7928_v58, %v7940_v9  ;;  %v4221_v17 = vsel %vm6797_vm13, %v8232_v35, %v8191_v5  ;;  %v6527_v9 = vld [vmem:[#allocation2 + $0xcc] sm:$0xff]   ;;  %v4089_v35 = vld [vmem:[#allocation2 + $0x7c] sm:$0xf] }
 0x15b   : > { %v8249_v10 = vrot.slane %v4249_v60, 4  ;;  %v8268_v60 = vsel %vm7121_vm0, %v4893_v43, %v4894_v16  ;;  %v4901_v53 = vrot.slane %v4084_v33, 5  ;;  %v8274_v58 = vpop.f32.mrf.mxu0  ;;  %v4231_v51 = vsel %vm6797_vm13, %v8242_v45, %v8216_v40  ;;  %v4088_v16 = vld [vmem:[#allocation2 + $0x78] sm:$0xf] }
 0x15c   : > { %v4296_v63 = vrot.slane %v4294_v1, 4  ;;  %9411 = vst [vmem:[#allocation24_spill] sm:$0xff] %v8274_v58  ;;  %v4245_v5 = vsel %vm6797_vm13, %v8244_v19, %v8196_v39  ;;  %v8286_v33 = vsel %vm7121_vm0, %v5876_v37, %v4898_v6  ;;  %v4264_v36 = vrot.slane %v4263_v30, 4  ;;  %v8295_v19 = vpop.f32.mrf.mxu1  ;;  %v4090_v37 = vld [vmem:[#allocation2 + $0x80] sm:$0x1] }
 0x15d   : > { %6375 = vmatmul.mubr.msk.bf16.gmra.mxu0 %vm1185_vm9, %v6525_v57  ;;  %v4283_v57 = vrot.slane %v4281_v21, 4  ;;  %v4900_v21 = vrot.slane %v4898_v6, 4  ;;  %v4274_v18 = vrot.slane %v4273_v27, 4  ;;  %v4278_v56 = vrot.slane %v4276_v26, 5  ;;  %v4798_v6 = vld [vmem:[#allocation2 + $0x78] sm:$0xe] }
 0x15e   : > { %6378 = vmatprep.mubr.msk.bf16.mxu0 %vm1185_vm9, %v6526_v41  ;;  %v9410_v41 = vcombine.low %v7935_v55, %v7948_v4  ;;  %v4797_v55 = vld [vmem:[#allocation2 + $0x6c] sm:$0xe]  ;;  %v4905_v4 = vrot.slane %v8207_v15, 5  ;;  %v4300_v1 = vshll.u32 %v8252_v28, 16  ;;  %v4255_v40 = vsel %vm6797_vm13, %v8249_v10, %v8246_v50  ;;  %9412 = vst [vmem:[#allocation25_spill] sm:$0xff] %v8295_v19 }
 0x15f   : > { %v4287_v39 = vor.u32 %v4286_v54, %v4283_v57  ;;  %v4297_v43 = vor.u32 %v4296_v63, %v8254_v61  ;;  %v4912_v45 = vrot.slane %v4089_v35, 5  ;;  %v8299_v15 = vsel %vm7121_vm0, %v4900_v21, %v4901_v53 }
 0x160   : > { %v5877_v26 = vrot.slane %v4797_v55, 9  ;;  %v4305_v30 = vshrl.u32 %v4088_v16, 16  ;;  %v4308_v27 = vshll.u32 %v4088_v16, 16  ;;  %v4907_v50 = vrot.slane %v4905_v4, 4 }
 0x161   : > { %6337 = vmatmul.mubr.msk.bf16.gmra.mxu1 %vm1185_vm9, %v9408_v7  ;;  %v4908_v54 = vrot.slane %v8252_v28, 5  ;;  %v4314_v10 = vshll.u32 %v4089_v35, 16  ;;  %v4318_v57 = vshrl.u32 %v4089_v35, 16  ;;  %v9414_v63 = vcombine.low %v8042_v13, %v8046_v38  ;;  %v8320_v38 = vpop.f32.mrf.mxu1 }
 0x162   : > { %6340 = vmatprep.mubr.msk.bf16.mxu1 %vm1185_vm9, %v9410_v41  ;;  %v4269_v21 = vsel %vm6797_vm13, %v4264_v36, %v8226_v24  ;;  %v4279_v53 = vsel %vm6797_vm13, %v4274_v18, %v4278_v56  ;;  %v4302_v41 = vrot.slane %v4300_v1, 5  ;;  %v5878_v55 = vrot.slane %v4798_v6, 9  ;;  %9417 = vst [vmem:[#allocation28_spill] sm:$0xff] %v8320_v38 }
 0x163   : > { %v4288_v16 = vrot.slane %v4287_v39, 4  ;;  %v4298_v28 = vrot.slane %v4297_v43, 4  ;;  %v4914_v19 = vrot.slane %v4912_v45, 4  ;;  %v4915_v35 = vrot.slane %v4090_v37, 5  ;;  %v4091_v39 = vld [vmem:[#allocation2 + $0x84] sm:$0xf] }
 0x164   : > { %v9416_v13 = vcombine.low %v7955_v49, %v7969_v11  ;;  %v4307_v36 = vrot.slane %v4305_v30, 4  ;;  %v4310_v18 = vrot.slane %v4308_v27, 5  ;;  %v9418_v56 = vcombine.low %v7961_v29, %v7976_v0  ;;  %v4092_v30 = vld [vmem:[#allocation2 + $0x88] sm:$0xf]  ;;  %v4799_v27 = vld [vmem:[#allocation2 + $0x84] sm:$0xe] }
 0x165   : > { %v8301_v7 = vpop.f32.mrf.mxu0  ;;  %6379 = vmatmul.mubr.msk.bf16.gmra.mxu0 %vm1185_vm9, %v6527_v9  ;;  %v8334_v49 = vsel %vm7121_vm0, %v5877_v26, %v4905_v4  ;;  %v8338_v11 = vsel %vm7121_vm0, %v4907_v50, %v4908_v54  ;;  %v8342_v43 = vcombine.low %v4245_v5, %v4255_v40  ;;  %v8346_v0 = vcombine.low %v4269_v21, %v4279_v53  ;;  %v4094_v53 = vld [vmem:[#allocation2 + $0x90] sm:$0xf] }
 0x166   : > { %9413 = vst [vmem:[#allocation26_spill] sm:$0xff] %v8301_v7  ;;  %6418 = vmatprep.mubr.msk.bf16.mxu0 %vm1185_vm9, %v9414_v63  ;;  %v8322_v63 = vcombine.low %v4221_v17, %v4231_v51  ;;  %v8340_v17 = vrot.slane %v4314_v10, 5  ;;  %v4320_v51 = vrot.slane %v4318_v57, 4  ;;  %v4324_v6 = vshll.u32 %v4090_v37, 16  ;;  %v8363_v37 = vpop.f32.mrf.mxu1 }
 0x167   : > { %v8314_v9 = vpop.f32.mrf.mxu0  ;;  %v4293_v26 = vsel %vm6797_vm13, %v4288_v16, %v8254_v61  ;;  %v4303_v50 = vsel %vm6797_vm13, %v4298_v28, %v4302_v41  ;;  %v8357_v5 = vsel %vm7121_vm0, %v5878_v55, %v4912_v45  ;;  %v8361_v40 = vsel %vm7121_vm0, %v4914_v19, %v4915_v35  ;;  %9421 = vst [vmem:[#allocation31_spill] sm:$0xff] %v8363_v37  ;;  %v8367_v61 = vld [vmem:[#allocation2 + $0x94] sm:$0xf]  ;;  %v8376_v55 = vld [vmem:[#allocation2 + $0x8c] sm:$0x1] }
 0x168   : > { %9415 = vst [vmem:[#allocation27_spill] sm:$0xff] %v8314_v9  ;;  %v4311_v10 = vor.u32 %v4310_v18, %v4307_v36  ;;  %v4329_v57 = vshrl.u32 %v4091_v39, 16  ;;  %v4332_v21 = vshll.u32 %v4091_v39, 16  ;;  %v9422_v45 = vcombine.low %v8081_v59, %v8102_v48 }
 0x169   : > { %6341 = vmatmul.mubr.msk.bf16.gmra.mxu1 %vm1185_vm9, %v9416_v13  ;;  %v8330_v1 = vpop.f32.mrf.mxu0  ;;  %v4321_v19 = vor.u32 %v4320_v51, %v8340_v17  ;;  %v5879_v16 = vrot.slane %v4799_v27, 9  ;;  %v4338_v28 = vshll.u32 %v4092_v30, 16  ;;  %v4342_v35 = vshrl.u32 %v4092_v30, 16 }
 0x16a   : > { %6344 = vmatprep.mubr.msk.bf16.mxu1 %vm1185_vm9, %v9418_v56  ;;  %9419 = vst [vmem:[#allocation29_spill] sm:$0xff] %v8330_v1  ;;  %v9423_v13 = vcombine.low %v8106_v25, %v8121_v62  ;;  %v8382_v36 = vcombine.low %v4293_v26, %v4303_v50  ;;  %v8386_v59 = vrot.slane %v4324_v6, 5  ;;  %v4919_v48 = vrot.slane %v4092_v30, 5  ;;  %v8388_v56 = vld [vmem:[#allocation2 + $0xa0] sm:$0xf] }
 0x16b   : > { %v8348_v4 = vpop.f32.mrf.mxu0  ;;  %v4353_v39 = vshrl.u32 %v4094_v53, 16  ;;  %v4356_v27 = vshll.u32 %v4094_v53, 16  ;;  %v4366_v25 = vshrl.u32 %v8367_v61, 16  ;;  %v4097_v62 = vld [vmem:[#allocation2 + $0x9c] sm:$0xf]  ;;  %v9426_v26 = vcombine.low %v7980_v8, %v7988_v42 }
 0x16c   : > { %9420 = vst [vmem:[#allocation30_spill] sm:$0xff] %v8348_v4  ;;  %9424 = vst [vmem:[#allocation32_spill] sm:$0xff] %v8382_v36  ;;  %v8400_v6 = vrot.slane %v4311_v10, 4  ;;  %v4922_v30 = vrot.slane %v8376_v55, 5  ;;  %v4331_v50 = vrot.slane %v4329_v57, 4  ;;  %v4334_v18 = vrot.slane %v4332_v21, 5 }
 0x16d   : > { %v8369_v41 = vpop.f32.mrf.mxu0  ;;  %6419 = vmatmul.mubr.msk.bf16.vlgmr.msra.gmra.mxu0 %vm1185_vm9, %v9422_v45  ;;  %v4362_v45 = vshll.u32 %v8367_v61, 16  ;;  %v8407_v54 = vrot.slane %v4321_v19, 4  ;;  %v8411_v29 = vsel %vm7121_vm0, %v5879_v16, %v4919_v48  ;;  %v8413_v8 = vrot.slane %v4338_v28, 5  ;;  %v8415_v10 = vld [vmem:[#allocation2 + $0x98] sm:$0x1] }
 0x16e   : > { %6422 = vmatprep.mubr.msk.bf16.mxu0 %vm1185_vm9, %v9423_v13  ;;  %v4344_v42 = vrot.slane %v4342_v35, 4  ;;  %v4800_v57 = vld [vmem:[#allocation2 + $0x90] sm:$0xe]  ;;  %v4377_v21 = vshrl.u32 %v4097_v62, 16  ;;  %v4380_v24 = vshll.u32 %v4097_v62, 16  ;;  %v4355_v37 = vrot.slane %v4353_v39, 4 }
 0x16f   : > { %v8390_v51 = vpop.f32.mrf.mxu0  ;;  %v4358_v38 = vrot.slane %v4356_v27, 5  ;;  %v8423_v16 = vrot.slane %v4362_v45, 5  ;;  %v4368_v28 = vrot.slane %v4366_v25, 4  ;;  %v4335_v62 = vor.u32 %v4334_v18, %v4331_v50  ;;  %v4099_v35 = vld [vmem:[#allocation2 + $0xa4] sm:$0x1] }
 0x170   : > { %v8394_v13 = vpop.f32.mrf.mxu1  ;;  %v4348_v4 = vshll.u32 %v8376_v55, 16  ;;  %v9429_v39 = vcombine.low %v8168_v44, %v8172_v14  ;;  %v4345_v27 = vor.u32 %v4344_v42, %v8413_v8  ;;  %v5880_v45 = vrot.slane %v4800_v57, 9  ;;  %v4801_v55 = vld [vmem:[#allocation2 + $0x9c] sm:$0xe] }
 0x171   : > { %9425 = vst [vmem:[#allocation33_spill] sm:$0xff] %v8394_v13  ;;  %6345 = vmatmul.mubr.msk.bf16.gmra.mxu1 %vm1185_vm9, %v9426_v26  ;;  %v8405_v53 = vpop.f32.mrf.mxu0  ;;  %v4390_v13 = vshrl.u32 %v8388_v56, 16  ;;  %v4926_v25 = vrot.slane %v8367_v61, 5  ;;  %v9431_v18 = vcombine.low %v8176_v52, %v8189_v23  ;;  %v4382_v50 = vrot.slane %v4380_v24, 5 }
 0x172   : > { %6384 = vmatprep.mubr.msk.bf16.mxu1 %vm1185_vm9, %v8130_v22  ;;  %v8417_v26 = vpop.f32.mrf.mxu1  ;;  %v4386_v22 = vshll.u32 %v8388_v56, 16  ;;  %v4327_v61 = vsel %vm6797_vm13, %v8407_v54, %v8386_v59  ;;  %v4359_v42 = vor.u32 %v4358_v38, %v4355_v37  ;;  %v4369_v57 = vor.u32 %v4368_v28, %v8423_v16 }
 0x173   : > { %9427 = vst [vmem:[#allocation34_spill] sm:$0xff] %v8417_v26  ;;  %v8421_v19 = vpop.f32.mrf.mxu0  ;;  %v4921_v26 = vrot.slane %v4919_v48, 4  ;;  %v4379_v48 = vrot.slane %v4377_v21, 4  ;;  %v4392_v14 = vrot.slane %v4390_v13, 4  ;;  %v4933_v52 = vrot.slane %v8388_v56, 5 }
 0x174   : > { %v8425_v46 = vpop.f32.mrf.mxu1  ;;  %v8447_v44 = vrot.slane %v4386_v22, 5  ;;  %v4336_v13 = vrot.slane %v4335_v62, 4  ;;  %v4350_v21 = vrot.slane %v4348_v4, 5  ;;  %v4929_v22 = vrot.slane %v8415_v10, 5  ;;  %v4100_v56 = vld [vmem:[#allocation2 + $0xa8] sm:$0xf] }
 0x175   : > { %9428 = vst [vmem:[#allocation35_spill] sm:$0xff] %v8425_v46  ;;  %v8432_v1 = vpop.f32.mrf.mxu0  ;;  %6423 = vmatmul.mubr.msk.bf16.gmra.mxu0 %vm1185_vm9, %v9429_v39  ;;  %v4372_v46 = vshll.u32 %v8415_v10, 16  ;;  %v8461_v24 = vsel %vm7121_vm0, %v4921_v26, %v4922_v30  ;;  %v4346_v37 = vrot.slane %v4345_v27, 4  ;;  %v8470_v54 = vsel %vm7121_vm0, %v5880_v45, %v4926_v25  ;;  %v4101_v62 = vld [vmem:[#allocation2 + $0xac] sm:$0xf] }
 0x176   : > { %v8441_v9 = vpop.f32.mrf.mxu1  ;;  %6426 = vmatprep.mubr.msk.bf16.mxu0 %vm1185_vm9, %v9431_v18  ;;  %v4928_v59 = vrot.slane %v4926_v25, 4  ;;  %v4383_v26 = vor.u32 %v4382_v50, %v4379_v48  ;;  %v4393_v4 = vor.u32 %v4392_v14, %v8447_v44  ;;  %v4396_v10 = vshll.u32 %v4099_v35, 16  ;;  %v4802_v25 = vld [vmem:[#allocation2 + $0xa8] sm:$0xe] }
 0x177   : > { %9430 = vst [vmem:[#allocation36_spill] sm:$0xff] %v8441_v9  ;;  %v8449_v39 = vpop.f32.mrf.mxu0  ;;  %v4374_v30 = vrot.slane %v4372_v46, 5  ;;  %v4370_v9 = vrot.slane %v4369_v57, 4  ;;  %v4935_v27 = vrot.slane %v4933_v52, 4  ;;  %v4936_v7 = vrot.slane %v4099_v35, 5 }
 0x178   : > { %v6182_v23 = vpop.f32.mrf.mxu1  ;;  %v4341_v45 = vsel %vm6797_vm13, %v4336_v13, %v8413_v8  ;;  %v4401_v58 = vshrl.u32 %v4100_v56, 16  ;;  %v4404_v46 = vshll.u32 %v4100_v56, 16  ;;  %v9432_v50 = vcombine.low %v8236_v32, %v8268_v60 }
 0x179   : > { %6385 = vmatmul.mubr.msk.bf16.vlgmr.msra.gmra.mxu1 %vm1185_vm9, %v8139_v3  ;;  %v8466_v38 = vpop.f32.mrf.mxu0  ;;  %v5881_v3 = vrot.slane %v4801_v55, 9  ;;  %v4940_v55 = vrot.slane %v4101_v62, 5  ;;  %v4351_v14 = vsel %vm6797_vm13, %v4346_v37, %v4350_v21  ;;  %v8490_v35 = vsel %vm7121_vm0, %v4928_v59, %v4929_v22 }
 0x17a   : > { %6388 = vmatprep.mubr.msk.bf16.mxu1 %vm1185_vm9, %v8164_v34  ;;  %v8472_v28 = vpop.f32.mrf.mxu1  ;;  %v4360_v34 = vrot.slane %v4359_v42, 4  ;;  %v4102_v42 = vld [vmem:[#allocation2 + $0xb0] sm:$0x1]  ;;  %v4410_v8 = vshll.u32 %v4101_v62, 16  ;;  %v4414_v57 = vshrl.u32 %v4101_v62, 16  ;;  %v9433_v56 = vcombine.low %v8286_v33, %v8299_v15 }
 0x17b   : > { %v8475_v18 = vpop.f32.mrf.mxu0  ;;  %v8498_v32 = vsel %vm7121_vm0, %v5881_v3, %v4933_v52  ;;  %v4384_v60 = vrot.slane %v4383_v26, 4  ;;  %v4398_v21 = vrot.slane %v4396_v10, 5  ;;  %v4375_v59 = vsel %vm6797_vm13, %v4370_v9, %v4374_v30 }
 0x17c   : > { %v6183_v36 = vpop.f32.mrf.mxu1  ;;  %v4365_v22 = vsel %vm6797_vm13, %v4360_v34, %v8423_v16  ;;  %v8509_v33 = vsel %vm7121_vm0, %v4935_v27, %v4936_v7  ;;  %v5882_v15 = vrot.slane %v4802_v25, 9  ;;  %v4942_v52 = vrot.slane %v4940_v55, 4  ;;  %v9435_v34 = vld [vmem:[#allocation7_spill] sm:$0xff] }
 0x17d   : > { %v8480_v48 = vpop.f32.mrf.mxu0  ;;  %6427 = vmatmul.mubr.msk.bf16.gmra.mxu0 %vm1185_vm9, %v9432_v50  ;;  %v4394_v50 = vrot.slane %v4393_v4, 4  ;;  %v4943_v3 = vrot.slane %v4102_v42, 5  ;;  %v4403_v26 = vrot.slane %v4401_v58, 4  ;;  %v4406_v4 = vrot.slane %v4404_v46, 5  ;;  %v4803_v58 = vld [vmem:[#allocation2 + $0xb4] sm:$0xe] }
 0x17e   : > { %v1570_v13 = vpop.f32.mrf.mxu1  ;;  %6430 = vmatprep.mubr.msk.bf16.mxu0 %vm1185_vm9, %v9433_v56  ;;  %v9434_v7 = vsel %vm6797_vm13, %v8400_v6, %v8340_v17  ;;  %v5896_v30 = vcombine.low %v8411_v29, %v8461_v24  ;;  %v4416_v10 = vrot.slane %v4414_v57, 4  ;;  %v1576_v27 = vadd.f32 %v6182_v23, %v9435_v34  ;;  %v4804_v29 = vld [vmem:[#allocation2 + $0xc0] sm:$0xe] }
 0x17f   : > { %v8500_v37 = vpop.f32.mrf.mxu0  ;;  %v8522_v9 = vcombine.low %v9434_v7, %v4327_v61  ;;  %v4389_v46 = vsel %vm6797_vm13, %v4384_v60, %v8447_v44  ;;  %v4399_v17 = vsel %vm6797_vm13, %v4394_v50, %v4398_v21  ;;  %v5897_v61 = vcombine.low %v8470_v54, %v8490_v35  ;;  %v9436_v50 = vld [vmem:[#allocation6_spill] sm:$0xff]  ;;  %v8651_v35 = vld [vmem:[#allocation2 + $0xc8] sm:$0x1] }
 0x180   : > { %v6186_v62 = vpop.f32.mrf.mxu1  ;;  %v5898_v23 = vcombine.low %v8498_v32, %v8509_v33  ;;  %v4420_v57 = vshll.u32 %v4102_v42, 16  ;;  %v8550_v44 = vsel %vm7121_vm0, %v4942_v52, %v4943_v3  ;;  %v4407_v56 = vor.u32 %v4406_v4, %v4403_v26  ;;  %v8564_v52 = vld [vmem:[#allocation2 + $0xbc] sm:$0x1]  ;;  %v4103_v3 = vld [vmem:[#allocation2 + $0xb4] sm:$0xf] }
 0x181   : > { %6389 = vmatmul.mubr.msk.bf16.gmra.mxu1 %vm1185_vm9, %v8203_v20  ;;  %v8515_v16 = vpop.f32.mrf.mxu0  ;;  %v8526_v20 = vrot.slane %v4410_v8, 5  ;;  %v8540_v8 = vcombine.low %v4365_v22, %v4375_v59  ;;  %v5883_v60 = vrot.slane %v4803_v58, 9  ;;  %v1568_v21 = vadd.f32 %v8472_v28, %v9436_v50  ;;  %v9437_v22 = vld [vmem:[#allocation8_spill] sm:$0xff]  ;;  %v9439_v26 = vld [vmem:[#allocation9_spill] sm:$0xff] }
 0x182   : > { %6392 = vmatprep.mubr.msk.bf16.mxu1 %vm1185_vm9, %v8322_v63  ;;  %v1583_v25 = vpop.f32.mrf.mxu1  ;;  %v8529_v63 = vcombine.low %v4341_v45, %v4351_v14  ;;  %v8546_v14 = vsel %vm7121_vm0, %v5882_v15, %v4940_v55  ;;  %v1579_v59 = vadd.f32 %v6183_v36, %v9437_v22  ;;  %v9438_v42 = vcombine.low %v8334_v49, %v8338_v11  ;;  %v9441_v11 = vld [vmem:[#allocation14_spill] sm:$0xff] }
 0x183   : > { %v8536_v6 = vpop.f32.mrf.mxu0  ;;  %v8561_v55 = vcombine.low %v4389_v46, %v4399_v17  ;;  %v4417_v15 = vor.u32 %v4416_v10, %v8526_v20  ;;  %v1571_v4 = vadd.f32 %v1570_v13, %v9439_v26  ;;  %v1592_v28 = vadd.f32 %v6186_v62, %v8076_v31  ;;  %v9442_v46 = vld [vmem:[#allocation16_spill] sm:$0xff] }
 0x184   : > { %v6187_v45 = vpop.f32.mrf.mxu1  ;;  %v1584_v36 = vadd.f32 %v1583_v25, %v8112_v2  ;;  %v9440_v34 = vcombine.low %v8357_v5, %v8361_v40  ;;  %v8574_v49 = vadd.f32 %v8369_v41, %v1576_v27  ;;  %v5899_v31 = vcombine.low %v8546_v14, %v8550_v44  ;;  %v4104_v2 = vld [vmem:[#allocation2 + $0xb8] sm:$0xf] }
 0x185   : > { %v8555_v7 = vpop.f32.mrf.mxu0  ;;  %6431 = vmatmul.mubr.msk.bf16.gmra.mxu0 %vm1185_vm9, %v9438_v42  ;;  %v1595_v10 = vadd.f32 %v6187_v45, %v9441_v11  ;;  %v8582_v13 = vrot.slane %v4420_v57, 5  ;;  %v8586_v5 = vrot.slane %v4407_v56, 4  ;;  %v4947_v40 = vrot.slane %v4104_v2, 5  ;;  %v9443_v25 = vld [vmem:[#allocation18_spill] sm:$0xff] }
 0x186   : > { %v1586_v58 = vpop.f32.mrf.mxu1  ;;  %6434 = vmatprep.mubr.msk.bf16.mxu0 %vm1185_vm9, %v9440_v34  ;;  %v4950_v41 = vrot.slane %v8564_v52, 5  ;;  %v4425_v27 = vshrl.u32 %v4103_v3, 16  ;;  %v4428_v57 = vshll.u32 %v4103_v3, 16  ;;  %v8595_v42 = vadd.f32 %v8390_v51, %v1568_v21  ;;  %v4106_v21 = vld [vmem:[#allocation2 + $0xc0] sm:$0xf] }
 0x187   : > { %v1587_v17 = vadd.f32 %v1586_v58, %v9442_v46  ;;  %v8578_v50 = vpop.f32.mrf.mxu0  ;;  %v8598_v26 = vadd.f32 %v8405_v53, %v1579_v59  ;;  %v4418_v56 = vrot.slane %v4417_v15, 4  ;;  %v8601_v58 = vadd.f32 %v8421_v19, %v1571_v4 }
 0x188   : > { %v6190_v62 = vpop.f32.mrf.mxu1  ;;  %v8604_v34 = vadd.f32 %v8432_v1, %v1592_v28  ;;  %v8607_v11 = vadd.f32 %v8449_v39, %v1584_v36  ;;  %v4434_v51 = vshll.u32 %v4104_v2, 16  ;;  %v8613_v53 = vadd.f32 %v8466_v38, %v1595_v10  ;;  %v9445_v28 = vld [vmem:[#allocation22_spill] sm:$0xff]  ;;  %v4107_v10 = vld [vmem:[#allocation2 + $0xc4] sm:$0xf] }
 0x189   : > { %6393 = vmatmul.mubr.msk.bf16.gmra.mxu1 %vm1185_vm9, %v8342_v43  ;;  %v1608_v45 = vadd.f32 %v6190_v62, %v9443_v25  ;;  %v8592_v22 = vpop.f32.mrf.mxu0  ;;  %v8616_v59 = vadd.f32 %v8475_v18, %v1587_v17  ;;  %v8620_v1 = vsel %vm7121_vm0, %v5883_v60, %v4947_v40  ;;  %v4949_v15 = vrot.slane %v4947_v40, 4  ;;  %v9446_v40 = vld [vmem:[#allocation24_spill] sm:$0xff] }
 0x18a   : > { %6396 = vmatprep.mubr.msk.bf16.mxu1 %vm1185_vm9, %v8346_v0  ;;  %v1599_v43 = vpop.f32.mrf.mxu1  ;;  %v9444_v0 = vld [vmem:[#allocation20_spill] sm:$0xff]  ;;  %v4438_v39 = vshrl.u32 %v4104_v2, 16  ;;  %v4427_v38 = vrot.slane %v4425_v27, 4  ;;  %v4430_v18 = vrot.slane %v4428_v57, 5  ;;  %v4954_v24 = vrot.slane %v4107_v10, 5 }
 0x18b   : > { %v1600_v46 = vadd.f32 %v1599_v43, %v9444_v0  ;;  %v8610_v3 = vpop.f32.mrf.mxu0  ;;  %v8623_v4 = vadd.f32 %v8480_v48, %v1608_v45  ;;  %v4413_v48 = vsel %vm6797_vm13, %v8586_v5, %v8526_v20  ;;  %v4452_v2 = vshll.u32 %v4106_v21, 16  ;;  %v9447_v5 = vld [vmem:[#allocation32_spill] sm:$0xff] }
 0x18c   : > { %v6191_v19 = vpop.f32.mrf.mxu1  ;;  %v8649_v54 = vrot.slane %v4434_v51, 5  ;;  %v8660_v45 = vsel %vm7121_vm0, %v4949_v15, %v4950_v41  ;;  %v4440_v57 = vrot.slane %v4438_v39, 4  ;;  %v4458_v43 = vshll.u32 %v4107_v10, 16 }
 0x18d   : > { %v1611_v36 = vadd.f32 %v6191_v19, %v9445_v28  ;;  %v8626_v62 = vpop.f32.mrf.mxu0  ;;  %6435 = vmatmul.mubr.msk.bf16.gmra.mxu0 %vm1185_vm9, %v5896_v30  ;;  %v8633_v60 = vadd.f32 %v8500_v37, %v1600_v46  ;;  %v4449_v30 = vshrl.u32 %v4106_v21, 16  ;;  %v4423_v37 = vsel %vm6797_vm13, %v4418_v56, %v8582_v13  ;;  %v9448_v46 = vld [vmem:[#allocation26_spill] sm:$0xff] }
 0x18e   : > { %v1602_v17 = vpop.f32.mrf.mxu1  ;;  %6438 = vmatprep.mubr.msk.bf16.mxu0 %vm1185_vm9, %v5897_v61  ;;  %v4462_v0 = vshrl.u32 %v4107_v10, 16  ;;  %v5884_v51 = vrot.slane %v4804_v29, 9  ;;  %v4956_v28 = vrot.slane %v4954_v24, 4  ;;  %v4957_v41 = vrot.slane %v8651_v35, 5 }
 0x18f   : > { %v1603_v27 = vadd.f32 %v1602_v17, %v9446_v40  ;;  %v8644_v25 = vpop.f32.mrf.mxu0  ;;  %v8654_v61 = vadd.f32 %v8515_v16, %v1611_v36  ;;  %v4431_v16 = vor.u32 %v4430_v18, %v4427_v38  ;;  %v4451_v15 = vrot.slane %v4449_v30, 4  ;;  %v9449_v36 = vld [vmem:[#allocation27_spill] sm:$0xff]  ;;  %v4110_v38 = vld [vmem:[#allocation2 + $0xd0] sm:$0xf]  ;;  %v8678_v18 = vld [vmem:[#allocation2 + $0xd4] sm:$0x1] }
 0x190   : > { %v6194_v20 = vpop.f32.mrf.mxu1  ;;  %v4454_v39 = vrot.slane %v4452_v2, 5  ;;  %v8674_v40 = vcombine.low %v4413_v48, %v4423_v37  ;;  %v8684_v30 = vrot.slane %v4458_v43, 5  ;;  %v4464_v2 = vrot.slane %v4462_v0, 4 }
 0x191   : > { %6397 = vmatmul.mubr.msk.bf16.gmra.mxu1 %vm1185_vm9, %v9447_v5  ;;  %v1624_v13 = vadd.f32 %v6194_v20, %v9448_v46  ;;  %v8665_v56 = vpop.f32.mrf.mxu0  ;;  %v8668_v21 = vadd.f32 %v8536_v6, %v1603_v27  ;;  %v4444_v27 = vshll.u32 %v8564_v52, 16  ;;  %v4805_v20 = vld [vmem:[#allocation2 + $0xcc] sm:$0xe]  ;;  %v4961_v5 = vrot.slane %v4110_v38, 5  ;;  %v9450_v46 = vld [vmem:[#allocation29_spill] sm:$0xff] }
 0x192   : > { %6400 = vmatprep.mubr.msk.bf16.mxu1 %vm1185_vm9, %v8522_v9  ;;  %v1615_v19 = vpop.f32.mrf.mxu1  ;;  %v5900_v9 = vcombine.low %v8620_v1, %v8660_v45  ;;  %v8693_v1 = vrot.slane %v4431_v16, 4  ;;  %v4109_v45 = vld [vmem:[#allocation2 + $0xcc] sm:$0xf]  ;;  %v4955_v0 = vsel %vm7121_vm0, %v5884_v51, %v4954_v24  ;;  %v4958_v32 = vsel %vm7121_vm0, %v4956_v28, %v4957_v41 }
 0x193   : > { %v1616_v10 = vadd.f32 %v1615_v19, %v9449_v36  ;;  %v8672_v17 = vpop.f32.mrf.mxu0  ;;  %v8681_v6 = vadd.f32 %v8555_v7, %v1624_v13  ;;  %v4441_v7 = vor.u32 %v4440_v57, %v8649_v54  ;;  %v4455_v33 = vor.u32 %v4454_v39, %v4451_v15  ;;  %v9451_v57 = vld [vmem:[#allocation30_spill] sm:$0xff] }
 0x194   : > { %v6195_v29 = vpop.f32.mrf.mxu1  ;;  %v4964_v19 = vrot.slane %v8678_v18, 5  ;;  %v4963_v24 = vrot.slane %v4961_v5, 4  ;;  %v4473_v51 = vshrl.u32 %v4109_v45, 16  ;;  %v4476_v28 = vshll.u32 %v4109_v45, 16 }
 0x195   : > { %v1627_v48 = vadd.f32 %v6195_v29, %v9450_v46  ;;  %v8687_v37 = vpop.f32.mrf.mxu0  ;;  %6439 = vmatmul.mubr.msk.bf16.gmra.mxu0 %vm1185_vm9, %v5898_v23  ;;  %v8697_v52 = vadd.f32 %v8578_v50, %v1616_v10  ;;  %v4468_v23 = vshll.u32 %v8651_v35, 16  ;;  %v5885_v50 = vrot.slane %v4805_v20, 9  ;;  %v9452_v35 = vld [vmem:[#allocation10_spill] sm:$0xff] }
 0x196   : > { %v1618_v43 = vpop.f32.mrf.mxu1  ;;  %6442 = vmatprep.mubr.msk.bf16.mxu0 %vm1185_vm9, %v5899_v31  ;;  %v4465_v31 = vor.u32 %v4464_v2, %v8684_v30  ;;  %v4482_v39 = vshll.u32 %v4110_v38, 16  ;;  %v4486_v36 = vshrl.u32 %v4110_v38, 16  ;;  %v4442_v29 = vrot.slane %v4441_v7, 4  ;;  %v9453_v2 = vld [vmem:[#allocation12_spill] sm:$0xff] }
 0x197   : > { %v1619_v13 = vadd.f32 %v1618_v43, %v9451_v57  ;;  %v8709_v16 = vpop.f32.mrf.mxu0  ;;  %v8713_v14 = vadd.f32 %v8592_v22, %v1627_v48  ;;  %v4446_v20 = vrot.slane %v4444_v27, 5  ;;  %v4456_v46 = vrot.slane %v4455_v33, 4  ;;  %v9454_v27 = vld [vmem:[#allocation11_spill] sm:$0xff] }
 0x198   : > { %v6198_v44 = vpop.f32.mrf.mxu1  ;;  %v4470_v45 = vrot.slane %v4468_v23, 5  ;;  %v4962_v57 = vsel %vm7121_vm0, %v5885_v50, %v4961_v5  ;;  %v4466_v38 = vrot.slane %v4465_v31, 4  ;;  %v4478_v7 = vrot.slane %v4476_v28, 5 }
 0x199   : > { %6401 = vmatmul.mubr.msk.bf16.gmra.mxu1 %vm1185_vm9, %v8529_v63  ;;  %v1640_v41 = vadd.f32 %v6198_v44, %v9452_v35  ;;  %v6237_v15 = vpop.f32.mrf.mxu0  ;;  %v8722_v22 = vadd.f32 %v8610_v3, %v1619_v13  ;;  %v5901_v63 = vcombine.low %v4955_v0, %v4958_v32  ;;  %v4965_v3 = vsel %vm7121_vm0, %v4963_v24, %v4964_v19 }
 0x19a   : > { %6404 = vmatprep.mubr.msk.bf16.mxu1 %vm1185_vm9, %v8540_v8  ;;  %v1631_v10 = vpop.f32.mrf.mxu1  ;;  %v4475_v13 = vrot.slane %v4473_v51, 4  ;;  %v4484_v33 = vrot.slane %v4482_v39, 5  ;;  %v4488_v23 = vrot.slane %v4486_v36, 4  ;;  %v4437_v12 = vsel %vm6797_vm13, %v8693_v1, %v8649_v54  ;;  %v9456_v1 = vld [vmem:[#allocation15_spill] sm:$0xff] }
 0x19b   : > { %v1632_v48 = vadd.f32 %v1631_v10, %v9453_v2  ;;  %v2075_v43 = vpop.f32.mrf.mxu0  ;;  %v8728_v8 = vadd.f32 %v8626_v62, %v1640_v41  ;;  %v9455_v62 = vld [vmem:[#allocation13_spill] sm:$0xff]  ;;  %v4447_v19 = vsel %vm6797_vm13, %v4442_v29, %v4446_v20  ;;  %v4471_v51 = vsel %vm6797_vm13, %v4466_v38, %v4470_v45  ;;  %v9458_v45 = vld [vmem:[#allocation19_spill] sm:$0xff] }
 0x19c   : > { %v6199_v44 = vpop.f32.mrf.mxu1  ;;  %v5902_v28 = vcombine.low %v4962_v57, %v4965_v3  ;;  %v4492_v54 = vshll.u32 %v8678_v18, 16  ;;  %v4479_v39 = vor.u32 %v4478_v7, %v4475_v13  ;;  %v4489_v36 = vor.u32 %v4488_v23, %v4484_v33  ;;  %v9457_v29 = vld [vmem:[#allocation17_spill] sm:$0xff]  ;;  %v9460_v23 = vld [vmem:[#allocation23_spill] sm:$0xff] }
 0x19d   : > { %v1643_v0 = vadd.f32 %v6199_v44, %v9454_v27  ;;  %v6240_v32 = vpop.f32.mrf.mxu0  ;;  %6443 = vmatmul.mubr.msk.bf16.gmra.mxu0 %vm1185_vm9, %v5900_v9  ;;  %v8735_v35 = vadd.f32 %v8644_v25, %v1632_v48  ;;  %v4461_v25 = vsel %vm6797_vm13, %v4456_v46, %v8684_v30  ;;  %v5851_v18 = vcombine.low %v4437_v12, %v4447_v19  ;;  %v9459_v13 = vld [vmem:[#allocation21_spill] sm:$0xff] }
 0x19e   : > { %v1634_v5 = vpop.f32.mrf.mxu1  ;;  %6446 = vmatprep.mubr.msk.bf16.mxu0 %vm1185_vm9, %v5901_v63  ;;  %v5852_v2 = vcombine.low %v4461_v25, %v4471_v51  ;;  %v4494_v48 = vrot.slane %v4492_v54, 5  ;;  %v4480_v44 = vrot.slane %v4479_v39, 4  ;;  %v4490_v38 = vrot.slane %v4489_v36, 4 }
 0x19f   : > { %v1635_v50 = vadd.f32 %v1634_v5, %v9455_v62  ;;  %v2088_v31 = vpop.f32.mrf.mxu0  ;;  %v8746_v9 = vadd.f32 %v8665_v56, %v1643_v0 }
 0x1a0   : > { %v6202_v24 = vpop.f32.mrf.mxu1  ;;  %v4485_v62 = vsel %vm6797_vm13, %v4480_v44, %v4484_v33 }
 0x1a1   : > { %6405 = vmatmul.mubr.msk.bf16.gmra.mxu1 %vm1185_vm9, %v8561_v55  ;;  %v1656_v41 = vadd.f32 %v6202_v24, %v9456_v1  ;;  %v6241_v56 = vpop.f32.mrf.mxu0  ;;  %v8760_v55 = vadd.f32 %v8672_v17, %v1635_v50  ;;  %v9461_v24 = vld [vmem:[#allocation25_spill] sm:$0xff]  ;;  %v9462_v1 = vld [vmem:[#allocation28_spill] sm:$0xff] }
 0x1a2   : > { %6408 = vmatprep.mubr.msk.bf16.mxu1 %vm1185_vm9, %v8674_v40  ;;  %v1647_v10 = vpop.f32.mrf.mxu1 }
 0x1a3   : > { %v1648_v30 = vadd.f32 %v1647_v10, %v9457_v29  ;;  %v2091_v20 = vpop.f32.mrf.mxu0  ;;  %v8764_v63 = vadd.f32 %v8687_v37, %v1656_v41  ;;  %v9463_v10 = vld [vmem:[#allocation31_spill] sm:$0xff] }
 0x1a4   : > { %v6203_v46 = vpop.f32.mrf.mxu1 }
 0x1a5   : > { %v1659_v57 = vadd.f32 %v6203_v46, %v9458_v45  ;;  %v6244_v40 = vpop.f32.mrf.mxu0  ;;  %6447 = vmatmul.mubr.msk.bf16.gmra.mxu0 %vm1185_vm9, %v5902_v28  ;;  %v8769_v17 = vadd.f32 %v8709_v16, %v1648_v30  ;;  %v4495_v16 = vsel %vm6797_vm13, %v4490_v38, %v4494_v48  ;;  %v9464_v46 = vld [vmem:[#allocation33_spill] sm:$0xff]  ;;  %v9465_v45 = vld [vmem:[#allocation34_spill] sm:$0xff] }
 0x1a6   : > { %v1650_v3 = vpop.f32.mrf.mxu1  ;;  %v5853_v54 = vcombine.low %v4485_v62, %v4495_v16 }
 0x1a7   : > { %v1651_v7 = vadd.f32 %v1650_v3, %v9459_v13  ;;  %v2104_v27 = vpop.f32.mrf.mxu0  ;;  %v8772_v37 = vadd.f32 %v6237_v15, %v1659_v57  ;;  %v9466_v3 = vld [vmem:[#allocation35_spill] sm:$0xff] }
 0x1a8   : > { %v6206_v0 = vpop.f32.mrf.mxu1 }
 0x1a9   : > { %6409 = vmatmul.mubr.msk.bf16.gmra.mxu1 %vm1185_vm9, %v5851_v18  ;;  %v1672_v5 = vadd.f32 %v6206_v0, %v9460_v23  ;;  %v6245_v50 = vpop.f32.mrf.mxu0  ;;  %v8781_v12 = vadd.f32 %v2075_v43, %v1651_v7  ;;  %v9467_v23 = vld [vmem:[#allocation36_spill] sm:$0xff] }
 0x1aa   : > { %6412 = vmatprep.mubr.msk.bf16.mxu1 %vm1185_vm9, %v5852_v2  ;;  %v1663_v19 = vpop.f32.mrf.mxu1 }
 0x1ab   : > { %v1664_v15 = vadd.f32 %v1663_v19, %v9461_v24  ;;  %v2107_v25 = vpop.f32.mrf.mxu0  ;;  %v8784_v51 = vadd.f32 %v6240_v32, %v1672_v5 }
 0x1ac   : > { %v6207_v28 = vpop.f32.mrf.mxu1 }
 0x1ad   : > { %v1675_v41 = vadd.f32 %v6207_v28, %v9462_v1  ;;  %v6284_v39 = vpop.f32.mrf.mxu0  ;;  %v8787_v36 = vadd.f32 %v2088_v31, %v1664_v15 }
 0x1ae   : > { %v1666_v33 = vpop.f32.mrf.mxu1 }
 0x1af   : > { %v1667_v47 = vadd.f32 %v1666_v33, %v9463_v10  ;;  %v3076_v29 = vpop.f32.mrf.mxu0  ;;  %v8790_v30 = vadd.f32 %v6241_v56, %v1675_v41 }
 0x1b1   : > { %v6210_v43 = vpop.f32.mrf.mxu1  ;;  %6413 = vmatmul.mubr.msk.bf16.gmra.mxu1 %vm1185_vm9, %v5853_v54  ;;  %v6285_v32 = vpop.f32.mrf.mxu0  ;;  %v8794_v2 = vadd.f32 %v2091_v20, %v1667_v47 }
 0x1b2   : > { %v1688_v18 = vadd.f32 %v6210_v43, %v9464_v46 }
 0x1b3   : > { %v1679_v48 = vpop.f32.mrf.mxu1  ;;  %v3079_v44 = vpop.f32.mrf.mxu0 }
 0x1b4   : > { %v1680_v57 = vadd.f32 %v1679_v48, %v9465_v45  ;;  %v8797_v31 = vadd.f32 %v6244_v40, %v1688_v18 }
 0x1b5   : > { %v6211_v38 = vpop.f32.mrf.mxu1  ;;  %v6288_v7 = vpop.f32.mrf.mxu0 }
 0x1b6   : > { %v1691_v13 = vadd.f32 %v6211_v38, %v9466_v3  ;;  %v8800_v56 = vadd.f32 %v2104_v27, %v1680_v57 }
 0x1b7   : > { %v1682_v0 = vpop.f32.mrf.mxu1  ;;  %v3092_v62 = vpop.f32.mrf.mxu0 }
 0x1b8   : > { %v1683_v5 = vadd.f32 %v1682_v0, %v9467_v23  ;;  %v8803_v16 = vadd.f32 %v6245_v50, %v1691_v13 }
 0x1b9   : > { %v6250_v20 = vpop.f32.mrf.mxu1  ;;  %v6289_v24 = vpop.f32.mrf.mxu0 }
 0x1ba   : > { %v2479_v19 = vadd.f32 %v6250_v20, %v8574_v49  ;;  %v8806_v15 = vadd.f32 %v2107_v25, %v1683_v5 }
 0x1bb   : > { %v2350_v40 = vpop.f32.mrf.mxu1  ;;  %v3095_v54 = vpop.f32.mrf.mxu0 }
 0x1bc   : > { %v2477_v28 = vadd.f32 %v2350_v40, %v8595_v42  ;;  %v8809_v1 = vadd.f32 %v6284_v39, %v2479_v19 }
 0x1bd   : > { %v6251_v27 = vpop.f32.mrf.mxu1  ;;  %v6292_v33 = vpop.f32.mrf.mxu0 }
 0x1be   : > { %v2480_v41 = vadd.f32 %v6251_v27, %v8598_v26  ;;  %v8812_v10 = vadd.f32 %v3076_v29, %v2477_v28 }
 0x1bf   : > { %v2353_v50 = vpop.f32.mrf.mxu1  ;;  %v3108_v43 = vpop.f32.mrf.mxu0 }
 0x1c0   : > { %v2478_v47 = vadd.f32 %v2353_v50, %v8601_v58  ;;  %v8815_v49 = vadd.f32 %v6285_v32, %v2480_v41 }
 0x1c1   : > { %v6254_v25 = vpop.f32.mrf.mxu1  ;;  %v6293_v18 = vpop.f32.mrf.mxu0 }
 0x1c2   : > { %v2483_v46 = vadd.f32 %v6254_v25, %v8604_v34  ;;  %v8818_v42 = vadd.f32 %v3079_v44, %v2478_v47 }
 0x1c3   : > { %v2366_v39 = vpop.f32.mrf.mxu1  ;;  %v3111_v45 = vpop.f32.mrf.mxu0 }
 0x1c4   : > { %v2481_v48 = vadd.f32 %v2366_v39, %v8607_v11  ;;  %v8821_v26 = vadd.f32 %v6288_v7, %v2483_v46 }
 0x1c5   : > { %v6255_v29 = vpop.f32.mrf.mxu1  ;;  %v6296_v38 = vpop.f32.mrf.mxu0 }
 0x1c6   : > { %v2484_v57 = vadd.f32 %v6255_v29, %v8613_v53  ;;  %v8824_v58 = vadd.f32 %v3092_v62, %v2481_v48 }
 0x1c7   : > { %v2369_v32 = vpop.f32.mrf.mxu1  ;;  %v3124_v13 = vpop.f32.mrf.mxu0 }
 0x1c8   : > { %v2482_v3 = vadd.f32 %v2369_v32, %v8616_v59  ;;  %v8827_v34 = vadd.f32 %v6289_v24, %v2484_v57 }
 0x1c9   : > { %v6258_v44 = vpop.f32.mrf.mxu1  ;;  %v6297_v23 = vpop.f32.mrf.mxu0 }
 0x1ca   : > { %v2487_v0 = vadd.f32 %v6258_v44, %v8623_v4  ;;  %v8830_v11 = vadd.f32 %v3095_v54, %v2482_v3 }
 0x1cb   : > { %v2382_v7 = vpop.f32.mrf.mxu1  ;;  %v3127_v20 = vpop.f32.mrf.mxu0 }
 0x1cc   : > { %v2485_v5 = vadd.f32 %v2382_v7, %v8633_v60  ;;  %v8833_v53 = vadd.f32 %v6292_v33, %v2487_v0 }
 0x1cd   : > { %v6259_v62 = vpop.f32.mrf.mxu1  ;;  %v6300_v40 = vpop.f32.mrf.mxu0 }
 0x1ce   : > { %v2488_v19 = vadd.f32 %v6259_v62, %v8654_v61  ;;  %v8836_v59 = vadd.f32 %v3108_v43, %v2485_v5 }
 0x1cf   : > { %v2385_v24 = vpop.f32.mrf.mxu1  ;;  %v3140_v27 = vpop.f32.mrf.mxu0 }
 0x1d0   : > { %v2486_v28 = vadd.f32 %v2385_v24, %v8668_v21  ;;  %v8839_v4 = vadd.f32 %v6293_v18, %v2488_v19 }
 0x1d1   : > { %v6262_v54 = vpop.f32.mrf.mxu1  ;;  %v6301_v50 = vpop.f32.mrf.mxu0 }
 0x1d2   : > { %v2491_v41 = vadd.f32 %v6262_v54, %v8681_v6  ;;  %v8842_v60 = vadd.f32 %v3111_v45, %v2486_v28 }
 0x1d3   : > { %v2398_v33 = vpop.f32.mrf.mxu1  ;;  %v3143_v25 = vpop.f32.mrf.mxu0 }
 0x1d4   : > { %v2489_v47 = vadd.f32 %v2398_v33, %v8697_v52  ;;  %v8845_v61 = vadd.f32 %v6296_v38, %v2491_v41 }
 0x1d5   : > { %v6263_v43 = vpop.f32.mrf.mxu1  ;;  %v6304_v39 = vpop.f32.mrf.mxu0 }
 0x1d6   : > { %v2492_v46 = vadd.f32 %v6263_v43, %v8713_v14  ;;  %v8848_v21 = vadd.f32 %v3124_v13, %v2489_v47 }
 0x1d7   : > { %v2401_v18 = vpop.f32.mrf.mxu1  ;;  %v3156_v29 = vpop.f32.mrf.mxu0 }
 0x1d8   : > { %v2490_v48 = vadd.f32 %v2401_v18, %v8722_v22  ;;  %v8851_v6 = vadd.f32 %v6297_v23, %v2492_v46 }
 0x1d9   : > { %v6266_v45 = vpop.f32.mrf.mxu1  ;;  %v6305_v32 = vpop.f32.mrf.mxu0 }
 0x1da   : > { %v2495_v57 = vadd.f32 %v6266_v45, %v8728_v8  ;;  %v8854_v52 = vadd.f32 %v3127_v20, %v2490_v48 }
 0x1db   : > { %v2414_v38 = vpop.f32.mrf.mxu1  ;;  %v3159_v44 = vpop.f32.mrf.mxu0 }
 0x1dc   : > { %v2493_v3 = vadd.f32 %v2414_v38, %v8735_v35  ;;  %v8857_v14 = vadd.f32 %v6300_v40, %v2495_v57 }
 0x1dd   : > { %v6267_v13 = vpop.f32.mrf.mxu1  ;;  %v6308_v7 = vpop.f32.mrf.mxu0 }
 0x1de   : > { %v2496_v0 = vadd.f32 %v6267_v13, %v8746_v9  ;;  %v8860_v22 = vadd.f32 %v3140_v27, %v2493_v3 }
 0x1df   : > { %v2417_v23 = vpop.f32.mrf.mxu1  ;;  %v3172_v62 = vpop.f32.mrf.mxu0 }
 0x1e0   : > { %v2494_v5 = vadd.f32 %v2417_v23, %v8760_v55  ;;  %v8863_v8 = vadd.f32 %v6301_v50, %v2496_v0 }
 0x1e1   : > { %v6270_v20 = vpop.f32.mrf.mxu1  ;;  %v6309_v24 = vpop.f32.mrf.mxu0 }
 0x1e2   : > { %9468 = vst [vmem:[#allocation7_spill] sm:$0xff] %v8863_v8  ;;  %v2499_v19 = vadd.f32 %v6270_v20, %v8764_v63  ;;  %v8866_v35 = vadd.f32 %v3143_v25, %v2494_v5 }
 0x1e3   : > { %v2430_v40 = vpop.f32.mrf.mxu1  ;;  %v3175_v54 = vpop.f32.mrf.mxu0 }
 0x1e4   : > { %9469 = vst [vmem:[#allocation6_spill] sm:$0xff] %v8866_v35  ;;  %v2497_v28 = vadd.f32 %v2430_v40, %v8769_v17  ;;  %v8869_v9 = vadd.f32 %v6304_v39, %v2499_v19 }
 0x1e5   : > { %v6271_v27 = vpop.f32.mrf.mxu1  ;;  %v6312_v33 = vpop.f32.mrf.mxu0 }
 0x1e6   : > { %9470 = vst [vmem:[#allocation8_spill] sm:$0xff] %v8869_v9  ;;  %v2500_v41 = vadd.f32 %v6271_v27, %v8772_v37  ;;  %v8872_v55 = vadd.f32 %v3156_v29, %v2497_v28 }
 0x1e7   : > { %v2433_v50 = vpop.f32.mrf.mxu1  ;;  %v3188_v43 = vpop.f32.mrf.mxu0 }
 0x1e8   : > { %9471 = vst [vmem:[#allocation9_spill] sm:$0xff] %v8872_v55  ;;  %v2498_v47 = vadd.f32 %v2433_v50, %v8781_v12  ;;  %v8875_v63 = vadd.f32 %v6305_v32, %v2500_v41 }
 0x1e9   : > { %v6274_v25 = vpop.f32.mrf.mxu1  ;;  %v6313_v18 = vpop.f32.mrf.mxu0 }
 0x1ea   : > { %9472 = vst [vmem:[#allocation14_spill] sm:$0xff] %v8875_v63  ;;  %v2503_v46 = vadd.f32 %v6274_v25, %v8784_v51  ;;  %v8878_v17 = vadd.f32 %v3159_v44, %v2498_v47 }
 0x1eb   : > { %v2446_v39 = vpop.f32.mrf.mxu1  ;;  %v3191_v45 = vpop.f32.mrf.mxu0 }
 0x1ec   : > { %9473 = vst [vmem:[#allocation16_spill] sm:$0xff] %v8878_v17  ;;  %v2501_v48 = vadd.f32 %v2446_v39, %v8787_v36  ;;  %v8881_v37 = vadd.f32 %v6308_v7, %v2503_v46 }
 0x1ed   : > { %v6275_v29 = vpop.f32.mrf.mxu1  ;;  %v8884_v38 = vpop.f32.mrf.mxu0 }
 0x1ee   : > { %9474 = vst [vmem:[#allocation18_spill] sm:$0xff] %v8881_v37  ;;  %v2504_v57 = vadd.f32 %v6275_v29, %v8790_v30  ;;  %v8886_v12 = vadd.f32 %v3172_v62, %v2501_v48 }
 0x1ef   : > { %v2449_v32 = vpop.f32.mrf.mxu1  ;;  %v8889_v51 = vpop.f32.mrf.mxu0 }
 0x1f0   : > { %9475 = vst [vmem:[#allocation20_spill] sm:$0xff] %v8886_v12  ;;  %v2502_v3 = vadd.f32 %v2449_v32, %v8794_v2  ;;  %v8891_v44 = vadd.f32 %v6309_v24, %v2504_v57 }
 0x1f1   : > { %v6278_v13 = vpop.f32.mrf.mxu1  ;;  %v8894_v0 = vpop.f32.mrf.mxu0 }
 0x1f2   : > { %9476 = vst [vmem:[#allocation22_spill] sm:$0xff] %v8891_v44  ;;  %v2507_v36 = vadd.f32 %v6278_v13, %v8797_v31  ;;  %v8896_v7 = vadd.f32 %v3175_v54, %v2502_v3 }
 0x1f3   : > { %v2462_v23 = vpop.f32.mrf.mxu1  ;;  %v8899_v5 = vpop.f32.mrf.mxu0 }
 0x1f4   : > { %9477 = vst [vmem:[#allocation24_spill] sm:$0xff] %v8896_v7  ;;  %v2505_v30 = vadd.f32 %v2462_v23, %v8800_v56  ;;  %v8901_v62 = vadd.f32 %v6312_v33, %v2507_v36 }
 0x1f5   : > { %v6279_v20 = vpop.f32.mrf.mxu1  ;;  %v8904_v19 = vpop.f32.mrf.mxu0 }
 0x1f6   : > { %9478 = vst [vmem:[#allocation32_spill] sm:$0xff] %v8901_v62  ;;  %v2508_v2 = vadd.f32 %v6279_v20, %v8803_v16  ;;  %v8906_v24 = vadd.f32 %v3188_v43, %v2505_v30 }
 0x1f7   : > { %v2465_v40 = vpop.f32.mrf.mxu1  ;;  %v8909_v28 = vpop.f32.mrf.mxu0 }
 0x1f8   : > { %9479 = vst [vmem:[#allocation26_spill] sm:$0xff] %v8906_v24  ;;  %v2506_v31 = vadd.f32 %v2465_v40, %v8806_v15  ;;  %v8911_v54 = vadd.f32 %v6313_v18, %v2508_v2 }
 0x1f9   : > { %v6318_v27 = vpop.f32.mrf.mxu1  ;;  %v8913_v56 = vpop.f32.mrf.mxu0 }
 0x1fa   : > { %9480 = vst [vmem:[#allocation27_spill] sm:$0xff] %v8911_v54  ;;  %v8915_v41 = vadd.f32 %v3191_v45, %v2506_v31 }
 0x1fb   : > { %v3546_v33 = vpop.f32.mrf.mxu1  ;;  %v8917_v50 = vpop.f32.mrf.mxu0 }
 0x1fc   : > { %9481 = vst [vmem:[#allocation29_spill] sm:$0xff] %v8915_v41 }
 0x1fd   : > { %v6319_v16 = vpop.f32.mrf.mxu1  ;;  %v8919_v47 = vpop.f32.mrf.mxu0 }
 0x1ff   : > { %v8921_v43 = vpop.f32.mrf.mxu1  ;;  %v8923_v25 = vpop.f32.mrf.mxu0 }
 0x201   : > { %v8925_v15 = vpop.f32.mrf.mxu1  ;;  %v8927_v46 = vpop.f32.mrf.mxu0 }
 0x203   : > { %v8929_v18 = vpop.f32.mrf.mxu1  ;;  %v8931_v39 = vpop.f32.mrf.mxu0 }
 0x205   : > { %v8933_v48 = vpop.f32.mrf.mxu1  ;;  %v8935_v45 = vpop.f32.mrf.mxu0 }
 0x207   : > { %v8937_v29 = vpop.f32.mrf.mxu1  ;;  %v8939_v57 = vpop.f32.mrf.mxu0 }
 0x209   : > { %v8941_v32 = vpop.f32.mrf.mxu1  ;;  %v8943_v3 = vpop.f32.mrf.mxu0 }
 0x20a   : > { %9482 = vst [vmem:[#allocation30_spill] sm:$0xff] %v8943_v3 }
 0x20b   : > { %v8945_v13 = vpop.f32.mrf.mxu1  ;;  %v8947_v36 = vpop.f32.mrf.mxu0 }
 0x20c   : > { %9483 = vst [vmem:[#allocation10_spill] sm:$0xff] %v8947_v36 }
 0x20d   : > { %v8949_v23 = vpop.f32.mrf.mxu1  ;;  %v8951_v30 = vpop.f32.mrf.mxu0 }
 0x20e   : > { %9484 = vst [vmem:[#allocation12_spill] sm:$0xff] %v8951_v30 }
 0x20f   : > { %v8953_v20 = vpop.f32.mrf.mxu1  ;;  %v8955_v2 = vpop.f32.mrf.mxu0 }
 0x210   : > { %9485 = vst [vmem:[#allocation11_spill] sm:$0xff] %v8955_v2 }
 0x211   : > { %v8957_v40 = vpop.f32.mrf.mxu1  ;;  %v8959_v31 = vpop.f32.mrf.mxu0 }
 0x212   : > { %9486 = vst [vmem:[#allocation13_spill] sm:$0xff] %v8959_v31 }
 0x213   : > { %v8961_v41 = vpop.f32.mrf.mxu1  ;;  %v8963_v54 = vpop.f32.mrf.mxu0 }
 0x214   : > { %9487 = vst [vmem:[#allocation15_spill] sm:$0xff] %v8963_v54 }
 0x215   : > { %v8965_v24 = vpop.f32.mrf.mxu1  ;;  %v8967_v62 = vpop.f32.mrf.mxu0 }
 0x216   : > { %9488 = vst [vmem:[#allocation17_spill] sm:$0xff] %v8967_v62 }
 0x217   : > { %v8969_v7 = vpop.f32.mrf.mxu1  ;;  %v8971_v44 = vpop.f32.mrf.mxu0 }
 0x218   : > { %9489 = vst [vmem:[#allocation19_spill] sm:$0xff] %v8971_v44 }
 0x219   : > { %v8973_v12 = vpop.f32.mrf.mxu1  ;;  %v8975_v37 = vpop.f32.mrf.mxu0 }
 0x21a   : > { %9490 = vst [vmem:[#allocation21_spill] sm:$0xff] %v8975_v37 }
 0x21b   : > { %v8977_v17 = vpop.f32.mrf.mxu1  ;;  %v8979_v63 = vpop.f32.mrf.mxu0 }
 0x21c   : > { %9491 = vst [vmem:[#allocation23_spill] sm:$0xff] %v8977_v17  ;;  %9492 = vst [vmem:[#allocation25_spill] sm:$0xff] %v8979_v63 }
 0x21d   : > { %v8981_v55 = vpop.f32.mrf.mxu1  ;;  %v8983_v31 = vpop.f32.mrf.mxu0 }
 0x21e   : > { %9493 = vst [vmem:[#allocation28_spill] sm:$0xff] %v8981_v55  ;;  %9494 = vst [vmem:[#allocation31_spill] sm:$0xff] %v8983_v31 }
 0x21f   : > { %v8985_v54 = vpop.f32.mrf.mxu1  ;;  %v8987_v9 = vpop.f32.mrf.mxu0 }
 0x220   : > { %9495 = vst [vmem:[#allocation33_spill] sm:$0xff] %v8985_v54  ;;  %9496 = vst [vmem:[#allocation34_spill] sm:$0xff] %v8987_v9 }
 0x221   : > { %v8989_v62 = vpop.f32.mrf.mxu1  ;;  %v8991_v35 = vpop.f32.mrf.mxu0 }
 0x222   : > { %9497 = vst [vmem:[#allocation35_spill] sm:$0xff] %v8989_v62  ;;  %9498 = vst [vmem:[#allocation36_spill] sm:$0xff] %v8991_v35 }
 0x223   : > { %v8993_v44 = vpop.f32.mrf.mxu1  ;;  %v8995_v2 = vpop.f32.mrf.mxu0 }
 0x224   : > { %9499 = vst [vmem:[#allocation37_spill] sm:$0xff] %v8993_v44  ;;  %9500 = vst [vmem:[#allocation38_spill] sm:$0xff] %v8995_v2 }
 0x225   : > { %v8997_v37 = vpop.f32.mrf.mxu1  ;;  %v8999_v30 = vpop.f32.mrf.mxu0 }
 0x226   : > { %9501 = vst [vmem:[#allocation39_spill] sm:$0xff] %v8997_v37  ;;  %9502 = vst [vmem:[#allocation40_spill] sm:$0xff] %v8999_v30 }
 0x227   : > { %v9001_v63 = vpop.f32.mrf.mxu1  ;;  %v9003_v55 = vpop.f32.mrf.mxu0 }
 0x228   : > { %9503 = vst [vmem:[#allocation41_spill] sm:$0xff] %v9001_v63  ;;  %9504 = vst [vmem:[#allocation42_spill] sm:$0xff] %v9003_v55  ;;  %v3675_v55 = vadd.f32 %v6318_v27, %v8809_v1 }
 0x229   : > { %v9005_v31 = vpop.f32.mrf.mxu1  ;;  %v9007_v54 = vpop.f32.mrf.mxu0 }
 0x22a   : > { %9505 = vst [vmem:[#allocation43_spill] sm:$0xff] %v9005_v31  ;;  %9506 = vst [vmem:[#allocation44_spill] sm:$0xff] %v9007_v54 }
 0x22b   : > { %v9009_v9 = vpop.f32.mrf.mxu1  ;;  %v9011_v62 = vpop.f32.mrf.mxu0 }
 0x22c   : > { %9507 = vst [vmem:[#allocation45_spill] sm:$0xff] %v9009_v9  ;;  %9508 = vst [vmem:[#allocation46_spill] sm:$0xff] %v9011_v62  ;;  %v3673_v9 = vadd.f32 %v3546_v33, %v8812_v10  ;;  %v9036_v10 = vld [vmem:[%s9331_s2] ss:$0 sm:$0xff] }
 0x22d   : > { %v9013_v35 = vpop.f32.mrf.mxu1  ;;  %v6420_v44 = vpop.f32.mrf.mxu0 }
 0x22e   : > { %9509 = vst [vmem:[#allocation47_spill] sm:$0xff] %v9013_v35  ;;  %v3676_v35 = vadd.f32 %v6319_v16, %v8815_v49  ;;  %v4032_v1 = vadd.f32 %v8889_v51, %v3673_v9 }
 0x22f   : > { %v9015_v2 = vpop.f32.mrf.mxu1  ;;  %v5101_v37 = vpop.f32.mrf.mxu0 }
 0x230   : > { %9510 = vst [vmem:[#allocation48_spill] sm:$0xff] %v9015_v2  ;;  %v4034_v2 = vadd.f32 %v8884_v38, %v3675_v55  ;;  %v4035_v55 = vadd.f32 %v8894_v0, %v3676_v35  ;;  %v3680_v35 = vadd.f32 %v8933_v48, %v8827_v34 }
 0x231   : > { %v9017_v8 = vpop.f32.mrf.mxu1  ;;  %v6421_v30 = vpop.f32.mrf.mxu0 }
 0x232   : > { %9511 = vst [vmem:[#allocation49_spill] sm:$0xff] %v9017_v8 }
 0x233   : > { %v9019_v63 = vpop.f32.mrf.mxu1  ;;  %v5104_v31 = vpop.f32.mrf.mxu0 }
 0x234   : > { %9512 = vst [vmem:[#allocation50_spill] sm:$0xff] %v9019_v63  ;;  %v3674_v63 = vadd.f32 %v8921_v43, %v8818_v42  ;;  %v3679_v42 = vadd.f32 %v8925_v15, %v8821_v26 }
 0x235   : > { %v9022_v54 = vpop.f32.mrf.mxu1  ;;  %v6424_v62 = vpop.f32.mrf.mxu0 }
 0x237   : > { %v9025_v36 = vpop.f32.mrf.mxu1  ;;  %v5117_v3 = vpop.f32.mrf.mxu0 }
 0x239   : > { %v6386_v8 = vpop.f32.mrf.mxu1  ;;  %v6425_v27 = vpop.f32.mrf.mxu0 }
 0x23a   : > { %v4760_v17 = vadd.f32 %v6386_v8, %v4034_v2  ;;  %v3677_v8 = vadd.f32 %v8929_v18, %v8824_v58 }
 0x23b   : > { %v4631_v33 = vpop.f32.mrf.mxu1  ;;  %v9039_v38 = vpop.f32.mrf.mxu0 }
 0x23c   : > { %v5230_v49 = vadd.f32 %v6420_v44, %v4760_v17  ;;  %v4758_v16 = vadd.f32 %v4631_v33, %v4032_v1  ;;  %v4033_v17 = vadd.f32 %v8899_v5, %v3674_v63  ;;  %v3678_v33 = vadd.f32 %v8937_v29, %v8830_v11 }
 0x23d   : > { %v6387_v9 = vpop.f32.mrf.mxu1  ;;  %v9049_v44 = vpop.f32.mrf.mxu0  ;;  %v4036_v5 = vadd.f32 %v8909_v28, %v3677_v8  ;;  %v4039_v11 = vadd.f32 %v8913_v56, %v3680_v35 }
 0x23e   : > { %v5269_v51 = vadd.f32 %v9036_v10, %v5230_v49  ;;  %v5228_v43 = vadd.f32 %v5101_v37, %v4758_v16  ;;  %v4761_v2 = vadd.f32 %v6387_v9, %v4035_v55  ;;  %v4038_v37 = vadd.f32 %v8904_v19, %v3679_v42 }
 0x23f   : > { %v4634_v0 = vpop.f32.mrf.mxu1  ;;  %v9054_v18 = vpop.f32.mrf.mxu0 }
 0x240   : > { %v5301_v1 = vmax.f32 %v5269_v51, 0.0  ;;  %v5267_v26 = vadd.f32 %v9036_v10, %v5228_v43  ;;  %v5231_v15 = vadd.f32 %v6421_v30, %v4761_v2  ;;  %v4759_v58 = vadd.f32 %v4634_v0, %v4033_v17 }
 0x241   : > { %v6390_v63 = vpop.f32.mrf.mxu1  ;;  %v9061_v55 = vpop.f32.mrf.mxu0  ;;  %v3683_v30 = vadd.f32 %v8941_v32, %v8833_v53  ;;  %v4037_v32 = vadd.f32 %v8917_v50, %v3678_v33  ;;  %v3681_v0 = vadd.f32 %v8945_v13, %v8836_v59  ;;  %v3682_v59 = vadd.f32 %v8953_v20, %v8842_v60 }
 0x242   : > { %v5960_v49 = vpack.c.bf16 %v5301_v1, %v5301_v1  ;;  %v5299_v16 = vmax.f32 %v5267_v26, 0.0  ;;  %v5270_v34 = vadd.f32 %v9036_v10, %v5231_v15  ;;  %v5229_v48 = vadd.f32 %v5104_v31, %v4759_v58 }
 0x243   : > { %v4764_v9 = vadd.f32 %v6390_v63, %v4038_v37  ;;  %v4647_v51 = vpop.f32.mrf.mxu1  ;;  %v9071_v42 = vpop.f32.mrf.mxu0  ;;  %v3684_v1 = vadd.f32 %v8949_v23, %v8839_v4  ;;  %v4042_v50 = vadd.f32 %v8919_v47, %v3683_v30  ;;  %v4040_v60 = vadd.f32 %v8923_v25, %v3681_v0 }
 0x244   : > { %5462 = vst.msk [vmem:[%s9066_s6 + $0x8] sm:$0xf] %vm5459_vm1, %v5960_v49  ;;  %v5958_v19 = vpack.c.bf16 %v5299_v16, %v5299_v16  ;;  %v5302_v28 = vmax.f32 %v5270_v34, 0.0  ;;  %v5268_v29 = vadd.f32 %v9036_v10, %v5229_v48  ;;  %v4762_v31 = vadd.f32 %v4647_v51, %v4036_v5 }
 0x245   : > { %v5234_v8 = vadd.f32 %v6424_v62, %v4764_v9  ;;  %v6391_v53 = vpop.f32.mrf.mxu1  ;;  %v9076_v35 = vpop.f32.mrf.mxu0  ;;  %v4043_v34 = vadd.f32 %v8927_v46, %v3684_v1  ;;  %v4041_v25 = vadd.f32 %v8931_v39, %v3682_v59  ;;  %v9514_v59 = vld [vmem:[#allocation30_spill] sm:$0xff] }
 0x246   : > { %5460 = vst.msk [vmem:[%s9066_s6] sm:$0xf] %vm5459_vm1, %v5958_v19  ;;  %v5961_v56 = vpack.c.bf16 %v5302_v28, %v5302_v28  ;;  %v5300_v43 = vmax.f32 %v5268_v29, 0.0  ;;  %v5232_v2 = vadd.f32 %v5117_v3, %v4762_v31  ;;  %v4765_v17 = vadd.f32 %v6391_v53, %v4039_v11 }
 0x247   : > { %v5273_v62 = vadd.f32 %v9036_v10, %v5234_v8  ;;  %v4650_v26 = vpop.f32.mrf.mxu1  ;;  %v9087_v37 = vpop.f32.mrf.mxu0  ;;  %v3685_v11 = vadd.f32 %v8961_v41, %v8848_v21 }
 0x248   : > { %5463 = vst.msk [vmem:[%s9066_s6 + $0xc] sm:$0xf] %vm5459_vm1, %v5961_v56  ;;  %v5959_v15 = vpack.c.bf16 %v5300_v43, %v5300_v43  ;;  %v5271_v3 = vadd.f32 %v9036_v10, %v5232_v2  ;;  %v5235_v58 = vadd.f32 %v6425_v27, %v4765_v17  ;;  %v4763_v33 = vadd.f32 %v4650_v26, %v4037_v32 }
 0x249   : > { %v5305_v13 = vmax.f32 %v5273_v62, 0.0  ;;  %v6394_v63 = vpop.f32.mrf.mxu1  ;;  %v9095_v49 = vpop.f32.mrf.mxu0  ;;  %v3687_v27 = vadd.f32 %v8957_v40, %v8845_v61  ;;  %v3688_v43 = vadd.f32 %v8965_v24, %v8851_v6  ;;  %v3686_v2 = vadd.f32 %v8969_v7, %v8854_v52 }
 0x24a   : > { %5461 = vst.msk [vmem:[%s9066_s6 + $0x4] sm:$0xf] %vm5459_vm1, %v5959_v15  ;;  %v5303_v4 = vmax.f32 %v5271_v3, 0.0  ;;  %v5274_v47 = vadd.f32 %v9036_v10, %v5235_v58  ;;  %v5233_v23 = vadd.f32 %v9039_v38, %v4763_v33  ;;  %v4768_v5 = vadd.f32 %v6394_v63, %v4042_v50 }
 0x24b   : > { %v5964_v16 = vpack.c.bf16 %v5305_v13, %v5305_v13  ;;  %v4663_v20 = vpop.f32.mrf.mxu1  ;;  %v9103_v38 = vpop.f32.mrf.mxu0  ;;  %v4046_v21 = vadd.f32 %v8935_v45, %v3687_v27  ;;  %v4044_v45 = vadd.f32 %v8939_v57, %v3685_v11  ;;  %v3691_v6 = vadd.f32 %v8973_v12, %v8857_v14  ;;  %v9515_v13 = vld [vmem:[#allocation10_spill] sm:$0xff]  ;;  %v9516_v27 = vld [vmem:[#allocation7_spill] sm:$0xff] }
 0x24c   : > { %v5962_v48 = vpack.c.bf16 %v5303_v4, %v5303_v4  ;;  %v5306_v30 = vmax.f32 %v5274_v47, 0.0  ;;  %v5272_v9 = vadd.f32 %v9036_v10, %v5233_v23  ;;  %v5238_v51 = vadd.f32 %v9049_v44, %v4768_v5 }
 0x24d   : > { %5466 = vst.msk [vmem:[%s9066_s6 + $0x18] sm:$0xf] %vm5459_vm1, %v5964_v16  ;;  %v4766_v61 = vadd.f32 %v4663_v20, %v4040_v60  ;;  %v6395_v40 = vpop.f32.mrf.mxu1  ;;  %v9113_v44 = vpop.f32.mrf.mxu0  ;;  %v4047_v14 = vadd.f32 %v9514_v59, %v3688_v43  ;;  %v4045_v63 = vadd.f32 %v9515_v13, %v3686_v2  ;;  %v9517_v16 = vld [vmem:[#allocation28_spill] sm:$0xff] }
 0x24e   : > { %5464 = vst.msk [vmem:[%s9066_s6 + $0x10] sm:$0xf] %vm5459_vm1, %v5962_v48  ;;  %v5965_v46 = vpack.c.bf16 %v5306_v30, %v5306_v30  ;;  %v5304_v19 = vmax.f32 %v5272_v9, 0.0  ;;  %v5277_v28 = vadd.f32 %v9036_v10, %v5238_v51  ;;  %v4769_v29 = vadd.f32 %v6395_v40, %v4043_v34  ;;  %v9518_v34 = vld [vmem:[#allocation12_spill] sm:$0xff] }
 0x24f   : > { %v5236_v31 = vadd.f32 %v9054_v18, %v4766_v61  ;;  %v4666_v8 = vpop.f32.mrf.mxu1  ;;  %v9120_v56 = vpop.f32.mrf.mxu0  ;;  %v3692_v60 = vadd.f32 %v9517_v16, %v9516_v27  ;;  %v4050_v48 = vadd.f32 %v9518_v34, %v3691_v6  ;;  %v9526_v6 = vld [vmem:[#allocation37_spill] sm:$0xff]  ;;  %v9531_v16 = vld [vmem:[#allocation16_spill] sm:$0xff] }
 0x250   : > { %5467 = vst.msk [vmem:[%s9066_s6 + $0x1c] sm:$0xf] %vm5459_vm1, %v5965_v46  ;;  %v5963_v41 = vpack.c.bf16 %v5304_v19, %v5304_v19  ;;  %v5309_v53 = vmax.f32 %v5277_v28, 0.0  ;;  %v5239_v39 = vadd.f32 %v9061_v55, %v4769_v29  ;;  %v4767_v32 = vadd.f32 %v4666_v8, %v4041_v25  ;;  %v9519_v25 = vld [vmem:[#allocation11_spill] sm:$0xff] }
 0x251   : > { %v5275_v18 = vadd.f32 %v9036_v10, %v5236_v31  ;;  %v6398_v17 = vpop.f32.mrf.mxu1  ;;  %v9132_v26 = vpop.f32.mrf.mxu0 }
 0x252   : > { %5465 = vst.msk [vmem:[%s9066_s6 + $0x14] sm:$0xf] %vm5459_vm1, %v5963_v41  ;;  %v5968_v0 = vpack.c.bf16 %v5309_v53, %v5309_v53  ;;  %v5278_v55 = vadd.f32 %v9036_v10, %v5239_v39  ;;  %v5237_v1 = vadd.f32 %v9071_v42, %v4767_v32  ;;  %v4772_v62 = vadd.f32 %v6398_v17, %v4046_v21  ;;  %v9513_v42 = vld [vmem:[#allocation23_spill] sm:$0xff]  ;;  %v9520_v21 = vld [vmem:[#allocation6_spill] sm:$0xff]  ;;  %v9521_v41 = vld [vmem:[#allocation33_spill] sm:$0xff] }
 0x253   : > { %v5307_v24 = vmax.f32 %v5275_v18, 0.0  ;;  %v4679_v52 = vpop.f32.mrf.mxu1  ;;  %v9140_v3 = vpop.f32.mrf.mxu0  ;;  %v3689_v58 = vadd.f32 %v9513_v42, %v8860_v22  ;;  %v3690_v53 = vadd.f32 %v9521_v41, %v9520_v21  ;;  %v9522_v39 = vld [vmem:[#allocation8_spill] sm:$0xff]  ;;  %v9523_v32 = vld [vmem:[#allocation35_spill] sm:$0xff]  ;;  %v9524_v18 = vld [vmem:[#allocation13_spill] sm:$0xff] }
 0x254   : > { %5470 = vst.msk [vmem:[%s9066_s6 + $0x28] sm:$0xf] %vm5459_vm1, %v5968_v0  ;;  %v5310_v7 = vmax.f32 %v5278_v55, 0.0  ;;  %v5276_v57 = vadd.f32 %v9036_v10, %v5237_v1  ;;  %v5242_v50 = vadd.f32 %v9076_v35, %v4772_v62  ;;  %v4770_v15 = vadd.f32 %v4679_v52, %v4044_v45  ;;  %v9525_v62 = vld [vmem:[#allocation9_spill] sm:$0xff]  ;;  %v9535_v41 = vld [vmem:[#allocation18_spill] sm:$0xff] }
 0x255   : > { %v5966_v33 = vpack.c.bf16 %v5307_v24, %v5307_v24  ;;  %v6399_v12 = vpop.f32.mrf.mxu1  ;;  %v9148_v35 = vpop.f32.mrf.mxu0  ;;  %v4048_v46 = vadd.f32 %v9519_v25, %v3689_v58  ;;  %v3695_v43 = vadd.f32 %v9523_v32, %v9522_v39  ;;  %v4051_v17 = vadd.f32 %v9524_v18, %v3692_v60  ;;  %v9532_v60 = vld [vmem:[#allocation41_spill] sm:$0xff]  ;;  %v9537_v32 = vld [vmem:[#allocation20_spill] sm:$0xff] }
 0x256   : > { %v5969_v4 = vpack.c.bf16 %v5310_v7, %v5310_v7  ;;  %v5308_v47 = vmax.f32 %v5276_v57, 0.0  ;;  %v5281_v23 = vadd.f32 %v9036_v10, %v5242_v50  ;;  %v5240_v5 = vadd.f32 %v9087_v37, %v4770_v15  ;;  %v9539_v18 = vld [vmem:[#allocation25_spill] sm:$0xff] }
 0x257   : > { %5468 = vst.msk [vmem:[%s9066_s6 + $0x20] sm:$0xf] %vm5459_vm1, %v5966_v33  ;;  %v4773_v22 = vadd.f32 %v6399_v12, %v4047_v14  ;;  %v4682_v20 = vpop.f32.mrf.mxu1  ;;  %v9158_v37 = vpop.f32.mrf.mxu0  ;;  %v3693_v24 = vadd.f32 %v9526_v6, %v9525_v62  ;;  %v9528_v33 = vld [vmem:[#allocation39_spill] sm:$0xff]  ;;  %v9540_v62 = vld [vmem:[#allocation22_spill] sm:$0xff] }
 0x258   : > { %5471 = vst.msk [vmem:[%s9066_s6 + $0x2c] sm:$0xf] %vm5459_vm1, %v5969_v4  ;;  %v5967_v30 = vpack.c.bf16 %v5308_v47, %v5308_v47  ;;  %v5313_v9 = vmax.f32 %v5281_v23, 0.0  ;;  %v5279_v51 = vadd.f32 %v9036_v10, %v5240_v5  ;;  %v4771_v11 = vadd.f32 %v4682_v20, %v4045_v63  ;;  %v9529_v12 = vld [vmem:[#allocation15_spill] sm:$0xff]  ;;  %v9530_v4 = vld [vmem:[#allocation17_spill] sm:$0xff] }
 0x259   : > { %v5243_v61 = vadd.f32 %v9095_v49, %v4773_v22  ;;  %v6402_v40 = vpop.f32.mrf.mxu1  ;;  %v9165_v8 = vpop.f32.mrf.mxu0  ;;  %v4049_v13 = vadd.f32 %v9529_v12, %v3690_v53  ;;  %v4054_v47 = vadd.f32 %v9530_v4, %v3695_v43  ;;  %v3694_v22 = vadd.f32 %v9532_v60, %v9531_v16  ;;  %v9536_v53 = vld [vmem:[#allocation43_spill] sm:$0xff]  ;;  %v9538_v43 = vld [vmem:[#allocation45_spill] sm:$0xff] }
 0x25a   : > { %5469 = vst.msk [vmem:[%s9066_s6 + $0x24] sm:$0xf] %vm5459_vm1, %v5967_v30  ;;  %v5972_v19 = vpack.c.bf16 %v5313_v9, %v5313_v9  ;;  %v5311_v28 = vmax.f32 %v5279_v51, 0.0  ;;  %v5241_v29 = vadd.f32 %v9103_v38, %v4771_v11  ;;  %v4776_v31 = vadd.f32 %v6402_v40, %v4050_v48  ;;  %v9533_v48 = vld [vmem:[#allocation19_spill] sm:$0xff]  ;;  %v9547_v16 = vld [vmem:[#allocation49_spill] sm:$0xff] }
 0x25b   : > { %v5282_v49 = vadd.f32 %v9036_v10, %v5243_v61  ;;  %v4695_v2 = vpop.f32.mrf.mxu1  ;;  %v9177_v1 = vpop.f32.mrf.mxu0  ;;  %v4052_v30 = vadd.f32 %v9533_v48, %v3693_v24  ;;  %v3699_v39 = vadd.f32 %v9536_v53, %v9535_v41  ;;  %v9541_v6 = vld [vmem:[#allocation47_spill] sm:$0xff]  ;;  %v9551_v41 = vld [vmem:[#allocation50_spill] sm:$0xff] }
 0x25c   : > { %5474 = vst.msk [vmem:[%s9066_s6 + $0x38] sm:$0xf] %vm5459_vm1, %v5972_v19  ;;  %v5970_v45 = vpack.c.bf16 %v5311_v28, %v5311_v28  ;;  %v5280_v38 = vadd.f32 %v9036_v10, %v5241_v29  ;;  %v5246_v0 = vadd.f32 %v9113_v44, %v4776_v31  ;;  %v4774_v55 = vadd.f32 %v4695_v2, %v4048_v46  ;;  %v9527_v44 = vld [vmem:[#allocation14_spill] sm:$0xff]  ;;  %v9534_v46 = vld [vmem:[#allocation21_spill] sm:$0xff] }
 0x25d   : > { %v5314_v52 = vmax.f32 %v5282_v49, 0.0  ;;  %v6403_v7 = vpop.f32.mrf.mxu1  ;;  %v9185_v58 = vpop.f32.mrf.mxu0  ;;  %v3696_v59 = vadd.f32 %v9528_v33, %v9527_v44  ;;  %v3697_v49 = vadd.f32 %v9538_v43, %v9537_v32  ;;  %v3700_v24 = vadd.f32 %v9541_v6, %v9540_v62  ;;  %v9542_v44 = vld [vmem:[#allocation24_spill] sm:$0xff] }
 0x25e   : > { %5472 = vst.msk [vmem:[%s9066_s6 + $0x30] sm:$0xf] %vm5459_vm1, %v5970_v45  ;;  %v5312_v57 = vmax.f32 %v5280_v38, 0.0  ;;  %v5285_v50 = vadd.f32 %v9036_v10, %v5246_v0  ;;  %v5244_v15 = vadd.f32 %v9120_v56, %v4774_v55  ;;  %v4777_v42 = vadd.f32 %v6403_v7, %v4051_v17  ;;  %v9543_v33 = vld [vmem:[#allocation48_spill] sm:$0xff] }
 0x25f   : > { %v5973_v14 = vpack.c.bf16 %v5314_v52, %v5314_v52  ;;  %v4698_v63 = vpop.f32.mrf.mxu1  ;;  %v5197_v9 = vpop.f32.mrf.mxu0  ;;  %v4055_v19 = vadd.f32 %v9534_v46, %v3696_v59  ;;  %v4053_v17 = vadd.f32 %v9539_v18, %v3694_v22  ;;  %v3698_v59 = vadd.f32 %v9543_v33, %v9542_v44 }
 0x260   : > { %v5971_v23 = vpack.c.bf16 %v5312_v57, %v5312_v57  ;;  %v5317_v5 = vmax.f32 %v5285_v50, 0.0  ;;  %v5283_v27 = vadd.f32 %v9036_v10, %v5244_v15  ;;  %v5247_v56 = vadd.f32 %v9132_v26, %v4777_v42 }
 0x261   : > { %5475 = vst.msk [vmem:[%s9066_s6 + $0x3c] sm:$0xf] %vm5459_vm1, %v5973_v14  ;;  %v4775_v20 = vadd.f32 %v4698_v63, %v4049_v13  ;;  %v6406_v34 = vpop.f32.mrf.mxu1  ;;  %v6445_v45 = vpop.f32.mrf.mxu0  ;;  %v9544_v14 = vld [vmem:[#allocation31_spill] sm:$0xff]  ;;  %v9545_v63 = vld [vmem:[#allocation34_spill] sm:$0xff] }
 0x262   : > { %5473 = vst.msk [vmem:[%s9066_s6 + $0x34] sm:$0xf] %vm5459_vm1, %v5971_v23  ;;  %v5976_v51 = vpack.c.bf16 %v5317_v5, %v5317_v5  ;;  %v5315_v11 = vmax.f32 %v5283_v27, 0.0  ;;  %v5286_v61 = vadd.f32 %v9036_v10, %v5247_v56  ;;  %v4780_v40 = vadd.f32 %v6406_v34, %v4054_v47  ;;  %v9548_v34 = vld [vmem:[#allocation36_spill] sm:$0xff] }
 0x263   : > { %v5245_v26 = vadd.f32 %v9140_v3, %v4775_v20  ;;  %v4711_v25 = vpop.f32.mrf.mxu1  ;;  %v4058_v12 = vadd.f32 %v9544_v14, %v3699_v39  ;;  %v4056_v4 = vadd.f32 %v9545_v63, %v3697_v49  ;;  %v5200_v47 = vpop.f32.mrf.mxu0  ;;  %v4059_v48 = vadd.f32 %v9548_v34, %v3700_v24  ;;  %v9552_v39 = vld [vmem:[#allocation27_spill] sm:$0xff]  ;;  %v9553_v49 = vld [vmem:[#allocation40_spill] sm:$0xff] }
 0x264   : > { %5478 = vst.msk [vmem:[%s9066_s6 + $0x48] sm:$0xf] %vm5459_vm1, %v5976_v51  ;;  %v5974_v28 = vpack.c.bf16 %v5315_v11, %v5315_v11  ;;  %v5318_v29 = vmax.f32 %v5286_v61, 0.0  ;;  %v5250_v31 = vadd.f32 %v9148_v35, %v4780_v40  ;;  %v4778_v21 = vadd.f32 %v4711_v25, %v4052_v30 }
 0x265   : > { %v5284_v2 = vadd.f32 %v9036_v10, %v5245_v26  ;;  %v6407_v3 = vpop.f32.mrf.mxu1  ;;  %v9549_v26 = vld [vmem:[#allocation38_spill] sm:$0xff]  ;;  %v6448_v46 = vpop.f32.mrf.mxu0  ;;  %v3704_v32 = vadd.f32 %v9022_v54, %v9552_v39 }
 0x266   : > { %5476 = vst.msk [vmem:[%s9066_s6 + $0x40] sm:$0xf] %vm5459_vm1, %v5974_v28  ;;  %v5977_v38 = vpack.c.bf16 %v5318_v29, %v5318_v29  ;;  %v5289_v0 = vadd.f32 %v9036_v10, %v5250_v31  ;;  %v5248_v35 = vadd.f32 %v9158_v37, %v4778_v21  ;;  %v4781_v55 = vadd.f32 %v6407_v3, %v4055_v19  ;;  %v9550_v21 = vld [vmem:[#allocation26_spill] sm:$0xff] }
 0x267   : > { %v5316_v52 = vmax.f32 %v5284_v2, 0.0  ;;  %v4714_v7 = vpop.f32.mrf.mxu1  ;;  %v4057_v25 = vadd.f32 %v9549_v26, %v3698_v59  ;;  %v3701_v53 = vadd.f32 %v9551_v41, %v9550_v21  ;;  %v5213_v62 = vpop.f32.mrf.mxu0 }
 0x268   : > { %5479 = vst.msk [vmem:[%s9066_s6 + $0x4c] sm:$0xf] %vm5459_vm1, %v5977_v38  ;;  %v5321_v57 = vmax.f32 %v5289_v0, 0.0  ;;  %v5287_v50 = vadd.f32 %v9036_v10, %v5248_v35  ;;  %v5251_v15 = vadd.f32 %v9165_v8, %v4781_v55  ;;  %v4779_v42 = vadd.f32 %v4714_v7, %v4053_v17  ;;  %v9546_v8 = vld [vmem:[#allocation32_spill] sm:$0xff]  ;;  %v9554_v38 = vld [vmem:[#allocation29_spill] sm:$0xff] }
 0x269   : > { %v5975_v37 = vpack.c.bf16 %v5316_v52, %v5316_v52  ;;  %v6410_v13 = vpop.f32.mrf.mxu1  ;;  %v3703_v60 = vadd.f32 %v9547_v16, %v9546_v8  ;;  %v3702_v0 = vadd.f32 %v9025_v36, %v9554_v38  ;;  %v6449_v14 = vpop.f32.mrf.mxu0 }
 0x26a   : > { %v5980_v23 = vpack.c.bf16 %v5321_v57, %v5321_v57  ;;  %v5319_v5 = vmax.f32 %v5287_v50, 0.0  ;;  %v5290_v27 = vadd.f32 %v9036_v10, %v5251_v15  ;;  %v5249_v56 = vadd.f32 %v9177_v1, %v4779_v42  ;;  %v9555_v57 = vld [vmem:[#allocation42_spill] sm:$0xff]  ;;  %v9556_v15 = vld [vmem:[#allocation44_spill] sm:$0xff] }
 0x26b   : > { %5477 = vst.msk [vmem:[%s9066_s6 + $0x44] sm:$0xf] %vm5459_vm1, %v5975_v37  ;;  %v4784_v22 = vadd.f32 %v6410_v13, %v4058_v12  ;;  %v4727_v20 = vpop.f32.mrf.mxu1  ;;  %v4062_v2 = vadd.f32 %v9553_v49, %v3703_v60  ;;  %v4060_v50 = vadd.f32 %v9555_v57, %v3701_v53  ;;  %v4063_v42 = vadd.f32 %v9556_v15, %v3704_v32  ;;  %v9557_v13 = vld [vmem:[#allocation46_spill] sm:$0xff]  ;;  %v5216_v34 = vpop.f32.mrf.mxu0 }
 0x26c   : > { %5482 = vst.msk [vmem:[%s9066_s6 + $0x58] sm:$0xf] %vm5459_vm1, %v5980_v23  ;;  %v5978_v30 = vpack.c.bf16 %v5319_v5, %v5319_v5  ;;  %v5322_v51 = vmax.f32 %v5290_v27, 0.0  ;;  %v5288_v11 = vadd.f32 %v9036_v10, %v5249_v56  ;;  %v4782_v61 = vadd.f32 %v4727_v20, %v4056_v4 }
 0x26d   : > { %v5254_v40 = vadd.f32 %v9185_v58, %v4784_v22  ;;  %v6411_v1 = vpop.f32.mrf.mxu1  ;;  %v4061_v63 = vadd.f32 %v9557_v13, %v3702_v0 }
 0x26e   : > { %5480 = vst.msk [vmem:[%s9066_s6 + $0x50] sm:$0xf] %vm5459_vm1, %v5978_v30  ;;  %v5981_v19 = vpack.c.bf16 %v5322_v51, %v5322_v51  ;;  %v5320_v28 = vmax.f32 %v5288_v11, 0.0  ;;  %v5252_v29 = vadd.f32 %v5197_v9, %v4782_v61  ;;  %v4785_v31 = vadd.f32 %v6411_v1, %v4059_v48 }
 0x26f   : > { %v5293_v43 = vadd.f32 %v9036_v10, %v5254_v40  ;;  %v4730_v58 = vpop.f32.mrf.mxu1 }
 0x270   : > { %5483 = vst.msk [vmem:[%s9066_s6 + $0x5c] sm:$0xf] %vm5459_vm1, %v5981_v19  ;;  %v5979_v3 = vpack.c.bf16 %v5320_v28, %v5320_v28  ;;  %v5291_v18 = vadd.f32 %v9036_v10, %v5252_v29  ;;  %v5255_v17 = vadd.f32 %v6445_v45, %v4785_v31  ;;  %v4783_v9 = vadd.f32 %v4730_v58, %v4057_v25 }
 0x271   : > { %v5325_v35 = vmax.f32 %v5293_v43, 0.0  ;;  %v6414_v55 = vpop.f32.mrf.mxu1 }
 0x272   : > { %5481 = vst.msk [vmem:[%s9066_s6 + $0x54] sm:$0xf] %vm5459_vm1, %v5979_v3  ;;  %v5323_v54 = vmax.f32 %v5291_v18, 0.0  ;;  %v5294_v6 = vadd.f32 %v9036_v10, %v5255_v17  ;;  %v5253_v24 = vadd.f32 %v5200_v47, %v4783_v9  ;;  %v4788_v52 = vadd.f32 %v6414_v55, %v4062_v2 }
 0x273   : > { %v5984_v7 = vpack.c.bf16 %v5325_v35, %v5325_v35  ;;  %v4743_v45 = vpop.f32.mrf.mxu1 }
 0x274   : > { %v5982_v44 = vpack.c.bf16 %v5323_v54, %v5323_v54  ;;  %v5326_v36 = vmax.f32 %v5294_v6, 0.0  ;;  %v5292_v33 = vadd.f32 %v9036_v10, %v5253_v24  ;;  %v5258_v59 = vadd.f32 %v6448_v46, %v4788_v52 }
 0x275   : > { %5486 = vst.msk [vmem:[%s9066_s6 + $0x68] sm:$0xf] %vm5459_vm1, %v5984_v7  ;;  %v4786_v37 = vadd.f32 %v4743_v45, %v4060_v50  ;;  %v6415_v12 = vpop.f32.mrf.mxu1 }
 0x276   : > { %5484 = vst.msk [vmem:[%s9066_s6 + $0x60] sm:$0xf] %vm5459_vm1, %v5982_v44  ;;  %v5985_v4 = vpack.c.bf16 %v5326_v36, %v5326_v36  ;;  %v5324_v47 = vmax.f32 %v5292_v33, 0.0  ;;  %v5297_v23 = vadd.f32 %v9036_v10, %v5258_v59  ;;  %v4789_v5 = vadd.f32 %v6415_v12, %v4063_v42 }
 0x277   : > { %v5256_v27 = vadd.f32 %v5213_v62, %v4786_v37  ;;  %v4746_v56 = vpop.f32.mrf.mxu1 }
 0x278   : > { %5487 = vst.msk [vmem:[%s9066_s6 + $0x6c] sm:$0xf] %vm5459_vm1, %v5985_v4  ;;  %v5983_v8 = vpack.c.bf16 %v5324_v47, %v5324_v47  ;;  %v5329_v16 = vmax.f32 %v5297_v23, 0.0  ;;  %v5259_v60 = vadd.f32 %v6449_v14, %v4789_v5  ;;  %v4787_v22 = vadd.f32 %v4746_v56, %v4061_v63 }
 0x279   : > { %v5295_v20 = vadd.f32 %v9036_v10, %v5256_v27 }
 0x27a   : > { %5485 = vst.msk [vmem:[%s9066_s6 + $0x64] sm:$0xf] %vm5459_vm1, %v5983_v8  ;;  %v5988_v48 = vpack.c.bf16 %v5329_v16, %v5329_v16  ;;  %v5298_v30 = vadd.f32 %v9036_v10, %v5259_v60  ;;  %v5257_v51 = vadd.f32 %v5216_v34, %v4787_v22 }
 0x27b   : > { %v5327_v11 = vmax.f32 %v5295_v20, 0.0 }
 0x27c   : > { %5490 = vst.msk [vmem:[%s9066_s6 + $0x78] sm:$0xf] %vm5459_vm1, %v5988_v48  ;;  %v5330_v61 = vmax.f32 %v5298_v30, 0.0  ;;  %v5296_v40 = vadd.f32 %v9036_v10, %v5257_v51 }
 0x27d   : > { %v5986_v1 = vpack.c.bf16 %v5327_v11, %v5327_v11 }
 0x27e   : > { %v5989_v26 = vpack.c.bf16 %v5330_v61, %v5330_v61  ;;  %v5328_v25 = vmax.f32 %v5296_v40, 0.0 }
 0x27f   : > { %5488 = vst.msk [vmem:[%s9066_s6 + $0x70] sm:$0xf] %vm5459_vm1, %v5986_v1 }
 0x280   : > { %5491 = vst.msk [vmem:[%s9066_s6 + $0x7c] sm:$0xf] %vm5459_vm1, %v5989_v26  ;;  %v5987_v10 = vpack.c.bf16 %v5328_v25, %v5328_v25 }
 0x282   : > { %5489 = vst.msk [vmem:[%s9066_s6 + $0x74] sm:$0xf] %vm5459_vm1, %v5987_v10 }
 0x283   : > { %6560 = shalt.err (!%p6557_p3)
}
 0x284   : > { %s6561_s25 = scalar_lea.hbm %s9279_s11, 2048  ;;  %s6565_s28 = scalar_lea.hbm %s9332_s3, 4096 }
 0x285   : > { %p6562_p4 = scmp.ne.s32.totalorder %s9279_s11, %s6561_s25  ;;  %p6566_p9 = scmp.lt.s32.totalorder %s9279_s11, %s9332_s3 }
 0x286   : > { %p6567_p10 = scmp.lt.s32.totalorder %s6565_s28, %s6561_s25 }
 0x287   : > { %p6563_p7 = pnand %p6562_p4, %p6672_p5 }
 0x288   : > { %p6568_p11 = por %p6567_p10, %p6566_p9 }
 0x289   : > { %p6564_p8 = pneg %p6563_p7 }
 0x28b   : > { %p6569_p12 = pnand %p6568_p11, %p6564_p8 }
 0x28d   : > { %6572 = shalt.err (!%p6569_p12)
}
 0x28e   : > { %s6612_s4 = smov 64   ;;  %s6613_s5 = smov 4  }
 0x28f   : > { %6452 = dma.vmem_to_hbm [thread:$0]  (%p6672_p5), %s9281_s8, 2048, %s9279_s11, %s9289_s16, %s6612_s4, %s6612_s4, %s6613_s5  }
 0x290 PF: > { %p6458_p13 = scmp.ge.s32.totalorder %s6607_s15, 2  ;;  %s5521_s6 = sand.u32 1, %s6595_s12  }
 0x291   : > { %s5522_s7 = scalar_lea.sflag [#allocation4], %s5521_s6 }
 0x292   : > { %p6455_p0 = pnand %p6458_p13, %p6676_p6 }
 0x294   : > { %p6456_p1 = pneg %p6455_p0 }
 0x296   : > { %6590 = dma.done.wait (%p6456_p1), %s5522_s7, 2048  }
 0x297   : > { %6592 = vsyncadd (%p6456_p1), %s5522_s7, 4294965248  ;;  %p13_p2 = scmp.ge.s32.totalorder %s6659_s18, 4   ;;  %s9558_s12 = smov %s6599_s13 }
 0x298   : > { %s9559_s13 = smov %s6603_s14  ;;  %s9560_s14 = smov %s6670_s21 }
 0x299   : > { %s9561_s15 = smov %s6659_s18  ;;  %15 = sbr.rel (!%p13_p2) target bundleno = 3 (0x3), region = 77 }
 0x29e   :  { %5527 = vsyncpa [#allocation4], 1 }
 0x29f   :  { %5529 = vsyncpa [#allocation4 + $0x1], 1 }

</bundles_post_ra>
